<compile_context>
chip_gen: v5e
topology: v5e:2x2
jax: 0.10.0
libtpu: 0.0.40
codegen_flags: <defaults>
</compile_context>

<pallas_src>
import functools

import jax
import jax.numpy as jnp
from jax import lax
from jax.experimental import pallas as pl
from jax.experimental.pallas import tpu as pltpu


def _round_up(n, m):
    return ((n + m - 1) // m) * m


def _largest_divisor_leq(n, cap):
    best = 1
    for d in range(1, min(n, cap) + 1):
        if n % d == 0:
            best = d
    return best


def _pick_c_tile(C, hw_lanes, budget_bytes):
    """Channel tile dividing C: multiple of 8 (or full C), largest that fits."""
    bytes_per_ch = hw_lanes * 4
    if _round_up(C, 8) * bytes_per_ch <= budget_bytes:
        return C                       # whole channel axis fits -> single tile
    best_fit = None
    smallest_valid = None
    for d in range(8, C + 1, 8):       # second-minor block dim must be 8-aligned
        if C % d == 0:
            if smallest_valid is None:
                smallest_valid = d
            if d * bytes_per_ch <= budget_bytes:
                best_fit = d
    if best_fit is not None:
        return best_fit
    if smallest_valid is not None:
        return smallest_valid
    return C


def _spatial_attention_kernel(w_ref, x_ref, o_ref,
                              sum_ref, max_ref, pad_ref,
                              *, K, PAD, C, G, GPS, N_STEPS, H, W):
    ct = pl.program_id(1)
    n_ct = pl.num_programs(1)

    # ---- init running reductions at the start of each batch element ----
    @pl.when(ct == 0)
    def _():
        sum_ref[...] = jnp.zeros(sum_ref.shape, jnp.float32)
        max_ref[...] = jnp.full(max_ref.shape, -jnp.inf, jnp.float32)

    # ---- single fused lane-dense pass over this channel tile ----
    CH = G * GPS    # channels consumed per fori step

    def body(i, carry):
        s, m = carry
        base = pl.multiple_of(i * CH, CH)
        for g in range(GPS):
            xg = x_ref[0, pl.ds(base + g * G, G), :].astype(jnp.float32)  # (G, HW)
            s = s + xg
            m = jnp.maximum(m, xg)
        return s, m

    s, m = lax.fori_loop(0, N_STEPS, body,
                         (sum_ref[...], max_ref[...]),
                         unroll=(N_STEPS <= 8))
    sum_ref[...] = s
    max_ref[...] = m

    # ---- finalize: padded concat([avg, max]), KxK conv, sigmoid, store ----
    @pl.when(ct == n_ct - 1)
    def _():
        # Collapse the G partial sublane rows (one tiny cross-sublane reduce
        # per batch element) -> (1, H*W) lane-major maps.
        avg2d = jnp.sum(s, axis=0, keepdims=True) * (1.0 / C)   # mean over C
        max2d = jnp.max(m, axis=0, keepdims=True)

        # Zero once (border stays zero), then scatter the flattened maps into
        # the (H, W) interior row by row.
        pad_ref[...] = jnp.zeros(pad_ref.shape, jnp.float32)
        for h in range(H):
            lo, hi = h * W, (h + 1) * W
            pad_ref[0, PAD + h:PAD + h + 1, PAD:PAD + W] = avg2d[:, lo:hi]
            pad_ref[1, PAD + h:PAD + h + 1, PAD:PAD + W] = max2d[:, lo:hi]

        # 2-in / 1-out KxK conv, stride 1, zero padding, no bias.
        # 4 independent partial accumulators restore VALU ILP.
        n_acc = 4
        accs = [jnp.zeros((H, W), jnp.float32) for _ in range(n_acc)]
        t = 0
        for ic in range(2):
            for kh in range(K):
                for kw in range(K):
                    w_val = w_ref[ic * K * K + kh * K + kw]
                    accs[t % n_acc] = (
                        accs[t % n_acc]
                        + pad_ref[ic, kh:kh + H, kw:kw + W] * w_val)
                    t += 1
        conv = (accs[0] + accs[1]) + (accs[2] + accs[3])
        o_ref[0, 0] = jax.nn.sigmoid(conv).astype(o_ref.dtype)


def spatial_attention(x, weight, kernel_size=7):
    """x: (B, C, H, W); weight: (1, 2, K, K) f32 -> (B, 1, H, W)."""
    assert kernel_size in (3, 7), "kernel size must be 3 or 7"
    B, C, H, W = x.shape
    K = kernel_size
    PAD = 3 if K == 7 else 1
    HW = H * W

    w_flat = weight.reshape(-1).astype(jnp.float32)   # (2*K*K,) scalars, SMEM
    x_flat = x.reshape(B, C, HW)                      # free (contiguous dims)

    # Size the channel tile from this generation's VMEM (v7x: 64 MiB).
    try:
        vmem_cap = pltpu.get_tpu_info().vmem_capacity_bytes
    except Exception:
        vmem_cap = 64 * 1024 * 1024    # conservative fallback (v7x-sized)

    hw_lanes = _round_up(HW, 128)                     # lane-padded row bytes/4
    block_budget = max(2 * 1024 * 1024, vmem_cap // 8)
    c_tile = _pick_c_tile(C, hw_lanes, block_budget)
    n_ct = C // c_tile

    # Sublane group height (<=8) and groups per fused-pass step (bounded by
    # ~64 KiB of live vregs per step).
    G = _largest_divisor_leq(c_tile, 8)
    n_groups = c_tile // G
    gps_cap = max(1, min(8, (64 * 1024) // max(1, G * hw_lanes * 4)))
    GPS = _largest_divisor_leq(n_groups, gps_cap)
    n_steps = n_groups // GPS

    pad_h, pad_w = H + 2 * PAD, W + 2 * PAD
    blk_bytes = _round_up(c_tile, 8) * hw_lanes * 4            # input block
    out_blk_bytes = _round_up(H, 8) * _round_up(W, 128) * 4    # output block
    scr_bytes = (2 * 8 * hw_lanes * 4                          # sum/max scratch
                 + 2 * _round_up(pad_h, 8) * _round_up(pad_w, 128) * 4)
    need = (2 * blk_bytes          # double-buffered input
            + 2 * out_blk_bytes    # double-buffered output
            + scr_bytes
            + 2 * 1024 * 1024)     # headroom
    vmem_limit = int(min(max(need, 32 * 1024 * 1024),
                         vmem_cap - 16 * 1024 * 1024))

    kernel = functools.partial(
        _spatial_attention_kernel,
        K=K, PAD=PAD, C=C, G=G, GPS=GPS, N_STEPS=n_steps, H=H, W=W)

    return pl.pallas_call(
        kernel,
        out_shape=jax.ShapeDtypeStruct((B, 1, H, W), x.dtype),
        grid_spec=pltpu.PrefetchScalarGridSpec(
            num_scalar_prefetch=0,
            grid=(B, n_ct),                                 # reduction axis last
            in_specs=[
                pl.BlockSpec(memory_space=pltpu.MemorySpace.SMEM),   # weights
                pl.BlockSpec((1, c_tile, HW), lambda b, ct: (b, ct, 0)),
            ],
            out_specs=pl.BlockSpec((1, 1, H, W), lambda b, ct: (b, 0, 0, 0)),
            scratch_shapes=[
                pltpu.VMEM((G, HW), jnp.float32),           # running sum rows
                pltpu.VMEM((G, HW), jnp.float32),           # running max rows
                pltpu.VMEM((2, pad_h, pad_w), jnp.float32), # padded concat
            ],
        ),
        compiler_params=pltpu.CompilerParams(
            dimension_semantics=("parallel", "arbitrary"),
            vmem_limit_bytes=vmem_limit,
        ),
    )(w_flat, x_flat)


def _reference(x, weight, kernel_size=7):
    PAD = 3 if kernel_size == 7 else 1
    avg_out = jnp.mean(x, axis=1, keepdims=True)
    max_out = jnp.max(x, axis=1, keepdims=True)
    cat = jnp.concatenate([avg_out, max_out], axis=1)
    y = lax.conv_general_dilated(
        cat, weight, window_strides=(1, 1),
        padding=[(PAD, PAD), (PAD, PAD)],
        dimension_numbers=("NCHW", "OIHW", "NCHW"))
    return jax.nn.sigmoid(y)


if __name__ == "__main__":
    key = jax.random.PRNGKey(0)
    kx, kw = jax.random.split(key)

    B, C, H, W = 2, 4, 16, 16
    K = 7

    x = jax.random.normal(kx, (B, C, H, W), dtype=jnp.float32)
    # Deterministic conv weight (matches nn.Conv2d(2, 1, 7, bias=False) shape).
    fan_in = 2 * K * K
    weight = jax.random.uniform(
        kw, (1, 2, K, K), dtype=jnp.float32,
        minval=-(fan_in ** -0.5), maxval=(fan_in ** -0.5))

    out = spatial_attention(x, weight, kernel_size=K)
    out = jax.block_until_ready(out)

    ref = _reference(x, weight, kernel_size=K)
    assert out.shape == (B, 1, H, W)
    assert jnp.allclose(out, ref, atol=1e-5, rtol=1e-5), "mismatch vs reference"

    print("KERNEL_OK")
</pallas_src>

<mosaic_0001>
module attributes {stable_mosaic.version = 11 : i64} {
  func.func @_spatial_attention_kernel(%arg0: i32, %arg1: i32, %arg2: memref<98xf32, #tpu.memory_space<smem>>, %arg3: memref<1x4x256xf32, #tpu.memory_space<vmem>>, %arg4: memref<1x1x16x16xf32, #tpu.memory_space<vmem>>, %arg5: memref<4x256xf32, #tpu.memory_space<vmem>>, %arg6: memref<4x256xf32, #tpu.memory_space<vmem>>, %arg7: memref<2x22x22xf32, #tpu.memory_space<vmem>>) attributes {dimension_semantics = [#tpu.dimension_semantics<parallel>, #tpu.dimension_semantics<arbitrary>], iteration_bounds = array<i64: 2, 1>, scalar_prefetch = 0 : i64, scratch_operands = 3 : i64, tpu.core_type = #tpu.core_type<tc>, window_params = [{transform_indices = @transform_0, window_bounds = array<i64: 98>}, {transform_indices = @transform_1, window_bounds = array<i64: 1, 4, 256>}, {transform_indices = @transform_2, window_bounds = array<i64: 1, 1, 16, 16>}]} {
    %c0_i32 = arith.constant 0 : i32
    %0 = arith.cmpi eq, %arg1, %c0_i32 : i32
    %1 = arith.extui %0 : i1 to i32
    %c0_i32_0 = arith.constant 0 : i32
    %2 = arith.cmpi ne, %1, %c0_i32_0 : i32
    scf.if %2 {
      %cst = arith.constant 0.000000e+00 : f32
      %18 = vector.broadcast %cst : f32 to vector<4x256xf32>
      %c0_14 = arith.constant 0 : index
      %c0_15 = arith.constant 0 : index
      %19 = vector.load %arg5[%c0_14, %c0_15] : memref<4x256xf32, #tpu.memory_space<vmem>>, vector<4x256xf32>
      tpu.vector_store %arg5[%c0_14, %c0_15], %18 {strides = array<i32>} : memref<4x256xf32, #tpu.memory_space<vmem>>, vector<4x256xf32>,
      %cst_16 = arith.constant 0xFF800000 : f32
      %20 = vector.broadcast %cst_16 : f32 to vector<4x256xf32>
      %c0_17 = arith.constant 0 : index
      %c0_18 = arith.constant 0 : index
      %21 = vector.load %arg6[%c0_17, %c0_18] : memref<4x256xf32, #tpu.memory_space<vmem>>, vector<4x256xf32>
      tpu.vector_store %arg6[%c0_17, %c0_18], %20 {strides = array<i32>} : memref<4x256xf32, #tpu.memory_space<vmem>>, vector<4x256xf32>,
    } else {
    }
    %c0 = arith.constant 0 : index
    %c0_1 = arith.constant 0 : index
    %3 = vector.load %arg5[%c0, %c0_1] : memref<4x256xf32, #tpu.memory_space<vmem>>, vector<4x256xf32>
    %c0_2 = arith.constant 0 : index
    %c0_3 = arith.constant 0 : index
    %4 = vector.load %arg6[%c0_2, %c0_3] : memref<4x256xf32, #tpu.memory_space<vmem>>, vector<4x256xf32>
    %c0_i32_4 = arith.constant 0 : i32
    %c4_i32 = arith.constant 4 : i32
    %5 = arith.muli %c0_i32_4, %c4_i32 : i32
    %6 = tpu.assume_multiple %5, 4 : i32
    %c0_i32_5 = arith.constant 0 : i32
    %7 = arith.addi %6, %c0_i32_5 : i32
    %c0_6 = arith.constant 0 : index
    %8 = arith.index_cast %7 : i32 to index
    %c0_7 = arith.constant 0 : index
    %9 = vector.load %arg3[%c0_6, %8, %c0_7] : memref<1x4x256xf32, #tpu.memory_space<vmem>>, vector<1x4x256xf32>
    %10 = vector.shape_cast %9 : vector<1x4x256xf32> to vector<4x256xf32>
    %11 = arith.addf %3, %10 : vector<4x256xf32>
    %12 = arith.maximumf %4, %10 : vector<4x256xf32>
    %c1_i32 = arith.constant 1 : i32
    %c0_8 = arith.constant 0 : index
    %c0_9 = arith.constant 0 : index
    %13 = vector.load %arg5[%c0_8, %c0_9] : memref<4x256xf32, #tpu.memory_space<vmem>>, vector<4x256xf32>
    tpu.vector_store %arg5[%c0_8, %c0_9], %11 {strides = array<i32>} : memref<4x256xf32, #tpu.memory_space<vmem>>, vector<4x256xf32>,
    %c0_10 = arith.constant 0 : index
    %c0_11 = arith.constant 0 : index
    %14 = vector.load %arg6[%c0_10, %c0_11] : memref<4x256xf32, #tpu.memory_space<vmem>>, vector<4x256xf32>
    tpu.vector_store %arg6[%c0_10, %c0_11], %12 {strides = array<i32>} : memref<4x256xf32, #tpu.memory_space<vmem>>, vector<4x256xf32>,
    %c0_i32_12 = arith.constant 0 : i32
    %15 = arith.cmpi eq, %arg1, %c0_i32_12 : i32
    %16 = arith.extui %15 : i1 to i32
    %c0_i32_13 = arith.constant 0 : i32
    %17 = arith.cmpi ne, %16, %c0_i32_13 : i32
    scf.if %17 {
      %cst = arith.constant dense<0.000000e+00> : vector<256xf32>
      %18 = vector.multi_reduction <add>, %11, %cst [0] : vector<4x256xf32> to vector<256xf32>
      %19 = vector.shape_cast %18 : vector<256xf32> to vector<1x256xf32>
      %cst_14 = arith.constant 2.500000e-01 : f32
      %20 = vector.broadcast %cst_14 : f32 to vector<1x256xf32>
      %21 = arith.mulf %19, %20 : vector<1x256xf32>
      %cst_15 = arith.constant dense<0xFF800000> : vector<256xf32>
      %22 = vector.multi_reduction <maximumf>, %12, %cst_15 [0] : vector<4x256xf32> to vector<256xf32>
      %23 = vector.shape_cast %22 : vector<256xf32> to vector<1x256xf32>
      %cst_16 = arith.constant 0.000000e+00 : f32
      %24 = vector.broadcast %cst_16 : f32 to vector<2x22x22xf32>
      %c0_17 = arith.constant 0 : index
      %c0_18 = arith.constant 0 : index
      %c0_19 = arith.constant 0 : index
      %25 = vector.load %arg7[%c0_17, %c0_18, %c0_19] : memref<2x22x22xf32, #tpu.memory_space<vmem>>, vector<2x22x22xf32>
      tpu.vector_store %arg7[%c0_17, %c0_18, %c0_19], %24 {strides = array<i32>} : memref<2x22x22xf32, #tpu.memory_space<vmem>>, vector<2x22x22xf32>,
      %26 = vector.extract_strided_slice %21 {offsets = [0, 0], sizes = [1, 16], strides = [1, 1]} : vector<1x256xf32> to vector<1x16xf32>
      %c0_20 = arith.constant 0 : index
      %c3 = arith.constant 3 : index
      %c3_21 = arith.constant 3 : index
      %27 = vector.load %arg7[%c0_20, %c3, %c3_21] : memref<2x22x22xf32, #tpu.memory_space<vmem>>, vector<1x1x16xf32>
      %28 = vector.shape_cast %27 : vector<1x1x16xf32> to vector<1x16xf32>
      %29 = vector.shape_cast %26 : vector<1x16xf32> to vector<1x1x16xf32>
      tpu.vector_store %arg7[%c0_20, %c3, %c3_21], %29 {strides = array<i32>} : memref<2x22x22xf32, #tpu.memory_space<vmem>>, vector<1x1x16xf32>,
      %30 = vector.extract_strided_slice %23 {offsets = [0, 0], sizes = [1, 16], strides = [1, 1]} : vector<1x256xf32> to vector<1x16xf32>
      %c1 = arith.constant 1 : index
      %c3_22 = arith.constant 3 : index
      %c3_23 = arith.constant 3 : index
      %31 = vector.load %arg7[%c1, %c3_22, %c3_23] : memref<2x22x22xf32, #tpu.memory_space<vmem>>, vector<1x1x16xf32>
      %32 = vector.shape_cast %31 : vector<1x1x16xf32> to vector<1x16xf32>
      %33 = vector.shape_cast %30 : vector<1x16xf32> to vector<1x1x16xf32>
      tpu.vector_store %arg7[%c1, %c3_22, %c3_23], %33 {strides = array<i32>} : memref<2x22x22xf32, #tpu.memory_space<vmem>>, vector<1x1x16xf32>,
      %34 = vector.extract_strided_slice %21 {offsets = [0, 16], sizes = [1, 16], strides = [1, 1]} : vector<1x256xf32> to vector<1x16xf32>
      %c0_24 = arith.constant 0 : index
      %c4 = arith.constant 4 : index
      %c3_25 = arith.constant 3 : index
      %35 = vector.load %arg7[%c0_24, %c4, %c3_25] : memref<2x22x22xf32, #tpu.memory_space<vmem>>, vector<1x1x16xf32>
      %36 = vector.shape_cast %35 : vector<1x1x16xf32> to vector<1x16xf32>
      %37 = vector.shape_cast %34 : vector<1x16xf32> to vector<1x1x16xf32>
      tpu.vector_store %arg7[%c0_24, %c4, %c3_25], %37 {strides = array<i32>} : memref<2x22x22xf32, #tpu.memory_space<vmem>>, vector<1x1x16xf32>,
      %38 = vector.extract_strided_slice %23 {offsets = [0, 16], sizes = [1, 16], strides = [1, 1]} : vector<1x256xf32> to vector<1x16xf32>
      %c1_26 = arith.constant 1 : index
      %c4_27 = arith.constant 4 : index
      %c3_28 = arith.constant 3 : index
      %39 = vector.load %arg7[%c1_26, %c4_27, %c3_28] : memref<2x22x22xf32, #tpu.memory_space<vmem>>, vector<1x1x16xf32>
      %40 = vector.shape_cast %39 : vector<1x1x16xf32> to vector<1x16xf32>
      %41 = vector.shape_cast %38 : vector<1x16xf32> to vector<1x1x16xf32>
      tpu.vector_store %arg7[%c1_26, %c4_27, %c3_28], %41 {strides = array<i32>} : memref<2x22x22xf32, #tpu.memory_space<vmem>>, vector<1x1x16xf32>,
      %42 = vector.extract_strided_slice %21 {offsets = [0, 32], sizes = [1, 16], strides = [1, 1]} : vector<1x256xf32> to vector<1x16xf32>
      %c0_29 = arith.constant 0 : index
      %c5 = arith.constant 5 : index
      %c3_30 = arith.constant 3 : index
      %43 = vector.load %arg7[%c0_29, %c5, %c3_30] : memref<2x22x22xf32, #tpu.memory_space<vmem>>, vector<1x1x16xf32>
      %44 = vector.shape_cast %43 : vector<1x1x16xf32> to vector<1x16xf32>
      %45 = vector.shape_cast %42 : vector<1x16xf32> to vector<1x1x16xf32>
      tpu.vector_store %arg7[%c0_29, %c5, %c3_30], %45 {strides = array<i32>} : memref<2x22x22xf32, #tpu.memory_space<vmem>>, vector<1x1x16xf32>,
      %46 = vector.extract_strided_slice %23 {offsets = [0, 32], sizes = [1, 16], strides = [1, 1]} : vector<1x256xf32> to vector<1x16xf32>
      %c1_31 = arith.constant 1 : index
      %c5_32 = arith.constant 5 : index
      %c3_33 = arith.constant 3 : index
      %47 = vector.load %arg7[%c1_31, %c5_32, %c3_33] : memref<2x22x22xf32, #tpu.memory_space<vmem>>, vector<1x1x16xf32>
      %48 = vector.shape_cast %47 : vector<1x1x16xf32> to vector<1x16xf32>
      %49 = vector.shape_cast %46 : vector<1x16xf32> to vector<1x1x16xf32>
      tpu.vector_store %arg7[%c1_31, %c5_32, %c3_33], %49 {strides = array<i32>} : memref<2x22x22xf32, #tpu.memory_space<vmem>>, vector<1x1x16xf32>,
      %50 = vector.extract_strided_slice %21 {offsets = [0, 48], sizes = [1, 16], strides = [1, 1]} : vector<1x256xf32> to vector<1x16xf32>
      %c0_34 = arith.constant 0 : index
      %c6 = arith.constant 6 : index
      %c3_35 = arith.constant 3 : index
      %51 = vector.load %arg7[%c0_34, %c6, %c3_35] : memref<2x22x22xf32, #tpu.memory_space<vmem>>, vector<1x1x16xf32>
      %52 = vector.shape_cast %51 : vector<1x1x16xf32> to vector<1x16xf32>
      %53 = vector.shape_cast %50 : vector<1x16xf32> to vector<1x1x16xf32>
      tpu.vector_store %arg7[%c0_34, %c6, %c3_35], %53 {strides = array<i32>} : memref<2x22x22xf32, #tpu.memory_space<vmem>>, vector<1x1x16xf32>,
      %54 = vector.extract_strided_slice %23 {offsets = [0, 48], sizes = [1, 16], strides = [1, 1]} : vector<1x256xf32> to vector<1x16xf32>
      %c1_36 = arith.constant 1 : index
      %c6_37 = arith.constant 6 : index
      %c3_38 = arith.constant 3 : index
      %55 = vector.load %arg7[%c1_36, %c6_37, %c3_38] : memref<2x22x22xf32, #tpu.memory_space<vmem>>, vector<1x1x16xf32>
      %56 = vector.shape_cast %55 : vector<1x1x16xf32> to vector<1x16xf32>
      %57 = vector.shape_cast %54 : vector<1x16xf32> to vector<1x1x16xf32>
      tpu.vector_store %arg7[%c1_36, %c6_37, %c3_38], %57 {strides = array<i32>} : memref<2x22x22xf32, #tpu.memory_space<vmem>>, vector<1x1x16xf32>,
      %58 = vector.extract_strided_slice %21 {offsets = [0, 64], sizes = [1, 16], strides = [1, 1]} : vector<1x256xf32> to vector<1x16xf32>
      %c0_39 = arith.constant 0 : index
      %c7 = arith.constant 7 : index
      %c3_40 = arith.constant 3 : index
      %59 = vector.load %arg7[%c0_39, %c7, %c3_40] : memref<2x22x22xf32, #tpu.memory_space<vmem>>, vector<1x1x16xf32>
      %60 = vector.shape_cast %59 : vector<1x1x16xf32> to vector<1x16xf32>
      %61 = vector.shape_cast %58 : vector<1x16xf32> to vector<1x1x16xf32>
      tpu.vector_store %arg7[%c0_39, %c7, %c3_40], %61 {strides = array<i32>} : memref<2x22x22xf32, #tpu.memory_space<vmem>>, vector<1x1x16xf32>,
      %62 = vector.extract_strided_slice %23 {offsets = [0, 64], sizes = [1, 16], strides = [1, 1]} : vector<1x256xf32> to vector<1x16xf32>
      %c1_41 = arith.constant 1 : index
      %c7_42 = arith.constant 7 : index
      %c3_43 = arith.constant 3 : index
      %63 = vector.load %arg7[%c1_41, %c7_42, %c3_43] : memref<2x22x22xf32, #tpu.memory_space<vmem>>, vector<1x1x16xf32>
      %64 = vector.shape_cast %63 : vector<1x1x16xf32> to vector<1x16xf32>
      %65 = vector.shape_cast %62 : vector<1x16xf32> to vector<1x1x16xf32>
      tpu.vector_store %arg7[%c1_41, %c7_42, %c3_43], %65 {strides = array<i32>} : memref<2x22x22xf32, #tpu.memory_space<vmem>>, vector<1x1x16xf32>,
      %66 = vector.extract_strided_slice %21 {offsets = [0, 80], sizes = [1, 16], strides = [1, 1]} : vector<1x256xf32> to vector<1x16xf32>
      %c0_44 = arith.constant 0 : index
      %c8 = arith.constant 8 : index
      %c3_45 = arith.constant 3 : index
      %67 = vector.load %arg7[%c0_44, %c8, %c3_45] : memref<2x22x22xf32, #tpu.memory_space<vmem>>, vector<1x1x16xf32>
      %68 = vector.shape_cast %67 : vector<1x1x16xf32> to vector<1x16xf32>
      %69 = vector.shape_cast %66 : vector<1x16xf32> to vector<1x1x16xf32>
      tpu.vector_store %arg7[%c0_44, %c8, %c3_45], %69 {strides = array<i32>} : memref<2x22x22xf32, #tpu.memory_space<vmem>>, vector<1x1x16xf32>,
      %70 = vector.extract_strided_slice %23 {offsets = [0, 80], sizes = [1, 16], strides = [1, 1]} : vector<1x256xf32> to vector<1x16xf32>
      %c1_46 = arith.constant 1 : index
      %c8_47 = arith.constant 8 : index
      %c3_48 = arith.constant 3 : index
      %71 = vector.load %arg7[%c1_46, %c8_47, %c3_48] : memref<2x22x22xf32, #tpu.memory_space<vmem>>, vector<1x1x16xf32>
      %72 = vector.shape_cast %71 : vector<1x1x16xf32> to vector<1x16xf32>
      %73 = vector.shape_cast %70 : vector<1x16xf32> to vector<1x1x16xf32>
      tpu.vector_store %arg7[%c1_46, %c8_47, %c3_48], %73 {strides = array<i32>} : memref<2x22x22xf32, #tpu.memory_space<vmem>>, vector<1x1x16xf32>,
      %74 = vector.extract_strided_slice %21 {offsets = [0, 96], sizes = [1, 16], strides = [1, 1]} : vector<1x256xf32> to vector<1x16xf32>
      %c0_49 = arith.constant 0 : index
      %c9 = arith.constant 9 : index
      %c3_50 = arith.constant 3 : index
      %75 = vector.load %arg7[%c0_49, %c9, %c3_50] : memref<2x22x22xf32, #tpu.memory_space<vmem>>, vector<1x1x16xf32>
      %76 = vector.shape_cast %75 : vector<1x1x16xf32> to vector<1x16xf32>
      %77 = vector.shape_cast %74 : vector<1x16xf32> to vector<1x1x16xf32>
      tpu.vector_store %arg7[%c0_49, %c9, %c3_50], %77 {strides = array<i32>} : memref<2x22x22xf32, #tpu.memory_space<vmem>>, vector<1x1x16xf32>,
      %78 = vector.extract_strided_slice %23 {offsets = [0, 96], sizes = [1, 16], strides = [1, 1]} : vector<1x256xf32> to vector<1x16xf32>
      %c1_51 = arith.constant 1 : index
      %c9_52 = arith.constant 9 : index
      %c3_53 = arith.constant 3 : index
      %79 = vector.load %arg7[%c1_51, %c9_52, %c3_53] : memref<2x22x22xf32, #tpu.memory_space<vmem>>, vector<1x1x16xf32>
      %80 = vector.shape_cast %79 : vector<1x1x16xf32> to vector<1x16xf32>
      %81 = vector.shape_cast %78 : vector<1x16xf32> to vector<1x1x16xf32>
      tpu.vector_store %arg7[%c1_51, %c9_52, %c3_53], %81 {strides = array<i32>} : memref<2x22x22xf32, #tpu.memory_space<vmem>>, vector<1x1x16xf32>,
      %82 = vector.extract_strided_slice %21 {offsets = [0, 112], sizes = [1, 16], strides = [1, 1]} : vector<1x256xf32> to vector<1x16xf32>
      %c0_54 = arith.constant 0 : index
      %c10 = arith.constant 10 : index
      %c3_55 = arith.constant 3 : index
      %83 = vector.load %arg7[%c0_54, %c10, %c3_55] : memref<2x22x22xf32, #tpu.memory_space<vmem>>, vector<1x1x16xf32>
      %84 = vector.shape_cast %83 : vector<1x1x16xf32> to vector<1x16xf32>
      %85 = vector.shape_cast %82 : vector<1x16xf32> to vector<1x1x16xf32>
      tpu.vector_store %arg7[%c0_54, %c10, %c3_55], %85 {strides = array<i32>} : memref<2x22x22xf32, #tpu.memory_space<vmem>>, vector<1x1x16xf32>,
      %86 = vector.extract_strided_slice %23 {offsets = [0, 112], sizes = [1, 16], strides = [1, 1]} : vector<1x256xf32> to vector<1x16xf32>
      %c1_56 = arith.constant 1 : index
      %c10_57 = arith.constant 10 : index
      %c3_58 = arith.constant 3 : index
      %87 = vector.load %arg7[%c1_56, %c10_57, %c3_58] : memref<2x22x22xf32, #tpu.memory_space<vmem>>, vector<1x1x16xf32>
      %88 = vector.shape_cast %87 : vector<1x1x16xf32> to vector<1x16xf32>
      %89 = vector.shape_cast %86 : vector<1x16xf32> to vector<1x1x16xf32>
      tpu.vector_store %arg7[%c1_56, %c10_57, %c3_58], %89 {strides = array<i32>} : memref<2x22x22xf32, #tpu.memory_space<vmem>>, vector<1x1x16xf32>,
      %90 = vector.extract_strided_slice %21 {offsets = [0, 128], sizes = [1, 16], strides = [1, 1]} : vector<1x256xf32> to vector<1x16xf32>
      %c0_59 = arith.constant 0 : index
      %c11 = arith.constant 11 : index
      %c3_60 = arith.constant 3 : index
      %91 = vector.load %arg7[%c0_59, %c11, %c3_60] : memref<2x22x22xf32, #tpu.memory_space<vmem>>, vector<1x1x16xf32>
      %92 = vector.shape_cast %91 : vector<1x1x16xf32> to vector<1x16xf32>
      %93 = vector.shape_cast %90 : vector<1x16xf32> to vector<1x1x16xf32>
      tpu.vector_store %arg7[%c0_59, %c11, %c3_60], %93 {strides = array<i32>} : memref<2x22x22xf32, #tpu.memory_space<vmem>>, vector<1x1x16xf32>,
      %94 = vector.extract_strided_slice %23 {offsets = [0, 128], sizes = [1, 16], strides = [1, 1]} : vector<1x256xf32> to vector<1x16xf32>
      %c1_61 = arith.constant 1 : index
      %c11_62 = arith.constant 11 : index
      %c3_63 = arith.constant 3 : index
      %95 = vector.load %arg7[%c1_61, %c11_62, %c3_63] : memref<2x22x22xf32, #tpu.memory_space<vmem>>, vector<1x1x16xf32>
      %96 = vector.shape_cast %95 : vector<1x1x16xf32> to vector<1x16xf32>
      %97 = vector.shape_cast %94 : vector<1x16xf32> to vector<1x1x16xf32>
      tpu.vector_store %arg7[%c1_61, %c11_62, %c3_63], %97 {strides = array<i32>} : memref<2x22x22xf32, #tpu.memory_space<vmem>>, vector<1x1x16xf32>,
      %98 = vector.extract_strided_slice %21 {offsets = [0, 144], sizes = [1, 16], strides = [1, 1]} : vector<1x256xf32> to vector<1x16xf32>
      %c0_64 = arith.constant 0 : index
      %c12 = arith.constant 12 : index
      %c3_65 = arith.constant 3 : index
      %99 = vector.load %arg7[%c0_64, %c12, %c3_65] : memref<2x22x22xf32, #tpu.memory_space<vmem>>, vector<1x1x16xf32>
      %100 = vector.shape_cast %99 : vector<1x1x16xf32> to vector<1x16xf32>
      %101 = vector.shape_cast %98 : vector<1x16xf32> to vector<1x1x16xf32>
      tpu.vector_store %arg7[%c0_64, %c12, %c3_65], %101 {strides = array<i32>} : memref<2x22x22xf32, #tpu.memory_space<vmem>>, vector<1x1x16xf32>,
      %102 = vector.extract_strided_slice %23 {offsets = [0, 144], sizes = [1, 16], strides = [1, 1]} : vector<1x256xf32> to vector<1x16xf32>
      %c1_66 = arith.constant 1 : index
      %c12_67 = arith.constant 12 : index
      %c3_68 = arith.constant 3 : index
      %103 = vector.load %arg7[%c1_66, %c12_67, %c3_68] : memref<2x22x22xf32, #tpu.memory_space<vmem>>, vector<1x1x16xf32>
      %104 = vector.shape_cast %103 : vector<1x1x16xf32> to vector<1x16xf32>
      %105 = vector.shape_cast %102 : vector<1x16xf32> to vector<1x1x16xf32>
      tpu.vector_store %arg7[%c1_66, %c12_67, %c3_68], %105 {strides = array<i32>} : memref<2x22x22xf32, #tpu.memory_space<vmem>>, vector<1x1x16xf32>,
      %106 = vector.extract_strided_slice %21 {offsets = [0, 160], sizes = [1, 16], strides = [1, 1]} : vector<1x256xf32> to vector<1x16xf32>
      %c0_69 = arith.constant 0 : index
      %c13 = arith.constant 13 : index
      %c3_70 = arith.constant 3 : index
      %107 = vector.load %arg7[%c0_69, %c13, %c3_70] : memref<2x22x22xf32, #tpu.memory_space<vmem>>, vector<1x1x16xf32>
      %108 = vector.shape_cast %107 : vector<1x1x16xf32> to vector<1x16xf32>
      %109 = vector.shape_cast %106 : vector<1x16xf32> to vector<1x1x16xf32>
      tpu.vector_store %arg7[%c0_69, %c13, %c3_70], %109 {strides = array<i32>} : memref<2x22x22xf32, #tpu.memory_space<vmem>>, vector<1x1x16xf32>,
      %110 = vector.extract_strided_slice %23 {offsets = [0, 160], sizes = [1, 16], strides = [1, 1]} : vector<1x256xf32> to vector<1x16xf32>
      %c1_71 = arith.constant 1 : index
      %c13_72 = arith.constant 13 : index
      %c3_73 = arith.constant 3 : index
      %111 = vector.load %arg7[%c1_71, %c13_72, %c3_73] : memref<2x22x22xf32, #tpu.memory_space<vmem>>, vector<1x1x16xf32>
      %112 = vector.shape_cast %111 : vector<1x1x16xf32> to vector<1x16xf32>
      %113 = vector.shape_cast %110 : vector<1x16xf32> to vector<1x1x16xf32>
      tpu.vector_store %arg7[%c1_71, %c13_72, %c3_73], %113 {strides = array<i32>} : memref<2x22x22xf32, #tpu.memory_space<vmem>>, vector<1x1x16xf32>,
      %114 = vector.extract_strided_slice %21 {offsets = [0, 176], sizes = [1, 16], strides = [1, 1]} : vector<1x256xf32> to vector<1x16xf32>
      %c0_74 = arith.constant 0 : index
      %c14 = arith.constant 14 : index
      %c3_75 = arith.constant 3 : index
      %115 = vector.load %arg7[%c0_74, %c14, %c3_75] : memref<2x22x22xf32, #tpu.memory_space<vmem>>, vector<1x1x16xf32>
      %116 = vector.shape_cast %115 : vector<1x1x16xf32> to vector<1x16xf32>
      %117 = vector.shape_cast %114 : vector<1x16xf32> to vector<1x1x16xf32>
      tpu.vector_store %arg7[%c0_74, %c14, %c3_75], %117 {strides = array<i32>} : memref<2x22x22xf32, #tpu.memory_space<vmem>>, vector<1x1x16xf32>,
      %118 = vector.extract_strided_slice %23 {offsets = [0, 176], sizes = [1, 16], strides = [1, 1]} : vector<1x256xf32> to vector<1x16xf32>
      %c1_76 = arith.constant 1 : index
      %c14_77 = arith.constant 14 : index
      %c3_78 = arith.constant 3 : index
      %119 = vector.load %arg7[%c1_76, %c14_77, %c3_78] : memref<2x22x22xf32, #tpu.memory_space<vmem>>, vector<1x1x16xf32>
      %120 = vector.shape_cast %119 : vector<1x1x16xf32> to vector<1x16xf32>
      %121 = vector.shape_cast %118 : vector<1x16xf32> to vector<1x1x16xf32>
      tpu.vector_store %arg7[%c1_76, %c14_77, %c3_78], %121 {strides = array<i32>} : memref<2x22x22xf32, #tpu.memory_space<vmem>>, vector<1x1x16xf32>,
      %122 = vector.extract_strided_slice %21 {offsets = [0, 192], sizes = [1, 16], strides = [1, 1]} : vector<1x256xf32> to vector<1x16xf32>
      %c0_79 = arith.constant 0 : index
      %c15 = arith.constant 15 : index
      %c3_80 = arith.constant 3 : index
      %123 = vector.load %arg7[%c0_79, %c15, %c3_80] : memref<2x22x22xf32, #tpu.memory_space<vmem>>, vector<1x1x16xf32>
      %124 = vector.shape_cast %123 : vector<1x1x16xf32> to vector<1x16xf32>
      %125 = vector.shape_cast %122 : vector<1x16xf32> to vector<1x1x16xf32>
      tpu.vector_store %arg7[%c0_79, %c15, %c3_80], %125 {strides = array<i32>} : memref<2x22x22xf32, #tpu.memory_space<vmem>>, vector<1x1x16xf32>,
      %126 = vector.extract_strided_slice %23 {offsets = [0, 192], sizes = [1, 16], strides = [1, 1]} : vector<1x256xf32> to vector<1x16xf32>
      %c1_81 = arith.constant 1 : index
      %c15_82 = arith.constant 15 : index
      %c3_83 = arith.constant 3 : index
      %127 = vector.load %arg7[%c1_81, %c15_82, %c3_83] : memref<2x22x22xf32, #tpu.memory_space<vmem>>, vector<1x1x16xf32>
      %128 = vector.shape_cast %127 : vector<1x1x16xf32> to vector<1x16xf32>
      %129 = vector.shape_cast %126 : vector<1x16xf32> to vector<1x1x16xf32>
      tpu.vector_store %arg7[%c1_81, %c15_82, %c3_83], %129 {strides = array<i32>} : memref<2x22x22xf32, #tpu.memory_space<vmem>>, vector<1x1x16xf32>,
      %130 = vector.extract_strided_slice %21 {offsets = [0, 208], sizes = [1, 16], strides = [1, 1]} : vector<1x256xf32> to vector<1x16xf32>
      %c0_84 = arith.constant 0 : index
      %c16 = arith.constant 16 : index
      %c3_85 = arith.constant 3 : index
      %131 = vector.load %arg7[%c0_84, %c16, %c3_85] : memref<2x22x22xf32, #tpu.memory_space<vmem>>, vector<1x1x16xf32>
      %132 = vector.shape_cast %131 : vector<1x1x16xf32> to vector<1x16xf32>
      %133 = vector.shape_cast %130 : vector<1x16xf32> to vector<1x1x16xf32>
      tpu.vector_store %arg7[%c0_84, %c16, %c3_85], %133 {strides = array<i32>} : memref<2x22x22xf32, #tpu.memory_space<vmem>>, vector<1x1x16xf32>,
      %134 = vector.extract_strided_slice %23 {offsets = [0, 208], sizes = [1, 16], strides = [1, 1]} : vector<1x256xf32> to vector<1x16xf32>
      %c1_86 = arith.constant 1 : index
      %c16_87 = arith.constant 16 : index
      %c3_88 = arith.constant 3 : index
      %135 = vector.load %arg7[%c1_86, %c16_87, %c3_88] : memref<2x22x22xf32, #tpu.memory_space<vmem>>, vector<1x1x16xf32>
      %136 = vector.shape_cast %135 : vector<1x1x16xf32> to vector<1x16xf32>
      %137 = vector.shape_cast %134 : vector<1x16xf32> to vector<1x1x16xf32>
      tpu.vector_store %arg7[%c1_86, %c16_87, %c3_88], %137 {strides = array<i32>} : memref<2x22x22xf32, #tpu.memory_space<vmem>>, vector<1x1x16xf32>,
      %138 = vector.extract_strided_slice %21 {offsets = [0, 224], sizes = [1, 16], strides = [1, 1]} : vector<1x256xf32> to vector<1x16xf32>
      %c0_89 = arith.constant 0 : index
      %c17 = arith.constant 17 : index
      %c3_90 = arith.constant 3 : index
      %139 = vector.load %arg7[%c0_89, %c17, %c3_90] : memref<2x22x22xf32, #tpu.memory_space<vmem>>, vector<1x1x16xf32>
      %140 = vector.shape_cast %139 : vector<1x1x16xf32> to vector<1x16xf32>
      %141 = vector.shape_cast %138 : vector<1x16xf32> to vector<1x1x16xf32>
      tpu.vector_store %arg7[%c0_89, %c17, %c3_90], %141 {strides = array<i32>} : memref<2x22x22xf32, #tpu.memory_space<vmem>>, vector<1x1x16xf32>,
      %142 = vector.extract_strided_slice %23 {offsets = [0, 224], sizes = [1, 16], strides = [1, 1]} : vector<1x256xf32> to vector<1x16xf32>
      %c1_91 = arith.constant 1 : index
      %c17_92 = arith.constant 17 : index
      %c3_93 = arith.constant 3 : index
      %143 = vector.load %arg7[%c1_91, %c17_92, %c3_93] : memref<2x22x22xf32, #tpu.memory_space<vmem>>, vector<1x1x16xf32>
      %144 = vector.shape_cast %143 : vector<1x1x16xf32> to vector<1x16xf32>
      %145 = vector.shape_cast %142 : vector<1x16xf32> to vector<1x1x16xf32>
      tpu.vector_store %arg7[%c1_91, %c17_92, %c3_93], %145 {strides = array<i32>} : memref<2x22x22xf32, #tpu.memory_space<vmem>>, vector<1x1x16xf32>,
      %146 = vector.extract_strided_slice %21 {offsets = [0, 240], sizes = [1, 16], strides = [1, 1]} : vector<1x256xf32> to vector<1x16xf32>
      %c0_94 = arith.constant 0 : index
      %c18 = arith.constant 18 : index
      %c3_95 = arith.constant 3 : index
      %147 = vector.load %arg7[%c0_94, %c18, %c3_95] : memref<2x22x22xf32, #tpu.memory_space<vmem>>, vector<1x1x16xf32>
      %148 = vector.shape_cast %147 : vector<1x1x16xf32> to vector<1x16xf32>
      %149 = vector.shape_cast %146 : vector<1x16xf32> to vector<1x1x16xf32>
      tpu.vector_store %arg7[%c0_94, %c18, %c3_95], %149 {strides = array<i32>} : memref<2x22x22xf32, #tpu.memory_space<vmem>>, vector<1x1x16xf32>,
      %150 = vector.extract_strided_slice %23 {offsets = [0, 240], sizes = [1, 16], strides = [1, 1]} : vector<1x256xf32> to vector<1x16xf32>
      %c1_96 = arith.constant 1 : index
      %c18_97 = arith.constant 18 : index
      %c3_98 = arith.constant 3 : index
      %151 = vector.load %arg7[%c1_96, %c18_97, %c3_98] : memref<2x22x22xf32, #tpu.memory_space<vmem>>, vector<1x1x16xf32>
      %152 = vector.shape_cast %151 : vector<1x1x16xf32> to vector<1x16xf32>
      %153 = vector.shape_cast %150 : vector<1x16xf32> to vector<1x1x16xf32>
      tpu.vector_store %arg7[%c1_96, %c18_97, %c3_98], %153 {strides = array<i32>} : memref<2x22x22xf32, #tpu.memory_space<vmem>>, vector<1x1x16xf32>,
      %cst_99 = arith.constant 0.000000e+00 : f32
      %154 = vector.broadcast %cst_99 : f32 to vector<16x16xf32>
      %cst_100 = arith.constant 0.000000e+00 : f32
      %155 = vector.broadcast %cst_100 : f32 to vector<16x16xf32>
      %cst_101 = arith.constant 0.000000e+00 : f32
      %156 = vector.broadcast %cst_101 : f32 to vector<16x16xf32>
      %cst_102 = arith.constant 0.000000e+00 : f32
      %157 = vector.broadcast %cst_102 : f32 to vector<16x16xf32>
      %c0_103 = arith.constant 0 : index
      %158 = memref.load %arg2[%c0_103] : memref<98xf32, #tpu.memory_space<smem>>
      %c0_104 = arith.constant 0 : index
      %c0_105 = arith.constant 0 : index
      %c0_106 = arith.constant 0 : index
      %159 = vector.load %arg7[%c0_104, %c0_105, %c0_106] : memref<2x22x22xf32, #tpu.memory_space<vmem>>, vector<1x16x16xf32>
      %160 = vector.shape_cast %159 : vector<1x16x16xf32> to vector<16x16xf32>
      %161 = vector.broadcast %158 : f32 to vector<16x16xf32>
      %162 = arith.mulf %160, %161 : vector<16x16xf32>
      %163 = arith.addf %154, %162 : vector<16x16xf32>
      %c1_107 = arith.constant 1 : index
      %164 = memref.load %arg2[%c1_107] : memref<98xf32, #tpu.memory_space<smem>>
      %c0_108 = arith.constant 0 : index
      %c0_109 = arith.constant 0 : index
      %c1_110 = arith.constant 1 : index
      %165 = vector.load %arg7[%c0_108, %c0_109, %c1_110] : memref<2x22x22xf32, #tpu.memory_space<vmem>>, vector<1x16x16xf32>
      %166 = vector.shape_cast %165 : vector<1x16x16xf32> to vector<16x16xf32>
      %167 = vector.broadcast %164 : f32 to vector<16x16xf32>
      %168 = arith.mulf %166, %167 : vector<16x16xf32>
      %169 = arith.addf %155, %168 : vector<16x16xf32>
      %c2 = arith.constant 2 : index
      %170 = memref.load %arg2[%c2] : memref<98xf32, #tpu.memory_space<smem>>
      %c0_111 = arith.constant 0 : index
      %c0_112 = arith.constant 0 : index
      %c2_113 = arith.constant 2 : index
      %171 = vector.load %arg7[%c0_111, %c0_112, %c2_113] : memref<2x22x22xf32, #tpu.memory_space<vmem>>, vector<1x16x16xf32>
      %172 = vector.shape_cast %171 : vector<1x16x16xf32> to vector<16x16xf32>
      %173 = vector.broadcast %170 : f32 to vector<16x16xf32>
      %174 = arith.mulf %172, %173 : vector<16x16xf32>
      %175 = arith.addf %156, %174 : vector<16x16xf32>
      %c3_114 = arith.constant 3 : index
      %176 = memref.load %arg2[%c3_114] : memref<98xf32, #tpu.memory_space<smem>>
      %c0_115 = arith.constant 0 : index
      %c0_116 = arith.constant 0 : index
      %c3_117 = arith.constant 3 : index
      %177 = vector.load %arg7[%c0_115, %c0_116, %c3_117] : memref<2x22x22xf32, #tpu.memory_space<vmem>>, vector<1x16x16xf32>
      %178 = vector.shape_cast %177 : vector<1x16x16xf32> to vector<16x16xf32>
      %179 = vector.broadcast %176 : f32 to vector<16x16xf32>
      %180 = arith.mulf %178, %179 : vector<16x16xf32>
      %181 = arith.addf %157, %180 : vector<16x16xf32>
      %c4_118 = arith.constant 4 : index
      %182 = memref.load %arg2[%c4_118] : memref<98xf32, #tpu.memory_space<smem>>
      %c0_119 = arith.constant 0 : index
      %c0_120 = arith.constant 0 : index
      %c4_121 = arith.constant 4 : index
      %183 = vector.load %arg7[%c0_119, %c0_120, %c4_121] : memref<2x22x22xf32, #tpu.memory_space<vmem>>, vector<1x16x16xf32>
      %184 = vector.shape_cast %183 : vector<1x16x16xf32> to vector<16x16xf32>
      %185 = vector.broadcast %182 : f32 to vector<16x16xf32>
      %186 = arith.mulf %184, %185 : vector<16x16xf32>
      %187 = arith.addf %163, %186 : vector<16x16xf32>
      %c5_122 = arith.constant 5 : index
      %188 = memref.load %arg2[%c5_122] : memref<98xf32, #tpu.memory_space<smem>>
      %c0_123 = arith.constant 0 : index
      %c0_124 = arith.constant 0 : index
      %c5_125 = arith.constant 5 : index
      %189 = vector.load %arg7[%c0_123, %c0_124, %c5_125] : memref<2x22x22xf32, #tpu.memory_space<vmem>>, vector<1x16x16xf32>
      %190 = vector.shape_cast %189 : vector<1x16x16xf32> to vector<16x16xf32>
      %191 = vector.broadcast %188 : f32 to vector<16x16xf32>
      %192 = arith.mulf %190, %191 : vector<16x16xf32>
      %193 = arith.addf %169, %192 : vector<16x16xf32>
      %c6_126 = arith.constant 6 : index
      %194 = memref.load %arg2[%c6_126] : memref<98xf32, #tpu.memory_space<smem>>
      %c0_127 = arith.constant 0 : index
      %c0_128 = arith.constant 0 : index
      %c6_129 = arith.constant 6 : index
      %195 = vector.load %arg7[%c0_127, %c0_128, %c6_129] : memref<2x22x22xf32, #tpu.memory_space<vmem>>, vector<1x16x16xf32>
      %196 = vector.shape_cast %195 : vector<1x16x16xf32> to vector<16x16xf32>
      %197 = vector.broadcast %194 : f32 to vector<16x16xf32>
      %198 = arith.mulf %196, %197 : vector<16x16xf32>
      %199 = arith.addf %175, %198 : vector<16x16xf32>
      %c7_130 = arith.constant 7 : index
      %200 = memref.load %arg2[%c7_130] : memref<98xf32, #tpu.memory_space<smem>>
      %c0_131 = arith.constant 0 : index
      %c1_132 = arith.constant 1 : index
      %c0_133 = arith.constant 0 : index
      %201 = vector.load %arg7[%c0_131, %c1_132, %c0_133] : memref<2x22x22xf32, #tpu.memory_space<vmem>>, vector<1x16x16xf32>
      %202 = vector.shape_cast %201 : vector<1x16x16xf32> to vector<16x16xf32>
      %203 = vector.broadcast %200 : f32 to vector<16x16xf32>
      %204 = arith.mulf %202, %203 : vector<16x16xf32>
      %205 = arith.addf %181, %204 : vector<16x16xf32>
      %c8_134 = arith.constant 8 : index
      %206 = memref.load %arg2[%c8_134] : memref<98xf32, #tpu.memory_space<smem>>
      %c0_135 = arith.constant 0 : index
      %c1_136 = arith.constant 1 : index
      %c1_137 = arith.constant 1 : index
      %207 = vector.load %arg7[%c0_135, %c1_136, %c1_137] : memref<2x22x22xf32, #tpu.memory_space<vmem>>, vector<1x16x16xf32>
      %208 = vector.shape_cast %207 : vector<1x16x16xf32> to vector<16x16xf32>
      %209 = vector.broadcast %206 : f32 to vector<16x16xf32>
      %210 = arith.mulf %208, %209 : vector<16x16xf32>
      %211 = arith.addf %187, %210 : vector<16x16xf32>
      %c9_138 = arith.constant 9 : index
      %212 = memref.load %arg2[%c9_138] : memref<98xf32, #tpu.memory_space<smem>>
      %c0_139 = arith.constant 0 : index
      %c1_140 = arith.constant 1 : index
      %c2_141 = arith.constant 2 : index
      %213 = vector.load %arg7[%c0_139, %c1_140, %c2_141] : memref<2x22x22xf32, #tpu.memory_space<vmem>>, vector<1x16x16xf32>
      %214 = vector.shape_cast %213 : vector<1x16x16xf32> to vector<16x16xf32>
      %215 = vector.broadcast %212 : f32 to vector<16x16xf32>
      %216 = arith.mulf %214, %215 : vector<16x16xf32>
      %217 = arith.addf %193, %216 : vector<16x16xf32>
      %c10_142 = arith.constant 10 : index
      %218 = memref.load %arg2[%c10_142] : memref<98xf32, #tpu.memory_space<smem>>
      %c0_143 = arith.constant 0 : index
      %c1_144 = arith.constant 1 : index
      %c3_145 = arith.constant 3 : index
      %219 = vector.load %arg7[%c0_143, %c1_144, %c3_145] : memref<2x22x22xf32, #tpu.memory_space<vmem>>, vector<1x16x16xf32>
      %220 = vector.shape_cast %219 : vector<1x16x16xf32> to vector<16x16xf32>
      %221 = vector.broadcast %218 : f32 to vector<16x16xf32>
      %222 = arith.mulf %220, %221 : vector<16x16xf32>
      %223 = arith.addf %199, %222 : vector<16x16xf32>
      %c11_146 = arith.constant 11 : index
      %224 = memref.load %arg2[%c11_146] : memref<98xf32, #tpu.memory_space<smem>>
      %c0_147 = arith.constant 0 : index
      %c1_148 = arith.constant 1 : index
      %c4_149 = arith.constant 4 : index
      %225 = vector.load %arg7[%c0_147, %c1_148, %c4_149] : memref<2x22x22xf32, #tpu.memory_space<vmem>>, vector<1x16x16xf32>
      %226 = vector.shape_cast %225 : vector<1x16x16xf32> to vector<16x16xf32>
      %227 = vector.broadcast %224 : f32 to vector<16x16xf32>
      %228 = arith.mulf %226, %227 : vector<16x16xf32>
      %229 = arith.addf %205, %228 : vector<16x16xf32>
      %c12_150 = arith.constant 12 : index
      %230 = memref.load %arg2[%c12_150] : memref<98xf32, #tpu.memory_space<smem>>
      %c0_151 = arith.constant 0 : index
      %c1_152 = arith.constant 1 : index
      %c5_153 = arith.constant 5 : index
      %231 = vector.load %arg7[%c0_151, %c1_152, %c5_153] : memref<2x22x22xf32, #tpu.memory_space<vmem>>, vector<1x16x16xf32>
      %232 = vector.shape_cast %231 : vector<1x16x16xf32> to vector<16x16xf32>
      %233 = vector.broadcast %230 : f32 to vector<16x16xf32>
      %234 = arith.mulf %232, %233 : vector<16x16xf32>
      %235 = arith.addf %211, %234 : vector<16x16xf32>
      %c13_154 = arith.constant 13 : index
      %236 = memref.load %arg2[%c13_154] : memref<98xf32, #tpu.memory_space<smem>>
      %c0_155 = arith.constant 0 : index
      %c1_156 = arith.constant 1 : index
      %c6_157 = arith.constant 6 : index
      %237 = vector.load %arg7[%c0_155, %c1_156, %c6_157] : memref<2x22x22xf32, #tpu.memory_space<vmem>>, vector<1x16x16xf32>
      %238 = vector.shape_cast %237 : vector<1x16x16xf32> to vector<16x16xf32>
      %239 = vector.broadcast %236 : f32 to vector<16x16xf32>
      %240 = arith.mulf %238, %239 : vector<16x16xf32>
      %241 = arith.addf %217, %240 : vector<16x16xf32>
      %c14_158 = arith.constant 14 : index
      %242 = memref.load %arg2[%c14_158] : memref<98xf32, #tpu.memory_space<smem>>
      %c0_159 = arith.constant 0 : index
      %c2_160 = arith.constant 2 : index
      %c0_161 = arith.constant 0 : index
      %243 = vector.load %arg7[%c0_159, %c2_160, %c0_161] : memref<2x22x22xf32, #tpu.memory_space<vmem>>, vector<1x16x16xf32>
      %244 = vector.shape_cast %243 : vector<1x16x16xf32> to vector<16x16xf32>
      %245 = vector.broadcast %242 : f32 to vector<16x16xf32>
      %246 = arith.mulf %244, %245 : vector<16x16xf32>
      %247 = arith.addf %223, %246 : vector<16x16xf32>
      %c15_162 = arith.constant 15 : index
      %248 = memref.load %arg2[%c15_162] : memref<98xf32, #tpu.memory_space<smem>>
      %c0_163 = arith.constant 0 : index
      %c2_164 = arith.constant 2 : index
      %c1_165 = arith.constant 1 : index
      %249 = vector.load %arg7[%c0_163, %c2_164, %c1_165] : memref<2x22x22xf32, #tpu.memory_space<vmem>>, vector<1x16x16xf32>
      %250 = vector.shape_cast %249 : vector<1x16x16xf32> to vector<16x16xf32>
      %251 = vector.broadcast %248 : f32 to vector<16x16xf32>
      %252 = arith.mulf %250, %251 : vector<16x16xf32>
      %253 = arith.addf %229, %252 : vector<16x16xf32>
      %c16_166 = arith.constant 16 : index
      %254 = memref.load %arg2[%c16_166] : memref<98xf32, #tpu.memory_space<smem>>
      %c0_167 = arith.constant 0 : index
      %c2_168 = arith.constant 2 : index
      %c2_169 = arith.constant 2 : index
      %255 = vector.load %arg7[%c0_167, %c2_168, %c2_169] : memref<2x22x22xf32, #tpu.memory_space<vmem>>, vector<1x16x16xf32>
      %256 = vector.shape_cast %255 : vector<1x16x16xf32> to vector<16x16xf32>
      %257 = vector.broadcast %254 : f32 to vector<16x16xf32>
      %258 = arith.mulf %256, %257 : vector<16x16xf32>
      %259 = arith.addf %235, %258 : vector<16x16xf32>
      %c17_170 = arith.constant 17 : index
      %260 = memref.load %arg2[%c17_170] : memref<98xf32, #tpu.memory_space<smem>>
      %c0_171 = arith.constant 0 : index
      %c2_172 = arith.constant 2 : index
      %c3_173 = arith.constant 3 : index
      %261 = vector.load %arg7[%c0_171, %c2_172, %c3_173] : memref<2x22x22xf32, #tpu.memory_space<vmem>>, vector<1x16x16xf32>
      %262 = vector.shape_cast %261 : vector<1x16x16xf32> to vector<16x16xf32>
      %263 = vector.broadcast %260 : f32 to vector<16x16xf32>
      %264 = arith.mulf %262, %263 : vector<16x16xf32>
      %265 = arith.addf %241, %264 : vector<16x16xf32>
      %c18_174 = arith.constant 18 : index
      %266 = memref.load %arg2[%c18_174] : memref<98xf32, #tpu.memory_space<smem>>
      %c0_175 = arith.constant 0 : index
      %c2_176 = arith.constant 2 : index
      %c4_177 = arith.constant 4 : index
      %267 = vector.load %arg7[%c0_175, %c2_176, %c4_177] : memref<2x22x22xf32, #tpu.memory_space<vmem>>, vector<1x16x16xf32>
      %268 = vector.shape_cast %267 : vector<1x16x16xf32> to vector<16x16xf32>
      %269 = vector.broadcast %266 : f32 to vector<16x16xf32>
      %270 = arith.mulf %268, %269 : vector<16x16xf32>
      %271 = arith.addf %247, %270 : vector<16x16xf32>
      %c19 = arith.constant 19 : index
      %272 = memref.load %arg2[%c19] : memref<98xf32, #tpu.memory_space<smem>>
      %c0_178 = arith.constant 0 : index
      %c2_179 = arith.constant 2 : index
      %c5_180 = arith.constant 5 : index
      %273 = vector.load %arg7[%c0_178, %c2_179, %c5_180] : memref<2x22x22xf32, #tpu.memory_space<vmem>>, vector<1x16x16xf32>
      %274 = vector.shape_cast %273 : vector<1x16x16xf32> to vector<16x16xf32>
      %275 = vector.broadcast %272 : f32 to vector<16x16xf32>
      %276 = arith.mulf %274, %275 : vector<16x16xf32>
      %277 = arith.addf %253, %276 : vector<16x16xf32>
      %c20 = arith.constant 20 : index
      %278 = memref.load %arg2[%c20] : memref<98xf32, #tpu.memory_space<smem>>
      %c0_181 = arith.constant 0 : index
      %c2_182 = arith.constant 2 : index
      %c6_183 = arith.constant 6 : index
      %279 = vector.load %arg7[%c0_181, %c2_182, %c6_183] : memref<2x22x22xf32, #tpu.memory_space<vmem>>, vector<1x16x16xf32>
      %280 = vector.shape_cast %279 : vector<1x16x16xf32> to vector<16x16xf32>
      %281 = vector.broadcast %278 : f32 to vector<16x16xf32>
      %282 = arith.mulf %280, %281 : vector<16x16xf32>
      %283 = arith.addf %259, %282 : vector<16x16xf32>
      %c21 = arith.constant 21 : index
      %284 = memref.load %arg2[%c21] : memref<98xf32, #tpu.memory_space<smem>>
      %c0_184 = arith.constant 0 : index
      %c3_185 = arith.constant 3 : index
      %c0_186 = arith.constant 0 : index
      %285 = vector.load %arg7[%c0_184, %c3_185, %c0_186] : memref<2x22x22xf32, #tpu.memory_space<vmem>>, vector<1x16x16xf32>
      %286 = vector.shape_cast %285 : vector<1x16x16xf32> to vector<16x16xf32>
      %287 = vector.broadcast %284 : f32 to vector<16x16xf32>
      %288 = arith.mulf %286, %287 : vector<16x16xf32>
      %289 = arith.addf %265, %288 : vector<16x16xf32>
      %c22 = arith.constant 22 : index
      %290 = memref.load %arg2[%c22] : memref<98xf32, #tpu.memory_space<smem>>
      %c0_187 = arith.constant 0 : index
      %c3_188 = arith.constant 3 : index
      %c1_189 = arith.constant 1 : index
      %291 = vector.load %arg7[%c0_187, %c3_188, %c1_189] : memref<2x22x22xf32, #tpu.memory_space<vmem>>, vector<1x16x16xf32>
      %292 = vector.shape_cast %291 : vector<1x16x16xf32> to vector<16x16xf32>
      %293 = vector.broadcast %290 : f32 to vector<16x16xf32>
      %294 = arith.mulf %292, %293 : vector<16x16xf32>
      %295 = arith.addf %271, %294 : vector<16x16xf32>
      %c23 = arith.constant 23 : index
      %296 = memref.load %arg2[%c23] : memref<98xf32, #tpu.memory_space<smem>>
      %c0_190 = arith.constant 0 : index
      %c3_191 = arith.constant 3 : index
      %c2_192 = arith.constant 2 : index
      %297 = vector.load %arg7[%c0_190, %c3_191, %c2_192] : memref<2x22x22xf32, #tpu.memory_space<vmem>>, vector<1x16x16xf32>
      %298 = vector.shape_cast %297 : vector<1x16x16xf32> to vector<16x16xf32>
      %299 = vector.broadcast %296 : f32 to vector<16x16xf32>
      %300 = arith.mulf %298, %299 : vector<16x16xf32>
      %301 = arith.addf %277, %300 : vector<16x16xf32>
      %c24 = arith.constant 24 : index
      %302 = memref.load %arg2[%c24] : memref<98xf32, #tpu.memory_space<smem>>
      %c0_193 = arith.constant 0 : index
      %c3_194 = arith.constant 3 : index
      %c3_195 = arith.constant 3 : index
      %303 = vector.load %arg7[%c0_193, %c3_194, %c3_195] : memref<2x22x22xf32, #tpu.memory_space<vmem>>, vector<1x16x16xf32>
      %304 = vector.shape_cast %303 : vector<1x16x16xf32> to vector<16x16xf32>
      %305 = vector.broadcast %302 : f32 to vector<16x16xf32>
      %306 = arith.mulf %304, %305 : vector<16x16xf32>
      %307 = arith.addf %283, %306 : vector<16x16xf32>
      %c25 = arith.constant 25 : index
      %308 = memref.load %arg2[%c25] : memref<98xf32, #tpu.memory_space<smem>>
      %c0_196 = arith.constant 0 : index
      %c3_197 = arith.constant 3 : index
      %c4_198 = arith.constant 4 : index
      %309 = vector.load %arg7[%c0_196, %c3_197, %c4_198] : memref<2x22x22xf32, #tpu.memory_space<vmem>>, vector<1x16x16xf32>
      %310 = vector.shape_cast %309 : vector<1x16x16xf32> to vector<16x16xf32>
      %311 = vector.broadcast %308 : f32 to vector<16x16xf32>
      %312 = arith.mulf %310, %311 : vector<16x16xf32>
      %313 = arith.addf %289, %312 : vector<16x16xf32>
      %c26 = arith.constant 26 : index
      %314 = memref.load %arg2[%c26] : memref<98xf32, #tpu.memory_space<smem>>
      %c0_199 = arith.constant 0 : index
      %c3_200 = arith.constant 3 : index
      %c5_201 = arith.constant 5 : index
      %315 = vector.load %arg7[%c0_199, %c3_200, %c5_201] : memref<2x22x22xf32, #tpu.memory_space<vmem>>, vector<1x16x16xf32>
      %316 = vector.shape_cast %315 : vector<1x16x16xf32> to vector<16x16xf32>
      %317 = vector.broadcast %314 : f32 to vector<16x16xf32>
      %318 = arith.mulf %316, %317 : vector<16x16xf32>
      %319 = arith.addf %295, %318 : vector<16x16xf32>
      %c27 = arith.constant 27 : index
      %320 = memref.load %arg2[%c27] : memref<98xf32, #tpu.memory_space<smem>>
      %c0_202 = arith.constant 0 : index
      %c3_203 = arith.constant 3 : index
      %c6_204 = arith.constant 6 : index
      %321 = vector.load %arg7[%c0_202, %c3_203, %c6_204] : memref<2x22x22xf32, #tpu.memory_space<vmem>>, vector<1x16x16xf32>
      %322 = vector.shape_cast %321 : vector<1x16x16xf32> to vector<16x16xf32>
      %323 = vector.broadcast %320 : f32 to vector<16x16xf32>
      %324 = arith.mulf %322, %323 : vector<16x16xf32>
      %325 = arith.addf %301, %324 : vector<16x16xf32>
      %c28 = arith.constant 28 : index
      %326 = memref.load %arg2[%c28] : memref<98xf32, #tpu.memory_space<smem>>
      %c0_205 = arith.constant 0 : index
      %c4_206 = arith.constant 4 : index
      %c0_207 = arith.constant 0 : index
      %327 = vector.load %arg7[%c0_205, %c4_206, %c0_207] : memref<2x22x22xf32, #tpu.memory_space<vmem>>, vector<1x16x16xf32>
      %328 = vector.shape_cast %327 : vector<1x16x16xf32> to vector<16x16xf32>
      %329 = vector.broadcast %326 : f32 to vector<16x16xf32>
      %330 = arith.mulf %328, %329 : vector<16x16xf32>
      %331 = arith.addf %307, %330 : vector<16x16xf32>
      %c29 = arith.constant 29 : index
      %332 = memref.load %arg2[%c29] : memref<98xf32, #tpu.memory_space<smem>>
      %c0_208 = arith.constant 0 : index
      %c4_209 = arith.constant 4 : index
      %c1_210 = arith.constant 1 : index
      %333 = vector.load %arg7[%c0_208, %c4_209, %c1_210] : memref<2x22x22xf32, #tpu.memory_space<vmem>>, vector<1x16x16xf32>
      %334 = vector.shape_cast %333 : vector<1x16x16xf32> to vector<16x16xf32>
      %335 = vector.broadcast %332 : f32 to vector<16x16xf32>
      %336 = arith.mulf %334, %335 : vector<16x16xf32>
      %337 = arith.addf %313, %336 : vector<16x16xf32>
      %c30 = arith.constant 30 : index
      %338 = memref.load %arg2[%c30] : memref<98xf32, #tpu.memory_space<smem>>
      %c0_211 = arith.constant 0 : index
      %c4_212 = arith.constant 4 : index
      %c2_213 = arith.constant 2 : index
      %339 = vector.load %arg7[%c0_211, %c4_212, %c2_213] : memref<2x22x22xf32, #tpu.memory_space<vmem>>, vector<1x16x16xf32>
      %340 = vector.shape_cast %339 : vector<1x16x16xf32> to vector<16x16xf32>
      %341 = vector.broadcast %338 : f32 to vector<16x16xf32>
      %342 = arith.mulf %340, %341 : vector<16x16xf32>
      %343 = arith.addf %319, %342 : vector<16x16xf32>
      %c31 = arith.constant 31 : index
      %344 = memref.load %arg2[%c31] : memref<98xf32, #tpu.memory_space<smem>>
      %c0_214 = arith.constant 0 : index
      %c4_215 = arith.constant 4 : index
      %c3_216 = arith.constant 3 : index
      %345 = vector.load %arg7[%c0_214, %c4_215, %c3_216] : memref<2x22x22xf32, #tpu.memory_space<vmem>>, vector<1x16x16xf32>
      %346 = vector.shape_cast %345 : vector<1x16x16xf32> to vector<16x16xf32>
      %347 = vector.broadcast %344 : f32 to vector<16x16xf32>
      %348 = arith.mulf %346, %347 : vector<16x16xf32>
      %349 = arith.addf %325, %348 : vector<16x16xf32>
      %c32 = arith.constant 32 : index
      %350 = memref.load %arg2[%c32] : memref<98xf32, #tpu.memory_space<smem>>
      %c0_217 = arith.constant 0 : index
      %c4_218 = arith.constant 4 : index
      %c4_219 = arith.constant 4 : index
      %351 = vector.load %arg7[%c0_217, %c4_218, %c4_219] : memref<2x22x22xf32, #tpu.memory_space<vmem>>, vector<1x16x16xf32>
      %352 = vector.shape_cast %351 : vector<1x16x16xf32> to vector<16x16xf32>
      %353 = vector.broadcast %350 : f32 to vector<16x16xf32>
      %354 = arith.mulf %352, %353 : vector<16x16xf32>
      %355 = arith.addf %331, %354 : vector<16x16xf32>
      %c33 = arith.constant 33 : index
      %356 = memref.load %arg2[%c33] : memref<98xf32, #tpu.memory_space<smem>>
      %c0_220 = arith.constant 0 : index
      %c4_221 = arith.constant 4 : index
      %c5_222 = arith.constant 5 : index
      %357 = vector.load %arg7[%c0_220, %c4_221, %c5_222] : memref<2x22x22xf32, #tpu.memory_space<vmem>>, vector<1x16x16xf32>
      %358 = vector.shape_cast %357 : vector<1x16x16xf32> to vector<16x16xf32>
      %359 = vector.broadcast %356 : f32 to vector<16x16xf32>
      %360 = arith.mulf %358, %359 : vector<16x16xf32>
      %361 = arith.addf %337, %360 : vector<16x16xf32>
      %c34 = arith.constant 34 : index
      %362 = memref.load %arg2[%c34] : memref<98xf32, #tpu.memory_space<smem>>
      %c0_223 = arith.constant 0 : index
      %c4_224 = arith.constant 4 : index
      %c6_225 = arith.constant 6 : index
      %363 = vector.load %arg7[%c0_223, %c4_224, %c6_225] : memref<2x22x22xf32, #tpu.memory_space<vmem>>, vector<1x16x16xf32>
      %364 = vector.shape_cast %363 : vector<1x16x16xf32> to vector<16x16xf32>
      %365 = vector.broadcast %362 : f32 to vector<16x16xf32>
      %366 = arith.mulf %364, %365 : vector<16x16xf32>
      %367 = arith.addf %343, %366 : vector<16x16xf32>
      %c35 = arith.constant 35 : index
      %368 = memref.load %arg2[%c35] : memref<98xf32, #tpu.memory_space<smem>>
      %c0_226 = arith.constant 0 : index
      %c5_227 = arith.constant 5 : index
      %c0_228 = arith.constant 0 : index
      %369 = vector.load %arg7[%c0_226, %c5_227, %c0_228] : memref<2x22x22xf32, #tpu.memory_space<vmem>>, vector<1x16x16xf32>
      %370 = vector.shape_cast %369 : vector<1x16x16xf32> to vector<16x16xf32>
      %371 = vector.broadcast %368 : f32 to vector<16x16xf32>
      %372 = arith.mulf %370, %371 : vector<16x16xf32>
      %373 = arith.addf %349, %372 : vector<16x16xf32>
      %c36 = arith.constant 36 : index
      %374 = memref.load %arg2[%c36] : memref<98xf32, #tpu.memory_space<smem>>
      %c0_229 = arith.constant 0 : index
      %c5_230 = arith.constant 5 : index
      %c1_231 = arith.constant 1 : index
      %375 = vector.load %arg7[%c0_229, %c5_230, %c1_231] : memref<2x22x22xf32, #tpu.memory_space<vmem>>, vector<1x16x16xf32>
      %376 = vector.shape_cast %375 : vector<1x16x16xf32> to vector<16x16xf32>
      %377 = vector.broadcast %374 : f32 to vector<16x16xf32>
      %378 = arith.mulf %376, %377 : vector<16x16xf32>
      %379 = arith.addf %355, %378 : vector<16x16xf32>
      %c37 = arith.constant 37 : index
      %380 = memref.load %arg2[%c37] : memref<98xf32, #tpu.memory_space<smem>>
      %c0_232 = arith.constant 0 : index
      %c5_233 = arith.constant 5 : index
      %c2_234 = arith.constant 2 : index
      %381 = vector.load %arg7[%c0_232, %c5_233, %c2_234] : memref<2x22x22xf32, #tpu.memory_space<vmem>>, vector<1x16x16xf32>
      %382 = vector.shape_cast %381 : vector<1x16x16xf32> to vector<16x16xf32>
      %383 = vector.broadcast %380 : f32 to vector<16x16xf32>
      %384 = arith.mulf %382, %383 : vector<16x16xf32>
      %385 = arith.addf %361, %384 : vector<16x16xf32>
      %c38 = arith.constant 38 : index
      %386 = memref.load %arg2[%c38] : memref<98xf32, #tpu.memory_space<smem>>
      %c0_235 = arith.constant 0 : index
      %c5_236 = arith.constant 5 : index
      %c3_237 = arith.constant 3 : index
      %387 = vector.load %arg7[%c0_235, %c5_236, %c3_237] : memref<2x22x22xf32, #tpu.memory_space<vmem>>, vector<1x16x16xf32>
      %388 = vector.shape_cast %387 : vector<1x16x16xf32> to vector<16x16xf32>
      %389 = vector.broadcast %386 : f32 to vector<16x16xf32>
      %390 = arith.mulf %388, %389 : vector<16x16xf32>
      %391 = arith.addf %367, %390 : vector<16x16xf32>
      %c39 = arith.constant 39 : index
      %392 = memref.load %arg2[%c39] : memref<98xf32, #tpu.memory_space<smem>>
      %c0_238 = arith.constant 0 : index
      %c5_239 = arith.constant 5 : index
      %c4_240 = arith.constant 4 : index
      %393 = vector.load %arg7[%c0_238, %c5_239, %c4_240] : memref<2x22x22xf32, #tpu.memory_space<vmem>>, vector<1x16x16xf32>
      %394 = vector.shape_cast %393 : vector<1x16x16xf32> to vector<16x16xf32>
      %395 = vector.broadcast %392 : f32 to vector<16x16xf32>
      %396 = arith.mulf %394, %395 : vector<16x16xf32>
      %397 = arith.addf %373, %396 : vector<16x16xf32>
      %c40 = arith.constant 40 : index
      %398 = memref.load %arg2[%c40] : memref<98xf32, #tpu.memory_space<smem>>
      %c0_241 = arith.constant 0 : index
      %c5_242 = arith.constant 5 : index
      %c5_243 = arith.constant 5 : index
      %399 = vector.load %arg7[%c0_241, %c5_242, %c5_243] : memref<2x22x22xf32, #tpu.memory_space<vmem>>, vector<1x16x16xf32>
      %400 = vector.shape_cast %399 : vector<1x16x16xf32> to vector<16x16xf32>
      %401 = vector.broadcast %398 : f32 to vector<16x16xf32>
      %402 = arith.mulf %400, %401 : vector<16x16xf32>
      %403 = arith.addf %379, %402 : vector<16x16xf32>
      %c41 = arith.constant 41 : index
      %404 = memref.load %arg2[%c41] : memref<98xf32, #tpu.memory_space<smem>>
      %c0_244 = arith.constant 0 : index
      %c5_245 = arith.constant 5 : index
      %c6_246 = arith.constant 6 : index
      %405 = vector.load %arg7[%c0_244, %c5_245, %c6_246] : memref<2x22x22xf32, #tpu.memory_space<vmem>>, vector<1x16x16xf32>
      %406 = vector.shape_cast %405 : vector<1x16x16xf32> to vector<16x16xf32>
      %407 = vector.broadcast %404 : f32 to vector<16x16xf32>
      %408 = arith.mulf %406, %407 : vector<16x16xf32>
      %409 = arith.addf %385, %408 : vector<16x16xf32>
      %c42 = arith.constant 42 : index
      %410 = memref.load %arg2[%c42] : memref<98xf32, #tpu.memory_space<smem>>
      %c0_247 = arith.constant 0 : index
      %c6_248 = arith.constant 6 : index
      %c0_249 = arith.constant 0 : index
      %411 = vector.load %arg7[%c0_247, %c6_248, %c0_249] : memref<2x22x22xf32, #tpu.memory_space<vmem>>, vector<1x16x16xf32>
      %412 = vector.shape_cast %411 : vector<1x16x16xf32> to vector<16x16xf32>
      %413 = vector.broadcast %410 : f32 to vector<16x16xf32>
      %414 = arith.mulf %412, %413 : vector<16x16xf32>
      %415 = arith.addf %391, %414 : vector<16x16xf32>
      %c43 = arith.constant 43 : index
      %416 = memref.load %arg2[%c43] : memref<98xf32, #tpu.memory_space<smem>>
      %c0_250 = arith.constant 0 : index
      %c6_251 = arith.constant 6 : index
      %c1_252 = arith.constant 1 : index
      %417 = vector.load %arg7[%c0_250, %c6_251, %c1_252] : memref<2x22x22xf32, #tpu.memory_space<vmem>>, vector<1x16x16xf32>
      %418 = vector.shape_cast %417 : vector<1x16x16xf32> to vector<16x16xf32>
      %419 = vector.broadcast %416 : f32 to vector<16x16xf32>
      %420 = arith.mulf %418, %419 : vector<16x16xf32>
      %421 = arith.addf %397, %420 : vector<16x16xf32>
      %c44 = arith.constant 44 : index
      %422 = memref.load %arg2[%c44] : memref<98xf32, #tpu.memory_space<smem>>
      %c0_253 = arith.constant 0 : index
      %c6_254 = arith.constant 6 : index
      %c2_255 = arith.constant 2 : index
      %423 = vector.load %arg7[%c0_253, %c6_254, %c2_255] : memref<2x22x22xf32, #tpu.memory_space<vmem>>, vector<1x16x16xf32>
      %424 = vector.shape_cast %423 : vector<1x16x16xf32> to vector<16x16xf32>
      %425 = vector.broadcast %422 : f32 to vector<16x16xf32>
      %426 = arith.mulf %424, %425 : vector<16x16xf32>
      %427 = arith.addf %403, %426 : vector<16x16xf32>
      %c45 = arith.constant 45 : index
      %428 = memref.load %arg2[%c45] : memref<98xf32, #tpu.memory_space<smem>>
      %c0_256 = arith.constant 0 : index
      %c6_257 = arith.constant 6 : index
      %c3_258 = arith.constant 3 : index
      %429 = vector.load %arg7[%c0_256, %c6_257, %c3_258] : memref<2x22x22xf32, #tpu.memory_space<vmem>>, vector<1x16x16xf32>
      %430 = vector.shape_cast %429 : vector<1x16x16xf32> to vector<16x16xf32>
      %431 = vector.broadcast %428 : f32 to vector<16x16xf32>
      %432 = arith.mulf %430, %431 : vector<16x16xf32>
      %433 = arith.addf %409, %432 : vector<16x16xf32>
      %c46 = arith.constant 46 : index
      %434 = memref.load %arg2[%c46] : memref<98xf32, #tpu.memory_space<smem>>
      %c0_259 = arith.constant 0 : index
      %c6_260 = arith.constant 6 : index
      %c4_261 = arith.constant 4 : index
      %435 = vector.load %arg7[%c0_259, %c6_260, %c4_261] : memref<2x22x22xf32, #tpu.memory_space<vmem>>, vector<1x16x16xf32>
      %436 = vector.shape_cast %435 : vector<1x16x16xf32> to vector<16x16xf32>
      %437 = vector.broadcast %434 : f32 to vector<16x16xf32>
      %438 = arith.mulf %436, %437 : vector<16x16xf32>
      %439 = arith.addf %415, %438 : vector<16x16xf32>
      %c47 = arith.constant 47 : index
      %440 = memref.load %arg2[%c47] : memref<98xf32, #tpu.memory_space<smem>>
      %c0_262 = arith.constant 0 : index
      %c6_263 = arith.constant 6 : index
      %c5_264 = arith.constant 5 : index
      %441 = vector.load %arg7[%c0_262, %c6_263, %c5_264] : memref<2x22x22xf32, #tpu.memory_space<vmem>>, vector<1x16x16xf32>
      %442 = vector.shape_cast %441 : vector<1x16x16xf32> to vector<16x16xf32>
      %443 = vector.broadcast %440 : f32 to vector<16x16xf32>
      %444 = arith.mulf %442, %443 : vector<16x16xf32>
      %445 = arith.addf %421, %444 : vector<16x16xf32>
      %c48 = arith.constant 48 : index
      %446 = memref.load %arg2[%c48] : memref<98xf32, #tpu.memory_space<smem>>
      %c0_265 = arith.constant 0 : index
      %c6_266 = arith.constant 6 : index
      %c6_267 = arith.constant 6 : index
      %447 = vector.load %arg7[%c0_265, %c6_266, %c6_267] : memref<2x22x22xf32, #tpu.memory_space<vmem>>, vector<1x16x16xf32>
      %448 = vector.shape_cast %447 : vector<1x16x16xf32> to vector<16x16xf32>
      %449 = vector.broadcast %446 : f32 to vector<16x16xf32>
      %450 = arith.mulf %448, %449 : vector<16x16xf32>
      %451 = arith.addf %427, %450 : vector<16x16xf32>
      %c49 = arith.constant 49 : index
      %452 = memref.load %arg2[%c49] : memref<98xf32, #tpu.memory_space<smem>>
      %c1_268 = arith.constant 1 : index
      %c0_269 = arith.constant 0 : index
      %c0_270 = arith.constant 0 : index
      %453 = vector.load %arg7[%c1_268, %c0_269, %c0_270] : memref<2x22x22xf32, #tpu.memory_space<vmem>>, vector<1x16x16xf32>
      %454 = vector.shape_cast %453 : vector<1x16x16xf32> to vector<16x16xf32>
      %455 = vector.broadcast %452 : f32 to vector<16x16xf32>
      %456 = arith.mulf %454, %455 : vector<16x16xf32>
      %457 = arith.addf %433, %456 : vector<16x16xf32>
      %c50 = arith.constant 50 : index
      %458 = memref.load %arg2[%c50] : memref<98xf32, #tpu.memory_space<smem>>
      %c1_271 = arith.constant 1 : index
      %c0_272 = arith.constant 0 : index
      %c1_273 = arith.constant 1 : index
      %459 = vector.load %arg7[%c1_271, %c0_272, %c1_273] : memref<2x22x22xf32, #tpu.memory_space<vmem>>, vector<1x16x16xf32>
      %460 = vector.shape_cast %459 : vector<1x16x16xf32> to vector<16x16xf32>
      %461 = vector.broadcast %458 : f32 to vector<16x16xf32>
      %462 = arith.mulf %460, %461 : vector<16x16xf32>
      %463 = arith.addf %439, %462 : vector<16x16xf32>
      %c51 = arith.constant 51 : index
      %464 = memref.load %arg2[%c51] : memref<98xf32, #tpu.memory_space<smem>>
      %c1_274 = arith.constant 1 : index
      %c0_275 = arith.constant 0 : index
      %c2_276 = arith.constant 2 : index
      %465 = vector.load %arg7[%c1_274, %c0_275, %c2_276] : memref<2x22x22xf32, #tpu.memory_space<vmem>>, vector<1x16x16xf32>
      %466 = vector.shape_cast %465 : vector<1x16x16xf32> to vector<16x16xf32>
      %467 = vector.broadcast %464 : f32 to vector<16x16xf32>
      %468 = arith.mulf %466, %467 : vector<16x16xf32>
      %469 = arith.addf %445, %468 : vector<16x16xf32>
      %c52 = arith.constant 52 : index
      %470 = memref.load %arg2[%c52] : memref<98xf32, #tpu.memory_space<smem>>
      %c1_277 = arith.constant 1 : index
      %c0_278 = arith.constant 0 : index
      %c3_279 = arith.constant 3 : index
      %471 = vector.load %arg7[%c1_277, %c0_278, %c3_279] : memref<2x22x22xf32, #tpu.memory_space<vmem>>, vector<1x16x16xf32>
      %472 = vector.shape_cast %471 : vector<1x16x16xf32> to vector<16x16xf32>
      %473 = vector.broadcast %470 : f32 to vector<16x16xf32>
      %474 = arith.mulf %472, %473 : vector<16x16xf32>
      %475 = arith.addf %451, %474 : vector<16x16xf32>
      %c53 = arith.constant 53 : index
      %476 = memref.load %arg2[%c53] : memref<98xf32, #tpu.memory_space<smem>>
      %c1_280 = arith.constant 1 : index
      %c0_281 = arith.constant 0 : index
      %c4_282 = arith.constant 4 : index
      %477 = vector.load %arg7[%c1_280, %c0_281, %c4_282] : memref<2x22x22xf32, #tpu.memory_space<vmem>>, vector<1x16x16xf32>
      %478 = vector.shape_cast %477 : vector<1x16x16xf32> to vector<16x16xf32>
      %479 = vector.broadcast %476 : f32 to vector<16x16xf32>
      %480 = arith.mulf %478, %479 : vector<16x16xf32>
      %481 = arith.addf %457, %480 : vector<16x16xf32>
      %c54 = arith.constant 54 : index
      %482 = memref.load %arg2[%c54] : memref<98xf32, #tpu.memory_space<smem>>
      %c1_283 = arith.constant 1 : index
      %c0_284 = arith.constant 0 : index
      %c5_285 = arith.constant 5 : index
      %483 = vector.load %arg7[%c1_283, %c0_284, %c5_285] : memref<2x22x22xf32, #tpu.memory_space<vmem>>, vector<1x16x16xf32>
      %484 = vector.shape_cast %483 : vector<1x16x16xf32> to vector<16x16xf32>
      %485 = vector.broadcast %482 : f32 to vector<16x16xf32>
      %486 = arith.mulf %484, %485 : vector<16x16xf32>
      %487 = arith.addf %463, %486 : vector<16x16xf32>
      %c55 = arith.constant 55 : index
      %488 = memref.load %arg2[%c55] : memref<98xf32, #tpu.memory_space<smem>>
      %c1_286 = arith.constant 1 : index
      %c0_287 = arith.constant 0 : index
      %c6_288 = arith.constant 6 : index
      %489 = vector.load %arg7[%c1_286, %c0_287, %c6_288] : memref<2x22x22xf32, #tpu.memory_space<vmem>>, vector<1x16x16xf32>
      %490 = vector.shape_cast %489 : vector<1x16x16xf32> to vector<16x16xf32>
      %491 = vector.broadcast %488 : f32 to vector<16x16xf32>
      %492 = arith.mulf %490, %491 : vector<16x16xf32>
      %493 = arith.addf %469, %492 : vector<16x16xf32>
      %c56 = arith.constant 56 : index
      %494 = memref.load %arg2[%c56] : memref<98xf32, #tpu.memory_space<smem>>
      %c1_289 = arith.constant 1 : index
      %c1_290 = arith.constant 1 : index
      %c0_291 = arith.constant 0 : index
      %495 = vector.load %arg7[%c1_289, %c1_290, %c0_291] : memref<2x22x22xf32, #tpu.memory_space<vmem>>, vector<1x16x16xf32>
      %496 = vector.shape_cast %495 : vector<1x16x16xf32> to vector<16x16xf32>
      %497 = vector.broadcast %494 : f32 to vector<16x16xf32>
      %498 = arith.mulf %496, %497 : vector<16x16xf32>
      %499 = arith.addf %475, %498 : vector<16x16xf32>
      %c57 = arith.constant 57 : index
      %500 = memref.load %arg2[%c57] : memref<98xf32, #tpu.memory_space<smem>>
      %c1_292 = arith.constant 1 : index
      %c1_293 = arith.constant 1 : index
      %c1_294 = arith.constant 1 : index
      %501 = vector.load %arg7[%c1_292, %c1_293, %c1_294] : memref<2x22x22xf32, #tpu.memory_space<vmem>>, vector<1x16x16xf32>
      %502 = vector.shape_cast %501 : vector<1x16x16xf32> to vector<16x16xf32>
      %503 = vector.broadcast %500 : f32 to vector<16x16xf32>
      %504 = arith.mulf %502, %503 : vector<16x16xf32>
      %505 = arith.addf %481, %504 : vector<16x16xf32>
      %c58 = arith.constant 58 : index
      %506 = memref.load %arg2[%c58] : memref<98xf32, #tpu.memory_space<smem>>
      %c1_295 = arith.constant 1 : index
      %c1_296 = arith.constant 1 : index
      %c2_297 = arith.constant 2 : index
      %507 = vector.load %arg7[%c1_295, %c1_296, %c2_297] : memref<2x22x22xf32, #tpu.memory_space<vmem>>, vector<1x16x16xf32>
      %508 = vector.shape_cast %507 : vector<1x16x16xf32> to vector<16x16xf32>
      %509 = vector.broadcast %506 : f32 to vector<16x16xf32>
      %510 = arith.mulf %508, %509 : vector<16x16xf32>
      %511 = arith.addf %487, %510 : vector<16x16xf32>
      %c59 = arith.constant 59 : index
      %512 = memref.load %arg2[%c59] : memref<98xf32, #tpu.memory_space<smem>>
      %c1_298 = arith.constant 1 : index
      %c1_299 = arith.constant 1 : index
      %c3_300 = arith.constant 3 : index
      %513 = vector.load %arg7[%c1_298, %c1_299, %c3_300] : memref<2x22x22xf32, #tpu.memory_space<vmem>>, vector<1x16x16xf32>
      %514 = vector.shape_cast %513 : vector<1x16x16xf32> to vector<16x16xf32>
      %515 = vector.broadcast %512 : f32 to vector<16x16xf32>
      %516 = arith.mulf %514, %515 : vector<16x16xf32>
      %517 = arith.addf %493, %516 : vector<16x16xf32>
      %c60 = arith.constant 60 : index
      %518 = memref.load %arg2[%c60] : memref<98xf32, #tpu.memory_space<smem>>
      %c1_301 = arith.constant 1 : index
      %c1_302 = arith.constant 1 : index
      %c4_303 = arith.constant 4 : index
      %519 = vector.load %arg7[%c1_301, %c1_302, %c4_303] : memref<2x22x22xf32, #tpu.memory_space<vmem>>, vector<1x16x16xf32>
      %520 = vector.shape_cast %519 : vector<1x16x16xf32> to vector<16x16xf32>
      %521 = vector.broadcast %518 : f32 to vector<16x16xf32>
      %522 = arith.mulf %520, %521 : vector<16x16xf32>
      %523 = arith.addf %499, %522 : vector<16x16xf32>
      %c61 = arith.constant 61 : index
      %524 = memref.load %arg2[%c61] : memref<98xf32, #tpu.memory_space<smem>>
      %c1_304 = arith.constant 1 : index
      %c1_305 = arith.constant 1 : index
      %c5_306 = arith.constant 5 : index
      %525 = vector.load %arg7[%c1_304, %c1_305, %c5_306] : memref<2x22x22xf32, #tpu.memory_space<vmem>>, vector<1x16x16xf32>
      %526 = vector.shape_cast %525 : vector<1x16x16xf32> to vector<16x16xf32>
      %527 = vector.broadcast %524 : f32 to vector<16x16xf32>
      %528 = arith.mulf %526, %527 : vector<16x16xf32>
      %529 = arith.addf %505, %528 : vector<16x16xf32>
      %c62 = arith.constant 62 : index
      %530 = memref.load %arg2[%c62] : memref<98xf32, #tpu.memory_space<smem>>
      %c1_307 = arith.constant 1 : index
      %c1_308 = arith.constant 1 : index
      %c6_309 = arith.constant 6 : index
      %531 = vector.load %arg7[%c1_307, %c1_308, %c6_309] : memref<2x22x22xf32, #tpu.memory_space<vmem>>, vector<1x16x16xf32>
      %532 = vector.shape_cast %531 : vector<1x16x16xf32> to vector<16x16xf32>
      %533 = vector.broadcast %530 : f32 to vector<16x16xf32>
      %534 = arith.mulf %532, %533 : vector<16x16xf32>
      %535 = arith.addf %511, %534 : vector<16x16xf32>
      %c63 = arith.constant 63 : index
      %536 = memref.load %arg2[%c63] : memref<98xf32, #tpu.memory_space<smem>>
      %c1_310 = arith.constant 1 : index
      %c2_311 = arith.constant 2 : index
      %c0_312 = arith.constant 0 : index
      %537 = vector.load %arg7[%c1_310, %c2_311, %c0_312] : memref<2x22x22xf32, #tpu.memory_space<vmem>>, vector<1x16x16xf32>
      %538 = vector.shape_cast %537 : vector<1x16x16xf32> to vector<16x16xf32>
      %539 = vector.broadcast %536 : f32 to vector<16x16xf32>
      %540 = arith.mulf %538, %539 : vector<16x16xf32>
      %541 = arith.addf %517, %540 : vector<16x16xf32>
      %c64 = arith.constant 64 : index
      %542 = memref.load %arg2[%c64] : memref<98xf32, #tpu.memory_space<smem>>
      %c1_313 = arith.constant 1 : index
      %c2_314 = arith.constant 2 : index
      %c1_315 = arith.constant 1 : index
      %543 = vector.load %arg7[%c1_313, %c2_314, %c1_315] : memref<2x22x22xf32, #tpu.memory_space<vmem>>, vector<1x16x16xf32>
      %544 = vector.shape_cast %543 : vector<1x16x16xf32> to vector<16x16xf32>
      %545 = vector.broadcast %542 : f32 to vector<16x16xf32>
      %546 = arith.mulf %544, %545 : vector<16x16xf32>
      %547 = arith.addf %523, %546 : vector<16x16xf32>
      %c65 = arith.constant 65 : index
      %548 = memref.load %arg2[%c65] : memref<98xf32, #tpu.memory_space<smem>>
      %c1_316 = arith.constant 1 : index
      %c2_317 = arith.constant 2 : index
      %c2_318 = arith.constant 2 : index
      %549 = vector.load %arg7[%c1_316, %c2_317, %c2_318] : memref<2x22x22xf32, #tpu.memory_space<vmem>>, vector<1x16x16xf32>
      %550 = vector.shape_cast %549 : vector<1x16x16xf32> to vector<16x16xf32>
      %551 = vector.broadcast %548 : f32 to vector<16x16xf32>
      %552 = arith.mulf %550, %551 : vector<16x16xf32>
      %553 = arith.addf %529, %552 : vector<16x16xf32>
      %c66 = arith.constant 66 : index
      %554 = memref.load %arg2[%c66] : memref<98xf32, #tpu.memory_space<smem>>
      %c1_319 = arith.constant 1 : index
      %c2_320 = arith.constant 2 : index
      %c3_321 = arith.constant 3 : index
      %555 = vector.load %arg7[%c1_319, %c2_320, %c3_321] : memref<2x22x22xf32, #tpu.memory_space<vmem>>, vector<1x16x16xf32>
      %556 = vector.shape_cast %555 : vector<1x16x16xf32> to vector<16x16xf32>
      %557 = vector.broadcast %554 : f32 to vector<16x16xf32>
      %558 = arith.mulf %556, %557 : vector<16x16xf32>
      %559 = arith.addf %535, %558 : vector<16x16xf32>
      %c67 = arith.constant 67 : index
      %560 = memref.load %arg2[%c67] : memref<98xf32, #tpu.memory_space<smem>>
      %c1_322 = arith.constant 1 : index
      %c2_323 = arith.constant 2 : index
      %c4_324 = arith.constant 4 : index
      %561 = vector.load %arg7[%c1_322, %c2_323, %c4_324] : memref<2x22x22xf32, #tpu.memory_space<vmem>>, vector<1x16x16xf32>
      %562 = vector.shape_cast %561 : vector<1x16x16xf32> to vector<16x16xf32>
      %563 = vector.broadcast %560 : f32 to vector<16x16xf32>
      %564 = arith.mulf %562, %563 : vector<16x16xf32>
      %565 = arith.addf %541, %564 : vector<16x16xf32>
      %c68 = arith.constant 68 : index
      %566 = memref.load %arg2[%c68] : memref<98xf32, #tpu.memory_space<smem>>
      %c1_325 = arith.constant 1 : index
      %c2_326 = arith.constant 2 : index
      %c5_327 = arith.constant 5 : index
      %567 = vector.load %arg7[%c1_325, %c2_326, %c5_327] : memref<2x22x22xf32, #tpu.memory_space<vmem>>, vector<1x16x16xf32>
      %568 = vector.shape_cast %567 : vector<1x16x16xf32> to vector<16x16xf32>
      %569 = vector.broadcast %566 : f32 to vector<16x16xf32>
      %570 = arith.mulf %568, %569 : vector<16x16xf32>
      %571 = arith.addf %547, %570 : vector<16x16xf32>
      %c69 = arith.constant 69 : index
      %572 = memref.load %arg2[%c69] : memref<98xf32, #tpu.memory_space<smem>>
      %c1_328 = arith.constant 1 : index
      %c2_329 = arith.constant 2 : index
      %c6_330 = arith.constant 6 : index
      %573 = vector.load %arg7[%c1_328, %c2_329, %c6_330] : memref<2x22x22xf32, #tpu.memory_space<vmem>>, vector<1x16x16xf32>
      %574 = vector.shape_cast %573 : vector<1x16x16xf32> to vector<16x16xf32>
      %575 = vector.broadcast %572 : f32 to vector<16x16xf32>
      %576 = arith.mulf %574, %575 : vector<16x16xf32>
      %577 = arith.addf %553, %576 : vector<16x16xf32>
      %c70 = arith.constant 70 : index
      %578 = memref.load %arg2[%c70] : memref<98xf32, #tpu.memory_space<smem>>
      %c1_331 = arith.constant 1 : index
      %c3_332 = arith.constant 3 : index
      %c0_333 = arith.constant 0 : index
      %579 = vector.load %arg7[%c1_331, %c3_332, %c0_333] : memref<2x22x22xf32, #tpu.memory_space<vmem>>, vector<1x16x16xf32>
      %580 = vector.shape_cast %579 : vector<1x16x16xf32> to vector<16x16xf32>
      %581 = vector.broadcast %578 : f32 to vector<16x16xf32>
      %582 = arith.mulf %580, %581 : vector<16x16xf32>
      %583 = arith.addf %559, %582 : vector<16x16xf32>
      %c71 = arith.constant 71 : index
      %584 = memref.load %arg2[%c71] : memref<98xf32, #tpu.memory_space<smem>>
      %c1_334 = arith.constant 1 : index
      %c3_335 = arith.constant 3 : index
      %c1_336 = arith.constant 1 : index
      %585 = vector.load %arg7[%c1_334, %c3_335, %c1_336] : memref<2x22x22xf32, #tpu.memory_space<vmem>>, vector<1x16x16xf32>
      %586 = vector.shape_cast %585 : vector<1x16x16xf32> to vector<16x16xf32>
      %587 = vector.broadcast %584 : f32 to vector<16x16xf32>
      %588 = arith.mulf %586, %587 : vector<16x16xf32>
      %589 = arith.addf %565, %588 : vector<16x16xf32>
      %c72 = arith.constant 72 : index
      %590 = memref.load %arg2[%c72] : memref<98xf32, #tpu.memory_space<smem>>
      %c1_337 = arith.constant 1 : index
      %c3_338 = arith.constant 3 : index
      %c2_339 = arith.constant 2 : index
      %591 = vector.load %arg7[%c1_337, %c3_338, %c2_339] : memref<2x22x22xf32, #tpu.memory_space<vmem>>, vector<1x16x16xf32>
      %592 = vector.shape_cast %591 : vector<1x16x16xf32> to vector<16x16xf32>
      %593 = vector.broadcast %590 : f32 to vector<16x16xf32>
      %594 = arith.mulf %592, %593 : vector<16x16xf32>
      %595 = arith.addf %571, %594 : vector<16x16xf32>
      %c73 = arith.constant 73 : index
      %596 = memref.load %arg2[%c73] : memref<98xf32, #tpu.memory_space<smem>>
      %c1_340 = arith.constant 1 : index
      %c3_341 = arith.constant 3 : index
      %c3_342 = arith.constant 3 : index
      %597 = vector.load %arg7[%c1_340, %c3_341, %c3_342] : memref<2x22x22xf32, #tpu.memory_space<vmem>>, vector<1x16x16xf32>
      %598 = vector.shape_cast %597 : vector<1x16x16xf32> to vector<16x16xf32>
      %599 = vector.broadcast %596 : f32 to vector<16x16xf32>
      %600 = arith.mulf %598, %599 : vector<16x16xf32>
      %601 = arith.addf %577, %600 : vector<16x16xf32>
      %c74 = arith.constant 74 : index
      %602 = memref.load %arg2[%c74] : memref<98xf32, #tpu.memory_space<smem>>
      %c1_343 = arith.constant 1 : index
      %c3_344 = arith.constant 3 : index
      %c4_345 = arith.constant 4 : index
      %603 = vector.load %arg7[%c1_343, %c3_344, %c4_345] : memref<2x22x22xf32, #tpu.memory_space<vmem>>, vector<1x16x16xf32>
      %604 = vector.shape_cast %603 : vector<1x16x16xf32> to vector<16x16xf32>
      %605 = vector.broadcast %602 : f32 to vector<16x16xf32>
      %606 = arith.mulf %604, %605 : vector<16x16xf32>
      %607 = arith.addf %583, %606 : vector<16x16xf32>
      %c75 = arith.constant 75 : index
      %608 = memref.load %arg2[%c75] : memref<98xf32, #tpu.memory_space<smem>>
      %c1_346 = arith.constant 1 : index
      %c3_347 = arith.constant 3 : index
      %c5_348 = arith.constant 5 : index
      %609 = vector.load %arg7[%c1_346, %c3_347, %c5_348] : memref<2x22x22xf32, #tpu.memory_space<vmem>>, vector<1x16x16xf32>
      %610 = vector.shape_cast %609 : vector<1x16x16xf32> to vector<16x16xf32>
      %611 = vector.broadcast %608 : f32 to vector<16x16xf32>
      %612 = arith.mulf %610, %611 : vector<16x16xf32>
      %613 = arith.addf %589, %612 : vector<16x16xf32>
      %c76 = arith.constant 76 : index
      %614 = memref.load %arg2[%c76] : memref<98xf32, #tpu.memory_space<smem>>
      %c1_349 = arith.constant 1 : index
      %c3_350 = arith.constant 3 : index
      %c6_351 = arith.constant 6 : index
      %615 = vector.load %arg7[%c1_349, %c3_350, %c6_351] : memref<2x22x22xf32, #tpu.memory_space<vmem>>, vector<1x16x16xf32>
      %616 = vector.shape_cast %615 : vector<1x16x16xf32> to vector<16x16xf32>
      %617 = vector.broadcast %614 : f32 to vector<16x16xf32>
      %618 = arith.mulf %616, %617 : vector<16x16xf32>
      %619 = arith.addf %595, %618 : vector<16x16xf32>
      %c77 = arith.constant 77 : index
      %620 = memref.load %arg2[%c77] : memref<98xf32, #tpu.memory_space<smem>>
      %c1_352 = arith.constant 1 : index
      %c4_353 = arith.constant 4 : index
      %c0_354 = arith.constant 0 : index
      %621 = vector.load %arg7[%c1_352, %c4_353, %c0_354] : memref<2x22x22xf32, #tpu.memory_space<vmem>>, vector<1x16x16xf32>
      %622 = vector.shape_cast %621 : vector<1x16x16xf32> to vector<16x16xf32>
      %623 = vector.broadcast %620 : f32 to vector<16x16xf32>
      %624 = arith.mulf %622, %623 : vector<16x16xf32>
      %625 = arith.addf %601, %624 : vector<16x16xf32>
      %c78 = arith.constant 78 : index
      %626 = memref.load %arg2[%c78] : memref<98xf32, #tpu.memory_space<smem>>
      %c1_355 = arith.constant 1 : index
      %c4_356 = arith.constant 4 : index
      %c1_357 = arith.constant 1 : index
      %627 = vector.load %arg7[%c1_355, %c4_356, %c1_357] : memref<2x22x22xf32, #tpu.memory_space<vmem>>, vector<1x16x16xf32>
      %628 = vector.shape_cast %627 : vector<1x16x16xf32> to vector<16x16xf32>
      %629 = vector.broadcast %626 : f32 to vector<16x16xf32>
      %630 = arith.mulf %628, %629 : vector<16x16xf32>
      %631 = arith.addf %607, %630 : vector<16x16xf32>
      %c79 = arith.constant 79 : index
      %632 = memref.load %arg2[%c79] : memref<98xf32, #tpu.memory_space<smem>>
      %c1_358 = arith.constant 1 : index
      %c4_359 = arith.constant 4 : index
      %c2_360 = arith.constant 2 : index
      %633 = vector.load %arg7[%c1_358, %c4_359, %c2_360] : memref<2x22x22xf32, #tpu.memory_space<vmem>>, vector<1x16x16xf32>
      %634 = vector.shape_cast %633 : vector<1x16x16xf32> to vector<16x16xf32>
      %635 = vector.broadcast %632 : f32 to vector<16x16xf32>
      %636 = arith.mulf %634, %635 : vector<16x16xf32>
      %637 = arith.addf %613, %636 : vector<16x16xf32>
      %c80 = arith.constant 80 : index
      %638 = memref.load %arg2[%c80] : memref<98xf32, #tpu.memory_space<smem>>
      %c1_361 = arith.constant 1 : index
      %c4_362 = arith.constant 4 : index
      %c3_363 = arith.constant 3 : index
      %639 = vector.load %arg7[%c1_361, %c4_362, %c3_363] : memref<2x22x22xf32, #tpu.memory_space<vmem>>, vector<1x16x16xf32>
      %640 = vector.shape_cast %639 : vector<1x16x16xf32> to vector<16x16xf32>
      %641 = vector.broadcast %638 : f32 to vector<16x16xf32>
      %642 = arith.mulf %640, %641 : vector<16x16xf32>
      %643 = arith.addf %619, %642 : vector<16x16xf32>
      %c81 = arith.constant 81 : index
      %644 = memref.load %arg2[%c81] : memref<98xf32, #tpu.memory_space<smem>>
      %c1_364 = arith.constant 1 : index
      %c4_365 = arith.constant 4 : index
      %c4_366 = arith.constant 4 : index
      %645 = vector.load %arg7[%c1_364, %c4_365, %c4_366] : memref<2x22x22xf32, #tpu.memory_space<vmem>>, vector<1x16x16xf32>
      %646 = vector.shape_cast %645 : vector<1x16x16xf32> to vector<16x16xf32>
      %647 = vector.broadcast %644 : f32 to vector<16x16xf32>
      %648 = arith.mulf %646, %647 : vector<16x16xf32>
      %649 = arith.addf %625, %648 : vector<16x16xf32>
      %c82 = arith.constant 82 : index
      %650 = memref.load %arg2[%c82] : memref<98xf32, #tpu.memory_space<smem>>
      %c1_367 = arith.constant 1 : index
      %c4_368 = arith.constant 4 : index
      %c5_369 = arith.constant 5 : index
      %651 = vector.load %arg7[%c1_367, %c4_368, %c5_369] : memref<2x22x22xf32, #tpu.memory_space<vmem>>, vector<1x16x16xf32>
      %652 = vector.shape_cast %651 : vector<1x16x16xf32> to vector<16x16xf32>
      %653 = vector.broadcast %650 : f32 to vector<16x16xf32>
      %654 = arith.mulf %652, %653 : vector<16x16xf32>
      %655 = arith.addf %631, %654 : vector<16x16xf32>
      %c83 = arith.constant 83 : index
      %656 = memref.load %arg2[%c83] : memref<98xf32, #tpu.memory_space<smem>>
      %c1_370 = arith.constant 1 : index
      %c4_371 = arith.constant 4 : index
      %c6_372 = arith.constant 6 : index
      %657 = vector.load %arg7[%c1_370, %c4_371, %c6_372] : memref<2x22x22xf32, #tpu.memory_space<vmem>>, vector<1x16x16xf32>
      %658 = vector.shape_cast %657 : vector<1x16x16xf32> to vector<16x16xf32>
      %659 = vector.broadcast %656 : f32 to vector<16x16xf32>
      %660 = arith.mulf %658, %659 : vector<16x16xf32>
      %661 = arith.addf %637, %660 : vector<16x16xf32>
      %c84 = arith.constant 84 : index
      %662 = memref.load %arg2[%c84] : memref<98xf32, #tpu.memory_space<smem>>
      %c1_373 = arith.constant 1 : index
      %c5_374 = arith.constant 5 : index
      %c0_375 = arith.constant 0 : index
      %663 = vector.load %arg7[%c1_373, %c5_374, %c0_375] : memref<2x22x22xf32, #tpu.memory_space<vmem>>, vector<1x16x16xf32>
      %664 = vector.shape_cast %663 : vector<1x16x16xf32> to vector<16x16xf32>
      %665 = vector.broadcast %662 : f32 to vector<16x16xf32>
      %666 = arith.mulf %664, %665 : vector<16x16xf32>
      %667 = arith.addf %643, %666 : vector<16x16xf32>
      %c85 = arith.constant 85 : index
      %668 = memref.load %arg2[%c85] : memref<98xf32, #tpu.memory_space<smem>>
      %c1_376 = arith.constant 1 : index
      %c5_377 = arith.constant 5 : index
      %c1_378 = arith.constant 1 : index
      %669 = vector.load %arg7[%c1_376, %c5_377, %c1_378] : memref<2x22x22xf32, #tpu.memory_space<vmem>>, vector<1x16x16xf32>
      %670 = vector.shape_cast %669 : vector<1x16x16xf32> to vector<16x16xf32>
      %671 = vector.broadcast %668 : f32 to vector<16x16xf32>
      %672 = arith.mulf %670, %671 : vector<16x16xf32>
      %673 = arith.addf %649, %672 : vector<16x16xf32>
      %c86 = arith.constant 86 : index
      %674 = memref.load %arg2[%c86] : memref<98xf32, #tpu.memory_space<smem>>
      %c1_379 = arith.constant 1 : index
      %c5_380 = arith.constant 5 : index
      %c2_381 = arith.constant 2 : index
      %675 = vector.load %arg7[%c1_379, %c5_380, %c2_381] : memref<2x22x22xf32, #tpu.memory_space<vmem>>, vector<1x16x16xf32>
      %676 = vector.shape_cast %675 : vector<1x16x16xf32> to vector<16x16xf32>
      %677 = vector.broadcast %674 : f32 to vector<16x16xf32>
      %678 = arith.mulf %676, %677 : vector<16x16xf32>
      %679 = arith.addf %655, %678 : vector<16x16xf32>
      %c87 = arith.constant 87 : index
      %680 = memref.load %arg2[%c87] : memref<98xf32, #tpu.memory_space<smem>>
      %c1_382 = arith.constant 1 : index
      %c5_383 = arith.constant 5 : index
      %c3_384 = arith.constant 3 : index
      %681 = vector.load %arg7[%c1_382, %c5_383, %c3_384] : memref<2x22x22xf32, #tpu.memory_space<vmem>>, vector<1x16x16xf32>
      %682 = vector.shape_cast %681 : vector<1x16x16xf32> to vector<16x16xf32>
      %683 = vector.broadcast %680 : f32 to vector<16x16xf32>
      %684 = arith.mulf %682, %683 : vector<16x16xf32>
      %685 = arith.addf %661, %684 : vector<16x16xf32>
      %c88 = arith.constant 88 : index
      %686 = memref.load %arg2[%c88] : memref<98xf32, #tpu.memory_space<smem>>
      %c1_385 = arith.constant 1 : index
      %c5_386 = arith.constant 5 : index
      %c4_387 = arith.constant 4 : index
      %687 = vector.load %arg7[%c1_385, %c5_386, %c4_387] : memref<2x22x22xf32, #tpu.memory_space<vmem>>, vector<1x16x16xf32>
      %688 = vector.shape_cast %687 : vector<1x16x16xf32> to vector<16x16xf32>
      %689 = vector.broadcast %686 : f32 to vector<16x16xf32>
      %690 = arith.mulf %688, %689 : vector<16x16xf32>
      %691 = arith.addf %667, %690 : vector<16x16xf32>
      %c89 = arith.constant 89 : index
      %692 = memref.load %arg2[%c89] : memref<98xf32, #tpu.memory_space<smem>>
      %c1_388 = arith.constant 1 : index
      %c5_389 = arith.constant 5 : index
      %c5_390 = arith.constant 5 : index
      %693 = vector.load %arg7[%c1_388, %c5_389, %c5_390] : memref<2x22x22xf32, #tpu.memory_space<vmem>>, vector<1x16x16xf32>
      %694 = vector.shape_cast %693 : vector<1x16x16xf32> to vector<16x16xf32>
      %695 = vector.broadcast %692 : f32 to vector<16x16xf32>
      %696 = arith.mulf %694, %695 : vector<16x16xf32>
      %697 = arith.addf %673, %696 : vector<16x16xf32>
      %c90 = arith.constant 90 : index
      %698 = memref.load %arg2[%c90] : memref<98xf32, #tpu.memory_space<smem>>
      %c1_391 = arith.constant 1 : index
      %c5_392 = arith.constant 5 : index
      %c6_393 = arith.constant 6 : index
      %699 = vector.load %arg7[%c1_391, %c5_392, %c6_393] : memref<2x22x22xf32, #tpu.memory_space<vmem>>, vector<1x16x16xf32>
      %700 = vector.shape_cast %699 : vector<1x16x16xf32> to vector<16x16xf32>
      %701 = vector.broadcast %698 : f32 to vector<16x16xf32>
      %702 = arith.mulf %700, %701 : vector<16x16xf32>
      %703 = arith.addf %679, %702 : vector<16x16xf32>
      %c91 = arith.constant 91 : index
      %704 = memref.load %arg2[%c91] : memref<98xf32, #tpu.memory_space<smem>>
      %c1_394 = arith.constant 1 : index
      %c6_395 = arith.constant 6 : index
      %c0_396 = arith.constant 0 : index
      %705 = vector.load %arg7[%c1_394, %c6_395, %c0_396] : memref<2x22x22xf32, #tpu.memory_space<vmem>>, vector<1x16x16xf32>
      %706 = vector.shape_cast %705 : vector<1x16x16xf32> to vector<16x16xf32>
      %707 = vector.broadcast %704 : f32 to vector<16x16xf32>
      %708 = arith.mulf %706, %707 : vector<16x16xf32>
      %709 = arith.addf %685, %708 : vector<16x16xf32>
      %c92 = arith.constant 92 : index
      %710 = memref.load %arg2[%c92] : memref<98xf32, #tpu.memory_space<smem>>
      %c1_397 = arith.constant 1 : index
      %c6_398 = arith.constant 6 : index
      %c1_399 = arith.constant 1 : index
      %711 = vector.load %arg7[%c1_397, %c6_398, %c1_399] : memref<2x22x22xf32, #tpu.memory_space<vmem>>, vector<1x16x16xf32>
      %712 = vector.shape_cast %711 : vector<1x16x16xf32> to vector<16x16xf32>
      %713 = vector.broadcast %710 : f32 to vector<16x16xf32>
      %714 = arith.mulf %712, %713 : vector<16x16xf32>
      %715 = arith.addf %691, %714 : vector<16x16xf32>
      %c93 = arith.constant 93 : index
      %716 = memref.load %arg2[%c93] : memref<98xf32, #tpu.memory_space<smem>>
      %c1_400 = arith.constant 1 : index
      %c6_401 = arith.constant 6 : index
      %c2_402 = arith.constant 2 : index
      %717 = vector.load %arg7[%c1_400, %c6_401, %c2_402] : memref<2x22x22xf32, #tpu.memory_space<vmem>>, vector<1x16x16xf32>
      %718 = vector.shape_cast %717 : vector<1x16x16xf32> to vector<16x16xf32>
      %719 = vector.broadcast %716 : f32 to vector<16x16xf32>
      %720 = arith.mulf %718, %719 : vector<16x16xf32>
      %721 = arith.addf %697, %720 : vector<16x16xf32>
      %c94 = arith.constant 94 : index
      %722 = memref.load %arg2[%c94] : memref<98xf32, #tpu.memory_space<smem>>
      %c1_403 = arith.constant 1 : index
      %c6_404 = arith.constant 6 : index
      %c3_405 = arith.constant 3 : index
      %723 = vector.load %arg7[%c1_403, %c6_404, %c3_405] : memref<2x22x22xf32, #tpu.memory_space<vmem>>, vector<1x16x16xf32>
      %724 = vector.shape_cast %723 : vector<1x16x16xf32> to vector<16x16xf32>
      %725 = vector.broadcast %722 : f32 to vector<16x16xf32>
      %726 = arith.mulf %724, %725 : vector<16x16xf32>
      %727 = arith.addf %703, %726 : vector<16x16xf32>
      %c95 = arith.constant 95 : index
      %728 = memref.load %arg2[%c95] : memref<98xf32, #tpu.memory_space<smem>>
      %c1_406 = arith.constant 1 : index
      %c6_407 = arith.constant 6 : index
      %c4_408 = arith.constant 4 : index
      %729 = vector.load %arg7[%c1_406, %c6_407, %c4_408] : memref<2x22x22xf32, #tpu.memory_space<vmem>>, vector<1x16x16xf32>
      %730 = vector.shape_cast %729 : vector<1x16x16xf32> to vector<16x16xf32>
      %731 = vector.broadcast %728 : f32 to vector<16x16xf32>
      %732 = arith.mulf %730, %731 : vector<16x16xf32>
      %733 = arith.addf %709, %732 : vector<16x16xf32>
      %c96 = arith.constant 96 : index
      %734 = memref.load %arg2[%c96] : memref<98xf32, #tpu.memory_space<smem>>
      %c1_409 = arith.constant 1 : index
      %c6_410 = arith.constant 6 : index
      %c5_411 = arith.constant 5 : index
      %735 = vector.load %arg7[%c1_409, %c6_410, %c5_411] : memref<2x22x22xf32, #tpu.memory_space<vmem>>, vector<1x16x16xf32>
      %736 = vector.shape_cast %735 : vector<1x16x16xf32> to vector<16x16xf32>
      %737 = vector.broadcast %734 : f32 to vector<16x16xf32>
      %738 = arith.mulf %736, %737 : vector<16x16xf32>
      %739 = arith.addf %715, %738 : vector<16x16xf32>
      %c97 = arith.constant 97 : index
      %740 = memref.load %arg2[%c97] : memref<98xf32, #tpu.memory_space<smem>>
      %c1_412 = arith.constant 1 : index
      %c6_413 = arith.constant 6 : index
      %c6_414 = arith.constant 6 : index
      %741 = vector.load %arg7[%c1_412, %c6_413, %c6_414] : memref<2x22x22xf32, #tpu.memory_space<vmem>>, vector<1x16x16xf32>
      %742 = vector.shape_cast %741 : vector<1x16x16xf32> to vector<16x16xf32>
      %743 = vector.broadcast %740 : f32 to vector<16x16xf32>
      %744 = arith.mulf %742, %743 : vector<16x16xf32>
      %745 = arith.addf %721, %744 : vector<16x16xf32>
      %746 = arith.addf %739, %745 : vector<16x16xf32>
      %747 = arith.addf %727, %733 : vector<16x16xf32>
      %748 = arith.addf %746, %747 : vector<16x16xf32>
      %749 = arith.negf %748 : vector<16x16xf32>
      %750 = math.exp %749 : vector<16x16xf32>
      %cst_415 = arith.constant 1.000000e+00 : f32
      %751 = vector.broadcast %cst_415 : f32 to vector<16x16xf32>
      %752 = arith.addf %751, %750 : vector<16x16xf32>
      %753 = arith.divf %751, %752 : vector<16x16xf32>
      %c0_416 = arith.constant 0 : index
      %c0_417 = arith.constant 0 : index
      %c0_418 = arith.constant 0 : index
      %c0_419 = arith.constant 0 : index
      %754 = vector.load %arg4[%c0_416, %c0_417, %c0_418, %c0_419] : memref<1x1x16x16xf32, #tpu.memory_space<vmem>>, vector<1x1x16x16xf32>
      %755 = vector.shape_cast %754 : vector<1x1x16x16xf32> to vector<16x16xf32>
      %756 = vector.shape_cast %753 : vector<16x16xf32> to vector<1x1x16x16xf32>
      tpu.vector_store %arg4[%c0_416, %c0_417, %c0_418, %c0_419], %756 {strides = array<i32>} : memref<1x1x16x16xf32, #tpu.memory_space<vmem>>, vector<1x1x16x16xf32>,
    } else {
    }
    return
  }
  func.func @transform_0(%arg0: i32, %arg1: i32) -> i32 {
    %c0_i32 = arith.constant 0 : i32
    %c0_i32_0 = arith.constant 0 : i32
    return %c0_i32 : i32
  }
  func.func @transform_1(%arg0: i32, %arg1: i32) -> (i32, i32, i32) {
    %c0_i32 = arith.constant 0 : i32
    %c0_i32_0 = arith.constant 0 : i32
    return %arg0, %arg1, %c0_i32 : i32, i32, i32
  }
  func.func @transform_2(%arg0: i32, %arg1: i32) -> (i32, i32, i32, i32) {
    %c0_i32 = arith.constant 0 : i32
    %c0_i32_0 = arith.constant 0 : i32
    %c0_i32_1 = arith.constant 0 : i32
    %c0_i32_2 = arith.constant 0 : i32
    return %arg0, %c0_i32, %c0_i32_0, %c0_i32_1 : i32, i32, i32, i32
  }
}

</mosaic_0001>

<bundles_post_ra>
// kernel: tpu_custom_call.1
= control target key start
LH: loop header
LB: loop body
LE: loop exit
PB: predicated region body
PF: predicated region fallthrough
CT: control target
= control target key end

     0   :  { %7 = vsyncpa [#allocation8], 0  ;;  %s3207_s0 = inlined_call_operand.hbm [shape: f32[98], index: 0, kind: input, shape index: {}]   ;;  %s3208_s1 = inlined_call_operand.hbm [shape: f32[2,4,256], index: 1, kind: input, shape index: {}]   ;;  %s3209_s2 = inlined_call_operand.hbm [shape: f32[2,1,16,16], index: 2, kind: output, shape index: {}]  }
   0x1   :  { %8 = vsyncpa [#allocation6], 0 }
   0x2   :  { %10 = vsyncpa [#allocation6 + $0x1], 0 }
   0x3   :  { %11 = vsyncpa [#allocation7], 0 }
   0x4   :  { %13 = vsyncpa [#allocation7 + $0x1], 0  ;;  %s2237_s9 = smov 0   ;;  %s2239_s10 = smov 0  }
   0x5   :  { %s2241_s11 = smov 0   ;;  %s2243_s12 = smov 0  }
   0x6   :  { %s2245_s13 = smov 0   ;;  %s2247_s14 = smov 0  }
   0x7 LB: > { %s1851_s15 = sadd.s32 4294967295, %s2200_s14   ;;  %s1852_s16 = sadd.s32 4294967294, %s2200_s14   ;;  %s2200_s14 = sphi %s2247_s14, %s19_s14   ;;  %s2196_s13 = sphi %s2245_s13, %s3221_s13   ;;  %s2192_s12 = sphi %s2243_s12, %s3220_s12   ;;  %s2188_s11 = sphi %s2241_s11, %s3219_s11   ;;  %s2184_s10 = sphi %s2239_s10, %s3218_s10   ;;  %s2180_s9 = sphi %s2237_s9, %s3217_s9  }
   0x8   : > { %p74_p0 = scmp.ne.s32.totalorder %s2184_s10, %s2180_s9  ;;  %p2271_p1 = scmp.eq.s32.totalorder %s1851_s15, 0 }
   0x9   : > { %p2275_p2 = scmp.eq.s32.totalorder %s1851_s15, 1  ;;  %p104_p3 = scmp.eq.s32.totalorder %s1852_s16, 1 }
   0xa   : > { %p2281_p4 = por %p2271_p1, %p74_p0  ;;  %p1853_p5 = scmp.ge.s32.totalorder %s2200_s14, 1 }
   0xb   : > { %p2286_p6 = por %p104_p3, %p74_p0  ;;  %p111_p7 = scmp.lt.s32.totalorder %s2200_s14, 3 }
   0xc   : > { %s123_s23 = sshll.u32 %s3207_s0, 4  ;;  %s31_s25 = sadd.s32 1, %s2196_s13  ;;  %s124_s23 = int_to_ptr.hbm [resolvable:$true] %s123_s23 }
   0xd   : > { %p2294_p8 = pnand %p1853_p5, %p111_p7  ;;  %s61_s26 = sadd.s32 1, %s2188_s11 }
   0xe   : > { %p33_p12 = scmp.ge.s32.totalorder %s31_s25, 2  ;;  %s2202_s27 = smov [#allocation5]  }
   0xf   : > { %p1977_p10 = pneg %p2294_p8  ;;  %p68_p13 = scmp.ne.s32.totalorder %s2188_s11, %s2184_s10 }
  0x10   : > { %s3223_s25 = smov (%p33_p12, %s31_s25), 0  ;;  %p69_p0 = scmp.eq.s32.totalorder %s2200_s14, 0 }
  0x11   : > { %p1978_p11 = pnand %p1977_p10, %p2271_p1  ;;  %s56_s28 = ssub.s32 %s2196_s13, %s3223_s25 }
  0x12   : > { %p1990_p3 = scmp.lt.s32.totalorder %s2200_s14, 2  ;;  %p59_p5 = scmp.eq.s32.totalorder %s56_s28, 0 }
  0x13   : > { %1980 = dma.hbm_to_smem (!%p1978_p11), %s124_s23, 16, %s2202_s27, [#allocation8]  }
  0x14   : > { %p70_p7 = por %p69_p0, %p68_p13  ;;  %p2315_p9 = por %p2275_p2, %p68_p13 }
  0x15   : > { %s134_s30 = sand.u32 1, %s2188_s11   ;;  %s1967_s5 = sshll.u32 %s2196_s13, 3 }
  0x16   : > { %s2321_s3 = scalar_select %p59_p5, %s2188_s11, %s61_s26  }
  0x17   : > { %s1856_s4 = sshll.u32 %s134_s30, 3  ;;  %s145_s8 = scalar_lea.hbm %s3208_s1, %s1967_s5 }
  0x18   : > { %s138_s15 = scalar_lea.vmem [#allocation9], %s1856_s4  ;;  %s147_s21 = sshll.u32 %s145_s8, 4  ;;  %s148_s21 = int_to_ptr.hbm [resolvable:$true] %s147_s21 }
  0x19   : > { %s149_s16 = sshll.u32 %s138_s15, 4  ;;  %p1982_p10 = pnand %p1990_p3, %p70_p7  ;;  %s150_s16 = int_to_ptr.vmem [resolvable:$true] %s149_s16 }
  0x1a   : > { %s135_s18 = scalar_lea.sflag [#allocation6], %s134_s30  ;;  %158 = sbr.rel (%p2294_p8) target bundleno = 948 (0x3b4), region = 28 }
  0x1b   : > { %1984 = dma.hbm_to_vmem [thread:$0]  (!%p1982_p10), %s148_s21, 128, %s150_s16, %s135_s18  }
  0x1f   : > { %2167 = dma.done.wait (%p2271_p1), [#allocation8], 16  }
  0x20   : > { %2169 = vsyncadd (%p2271_p1), [#allocation8], 4294967280  ;;  %s2336_s22 = sand.u32 1, %s2184_s10  }
  0x21   : > { %s1861_s23 = sshll.u32 %s2336_s22, 3  ;;  %s166_s26 = scalar_lea.sflag [#allocation6], %s2336_s22 }
  0x22   : > { %s169_s27 = scalar_lea.vmem [#allocation9], %s1861_s23 }
  0x23   : > { %2171 = dma.done.wait (%p2281_p4), %s166_s26, 128  }
  0x24   : > { %2173 = vsyncadd (%p2281_p4), %s166_s26, 4294967168 }
  0x25   : > { %175 = sfence }
  0x26   : > { %v203_v0 = vld [vmem:[%s169_s27] sm:$0xff]  ;;  %vm217_vm0 = vcmask 1043456   ;;  %s2203_s17 = smov 115   ;;  %s2204_s19 = smov 3   ;;  %vm254_vm1 = vcmask 179200   ;;  %v2211_v35 = vmov 0.0  }
  0x27   : > { %212 = vst [vmem:[#allocation1] ss:$2 sm:$0xff] %v203_v0  ;;  %s2205_s24 = smov 99   ;;  %s2206_s28 = smov 51   ;;  %vm266_vm2 = vcmask 147480   ;;  %vm257_vm3 = vcmask 177152  }
  0x28   : > { %s2207_s30 = smov 83   ;;  %s2208_s4 = smov 67   ;;  %255 = vst.msk [vmem:[#allocation4] sm:$0xff] %vm254_vm1, %v2211_v35  ;;  %vm1736_vm7 = vcmask 130048  }
  0x29   : > { %s2209_s5 = smov 35   ;;  %s2210_s6 = smov 19   ;;  %256 = vst.msk [vmem:[#allocation4 + $0x8] sm:$0xff] %vm254_vm1, %v2211_v35 }
  0x2a   : > { %259 = vst.msk [vmem:[#allocation4 + $0x18] sm:$0xff] %vm254_vm1, %v2211_v35  ;;  %s2378_s7 = sld [smem:[#allocation5 + $0x5]]  ;;  %s2212_s15 = smov 124  }
  0x2b   : > { %260 = vst.msk [vmem:[#allocation4 + $0x20] sm:$0xff] %vm254_vm1, %v2211_v35  ;;  %s2380_s8 = sld [smem:[#allocation5 + $0x4]]  ;;  %s2213_s26 = smov 127  }
  0x2c   : > { %258 = vst.msk [vmem:[#allocation4 + $0x10] sm:$0x3f] %vm257_vm3, %v2211_v35  ;;  %s1868_s16 = sld [smem:[#allocation5 + $0x6]] }
  0x2d   : > { %261 = vst.msk [vmem:[#allocation4 + $0x28] sm:$0x3f] %vm257_vm3, %v2211_v35  ;;  %s2412_s21 = sld [smem:[#allocation5 + $0x8]] }
  0x2e   : > { %v213_v1 = vld.sshfl [vmem:[#allocation1] sm:$0xff pattern:$0x75316420]  ;;  %v214_v2 = vld.sshfl [vmem:[#allocation1 + $0x8] sm:$0xff pattern:$0x75316420] }
  0x2f   : > { %v218_v3 = vsel %vm217_vm0, %v213_v1, 0.0  ;;  %235 = vst [vmem:[#allocation1] ss:$2 sm:$0xff] %v203_v0  ;;  %v225_v18 = vsel %vm217_vm0, %v214_v2, 0.0  ;;  %s2414_s18 = sld [smem:[#allocation5 + $0x7]] }
  0x30   : > { %v219_v4 = vrot.slane %v218_v3, 4  ;;  %v226_v20 = vrot.slane %v225_v18, 4  ;;  %v437_v45 = vstv %s2378_s7  ;;  %s1871_s23 = sld [smem:[#allocation5 + $0x9]] }
  0x31   : > { %v423_v46 = vstv %s2380_s8  ;;  %s1873_s27 = sld [smem:[#allocation5 + $0xb]] }
  0x32   : > { %v220_v5 = vadd.f32 %v219_v4, %v218_v3  ;;  %v227_v22 = vadd.f32 %v226_v20, %v225_v18  ;;  %s1879_s7 = sld [smem:[#allocation5 + $0x11]] }
  0x33   : > { %s1878_s8 = sld [smem:[#allocation5 + $0x10]] }
  0x34   : > { %v221_v6 = vrot.slane %v220_v5, 2  ;;  %v228_v25 = vrot.slane %v227_v22, 2 }
  0x36   : > { %v222_v7 = vadd.f32 %v221_v6, %v220_v5  ;;  %v236_v8 = vld.sshfl [vmem:[#allocation1] sm:$0xff pattern:$0x75316420]  ;;  %v237_v21 = vld.sshfl [vmem:[#allocation1 + $0x8] sm:$0xff pattern:$0x75316420]  ;;  %v229_v27 = vadd.f32 %v228_v25, %v227_v22 }
  0x37   : > { %v240_v9 = vsel %vm217_vm0, %v236_v8, -inf  ;;  %v247_v23 = vsel %vm217_vm0, %v237_v21, -inf  ;;  %v451_v8 = vstv %s1868_s16  ;;  %v495_v21 = vstv %s1871_s23  ;;  %s1880_s16 = sld [smem:[#allocation5 + $0x12]] }
  0x38   : > { %v223_v10 = vrot.slane %v222_v7, 1  ;;  %v241_v11 = vrot.slane %v240_v9, 4  ;;  %v248_v24 = vrot.slane %v247_v23, 4  ;;  %v230_v29 = vrot.slane %v229_v27, 1  ;;  %s1881_s23 = sld [smem:[#allocation5 + $0x13]] }
  0x39   : > { %v523_v25 = vstv %s1873_s27  ;;  %s1883_s27 = sld [smem:[#allocation5 + $0x15]] }
  0x3a   : > { %v224_v12 = vadd.f32 %v223_v10, %v222_v7  ;;  %v242_v13 = vmax.f32 %v240_v9, %v241_v11  ;;  %v249_v26 = vmax.f32 %v247_v23, %v248_v24  ;;  %v231_v31 = vadd.f32 %v230_v29, %v229_v27 }
  0x3c   : > { %v232_v14 = vmul.f32 0.25, %v224_v12  ;;  %v243_v15 = vrot.slane %v242_v13, 2  ;;  %v250_v28 = vrot.slane %v249_v26, 2  ;;  %v233_v33 = vmul.f32 0.25, %v231_v31 }
  0x3e   : > { %274 = vrot.lane.b32.xlu1 %v232_v14, %s2203_s17  ;;  %263 = vrot.lane.b32.xlu0 %v232_v14, %s2204_s19  ;;  %v244_v16 = vmax.f32 %v242_v13, %v243_v15  ;;  %v251_v30 = vmax.f32 %v249_v26, %v250_v28  ;;  %v481_v13 = vstv %s2412_s21  ;;  %s2216_s21 = smov 126  }
  0x3f   : > { %282 = vrot.lane.b32.xlu2 %v232_v14, %s2205_s24 }
  0x40   : > { %v245_v17 = vrot.slane %v244_v16, 1  ;;  %v252_v32 = vrot.slane %v251_v30, 1 }
  0x42   : > { %v246_v19 = vmax.f32 %v244_v16, %v245_v17  ;;  %v253_v34 = vmax.f32 %v251_v30, %v252_v32 }
  0x46   : > { %306 = vrot.lane.b32.xlu1 %v232_v14, %s2206_s28  ;;  %290 = vrot.lane.b32.xlu0 %v232_v14, %s2207_s30 }
  0x47   : > { %298 = vrot.lane.b32.xlu2 %v232_v14, %s2208_s4 }
  0x4e   : > { %278 = vrot.lane.b32.xlu1 %v246_v19, %s2203_s17  ;;  %269 = vrot.lane.b32.xlu0 %v246_v19, %s2204_s19 }
  0x4f   : > { %286 = vrot.lane.b32.xlu2 %v246_v19, %s2205_s24 }
  0x56   : > { %294 = vrot.lane.b32.xlu1 %v246_v19, %s2207_s30  ;;  %302 = vrot.lane.b32.xlu0 %v246_v19, %s2208_s4 }
  0x57   : > { %310 = vrot.lane.b32.xlu2 %v246_v19, %s2206_s28 }
  0x5e   : > { %318 = vrot.lane.b32.xlu1 %v246_v19, %s2209_s5  ;;  %314 = vrot.lane.b32.xlu0 %v232_v14, %s2209_s5 }
  0x5f   : > { %322 = vrot.lane.b32.xlu2 %v232_v14, %s2210_s6  ;;  %v467_v14 = vstv %s2414_s18  ;;  %s1882_s18 = sld [smem:[#allocation5 + $0x14]] }
  0x66   : > { %331 = vrot.lane.b32.xlu1 %v233_v33, %s2204_s19  ;;  %326 = vrot.lane.b32.xlu0 %v246_v19, %s2210_s6 }
  0x67   : > { %336 = vrot.lane.b32.xlu2 %v253_v34, %s2204_s19 }
  0x6e   : > { %344 = vrot.lane.b32.xlu1 %v253_v34, %s2203_s17  ;;  %340 = vrot.lane.b32.xlu0 %v233_v33, %s2203_s17  ;;  %s1872_s17 = sld [smem:[#allocation5 + $0xa]] }
  0x6f   : > { %348 = vrot.lane.b32.xlu2 %v233_v33, %s2205_s24 }
  0x74   : > { %v509_v26 = vstv %s1872_s17  ;;  %s2217_s17 = smov 122  }
  0x76   : > { %356 = vrot.lane.b32.xlu1 %v233_v33, %s2207_s30  ;;  %352 = vrot.lane.b32.xlu0 %v253_v34, %s2205_s24  ;;  %s1874_s24 = sld [smem:[#allocation5 + $0xc]] }
  0x77   : > { %360 = vrot.lane.b32.xlu2 %v253_v34, %s2207_s30  ;;  %s1876_s30 = sld [smem:[#allocation5 + $0xe]] }
  0x7c   : > { %v537_v30 = vstv %s1874_s24  ;;  %s1884_s24 = sld [smem:[#allocation5 + $0x16]] }
  0x7d   : > { %v567_v35 = vstv %s1876_s30  ;;  %s2218_s30 = smov 1  }
  0x7e   : > { %368 = vrot.lane.b32.xlu1 %v253_v34, %s2208_s4  ;;  %364 = vrot.lane.b32.xlu0 %v233_v33, %s2208_s4  ;;  %s2214_s4 = smov 123  }
  0x7f   : > { %372 = vrot.lane.b32.xlu2 %v233_v33, %s2206_s28 }
  0x86   : > { %380 = vrot.lane.b32.xlu1 %v233_v33, %s2209_s5  ;;  %376 = vrot.lane.b32.xlu0 %v253_v34, %s2206_s28  ;;  %s1875_s28 = sld [smem:[#allocation5 + $0xd]] }
  0x87   : > { %384 = vrot.lane.b32.xlu2 %v253_v34, %s2209_s5  ;;  %s1877_s5 = sld [smem:[#allocation5 + $0xf]] }
  0x8e   : > { %392 = vrot.lane.b32.xlu1 %v253_v34, %s2210_s6  ;;  %388 = vrot.lane.b32.xlu0 %v233_v33, %s2210_s6  ;;  %s2215_s6 = smov 2  }
  0x99   : > { %v283_v36 = vpop.permute.xlu2 %282 }
  0x9a   : > { %285 = vst.msk [vmem:[#allocation4 + $0x5] sm:$0x1] %vm266_vm2, %v283_v36  ;;  %v551_v36 = vstv %s1875_s28  ;;  %s1885_s28 = sld [smem:[#allocation5 + $0x17]] }
  0xa1   : > { %v299_v37 = vpop.permute.xlu2 %298 }
  0xa2   : > { %301 = vst.msk [vmem:[#allocation4 + $0x7] sm:$0x1] %vm266_vm2, %v299_v37 }
  0xa9   : > { %v287_v38 = vpop.permute.xlu2 %286 }
  0xaa   : > { %289 = vst.msk [vmem:[#allocation4 + $0x1d] sm:$0x1] %vm266_vm2, %v287_v38 }
  0xb0   : > { %v275_v39 = vpop.permute.xlu1 %274  ;;  %v264_v40 = vpop.permute.xlu0 %263 }
  0xb1   : > { %277 = vst.msk [vmem:[#allocation4 + $0x4] sm:$0x1] %vm266_vm2, %v275_v39  ;;  %v311_v41 = vpop.permute.xlu2 %310 }
  0xb2   : > { %267 = vst.msk [vmem:[#allocation4 + $0x3] sm:$0x1] %vm266_vm2, %v264_v40 }
  0xb3   : > { %313 = vst.msk [vmem:[#allocation4 + $0x20] sm:$0x1] %vm266_vm2, %v311_v41  ;;  %v581_v41 = vstv %s1877_s5  ;;  %s1886_s5 = sld [smem:[#allocation5 + $0x18]] }
  0xb8   : > { %v307_v42 = vpop.permute.xlu1 %306  ;;  %v291_v43 = vpop.permute.xlu0 %290 }
  0xb9   : > { %309 = vst.msk [vmem:[#allocation4 + $0x8] sm:$0x1] %vm266_vm2, %v307_v42  ;;  %v323_v44 = vpop.permute.xlu2 %322 }
  0xba   : > { %293 = vst.msk [vmem:[#allocation4 + $0x6] sm:$0x1] %vm266_vm2, %v291_v43 }
  0xbb   : > { %325 = vst.msk [vmem:[#allocation4 + $0xa] sm:$0x1] %vm266_vm2, %v323_v44 }
  0xc0   : > { %v279_v47 = vpop.permute.xlu1 %278  ;;  %v270_v48 = vpop.permute.xlu0 %269 }
  0xc1   : > { %281 = vst.msk [vmem:[#allocation4 + $0x1c] sm:$0x1] %vm266_vm2, %v279_v47  ;;  %v2388_v49 = vld [vmem:[#allocation4] sm:$0xff]  ;;  %v337_v50 = vpop.permute.xlu2 %336 }
  0xc2   : > { %273 = vst.msk [vmem:[#allocation4 + $0x1b] sm:$0x1] %vm266_vm2, %v270_v48  ;;  %v438_v51 = vmul.f32 %v437_v45, %v2388_v49  ;;  %v424_v52 = vmul.f32 %v423_v46, %v2388_v49  ;;  %v465_v12 = vld [vmem:[#allocation4 + $0x1] sm:$0xff]  ;;  %v452_v19 = vmul.f32 %v451_v8, %v2388_v49 }
  0xc3   : > { %339 = vst.msk [vmem:[#allocation4 + $0x23] sm:$0x1] %vm266_vm2, %v337_v50  ;;  %v482_v17 = vmul.f32 %v481_v13, %v465_v12  ;;  %v468_v18 = vmul.f32 %v467_v14, %v465_v12  ;;  %v524_v27 = vmul.f32 %v523_v25, %v465_v12  ;;  %v510_v28 = vmul.f32 %v509_v26, %v465_v12 }
  0xc4   : > { %442 = vrot.lane.b32.xlu1 %v438_v51, %s2212_s15  ;;  %428 = vrot.lane.b32.xlu2 %v424_v52, %s2212_s15  ;;  %v496_v29 = vmul.f32 %v495_v21, %v465_v12  ;;  %v552_v38 = vmul.f32 %v551_v36, %v465_v12  ;;  %v538_v39 = vmul.f32 %v537_v30, %v465_v12  ;;  %v623_v51 = vstv %s1880_s16  ;;  %s2219_s16 = smov 125  }
  0xc8   : > { %v295_v53 = vpop.permute.xlu1 %294  ;;  %v303_v54 = vpop.permute.xlu0 %302 }
  0xc9   : > { %297 = vst.msk [vmem:[#allocation4 + $0x1e] sm:$0x1] %vm266_vm2, %v295_v53  ;;  %v349_v55 = vpop.permute.xlu2 %348 }
  0xca   : > { %305 = vst.msk [vmem:[#allocation4 + $0x1f] sm:$0x1] %vm266_vm2, %v303_v54 }
  0xcb   : > { %351 = vst.msk [vmem:[#allocation4 + $0xd] sm:$0x1] %vm266_vm2, %v349_v55  ;;  %v651_v55 = vstv %s1882_s18  ;;  %s1889_s18 = sld [smem:[#allocation5 + $0x1b]] }
  0xd0   : > { %v319_v56 = vpop.permute.xlu1 %318  ;;  %v315_v57 = vpop.permute.xlu0 %314 }
  0xd1   : > { %321 = vst.msk [vmem:[#allocation4 + $0x21] sm:$0x1] %vm266_vm2, %v319_v56  ;;  %v361_v58 = vpop.permute.xlu2 %360  ;;  %v637_v56 = vstv %s1881_s23  ;;  %s2480_s23 = sld [smem:[#allocation5 + $0x20]] }
  0xd2   : > { %317 = vst.msk [vmem:[#allocation4 + $0x9] sm:$0x1] %vm266_vm2, %v315_v57 }
  0xd3   : > { %363 = vst.msk [vmem:[#allocation4 + $0x26] sm:$0x1] %vm266_vm2, %v361_v58 }
  0xd8   : > { %v332_v59 = vpop.permute.xlu1 %331  ;;  %v327_v60 = vpop.permute.xlu0 %326 }
  0xd9   : > { %334 = vst.msk [vmem:[#allocation4 + $0xb] sm:$0x1] %vm266_vm2, %v332_v59  ;;  %v373_v61 = vpop.permute.xlu2 %372  ;;  %v565_v34 = vld [vmem:[#allocation4 + $0x2] sm:$0xff] }
  0xda   : > { %329 = vst.msk [vmem:[#allocation4 + $0x22] sm:$0x1] %vm266_vm2, %v327_v60  ;;  %v568_v37 = vmul.f32 %v567_v35, %v565_v34  ;;  %v582_v50 = vmul.f32 %v581_v41, %v565_v34  ;;  %v652_v57 = vmul.f32 %v651_v55, %v565_v34  ;;  %v638_v58 = vmul.f32 %v637_v56, %v565_v34 }
  0xdb   : > { %375 = vst.msk [vmem:[#allocation4 + $0x10] sm:$0x1] %vm266_vm2, %v373_v61  ;;  %v624_v59 = vmul.f32 %v623_v51, %v565_v34  ;;  %v667_v61 = vstv %s1883_s27  ;;  %s1895_s27 = sld [smem:[#allocation5 + $0x21]] }
  0xe0   : > { %v345_v62 = vpop.permute.xlu1 %344  ;;  %v341_v63 = vpop.permute.xlu0 %340 }
  0xe1   : > { %347 = vst.msk [vmem:[#allocation4 + $0x24] sm:$0x1] %vm266_vm2, %v345_v62  ;;  %v385_v0 = vpop.permute.xlu2 %384 }
  0xe2   : > { %343 = vst.msk [vmem:[#allocation4 + $0xc] sm:$0x1] %vm266_vm2, %v341_v63 }
  0xe3   : > { %387 = vst.msk [vmem:[#allocation4 + $0x29] sm:$0x1] %vm266_vm2, %v385_v0 }
  0xe8   : > { %v357_v1 = vpop.permute.xlu1 %356  ;;  %v353_v2 = vpop.permute.xlu0 %352 }
  0xe9   : > { %359 = vst.msk [vmem:[#allocation4 + $0xe] sm:$0x1] %vm266_vm2, %v357_v1 }
  0xea   : > { %355 = vst.msk [vmem:[#allocation4 + $0x25] sm:$0x1] %vm266_vm2, %v353_v2  ;;  %v665_v2 = vld [vmem:[#allocation4 + $0x3] sm:$0xff] }
  0xf0   : > { %v369_v3 = vpop.permute.xlu1 %368  ;;  %v365_v4 = vpop.permute.xlu0 %364 }
  0xf1   : > { %371 = vst.msk [vmem:[#allocation4 + $0x27] sm:$0x1] %vm266_vm2, %v369_v3  ;;  %v681_v3 = vstv %s1884_s24  ;;  %s1896_s24 = sld [smem:[#allocation5 + $0x22]] }
  0xf2   : > { %367 = vst.msk [vmem:[#allocation4 + $0xf] sm:$0x1] %vm266_vm2, %v365_v4  ;;  %v695_v4 = vstv %s1885_s28  ;;  %s2501_s28 = sld [smem:[#allocation5 + $0x23]] }
  0xf8   : > { %v381_v5 = vpop.permute.xlu1 %380  ;;  %v377_v6 = vpop.permute.xlu0 %376 }
  0xf9   : > { %383 = vst.msk [vmem:[#allocation4 + $0x11] sm:$0x1] %vm266_vm2, %v381_v5  ;;  %v2417_v7 = vld [vmem:[#allocation4 + $0x8] sm:$0xff]  ;;  %v682_v5 = vmul.f32 %v681_v3, %v665_v2 }
  0xfa   : > { %379 = vst.msk [vmem:[#allocation4 + $0x28] sm:$0x1] %vm266_vm2, %v377_v6  ;;  %v453_v9 = vmul.f32 %v451_v8, %v2417_v7  ;;  %v439_v10 = vmul.f32 %v437_v45, %v2417_v7  ;;  %v425_v11 = vmul.f32 %v423_v46, %v2417_v7  ;;  %v466_v20 = vld [vmem:[#allocation4 + $0x9] sm:$0xff]  ;;  %v609_v45 = vstv %s1879_s7  ;;  %s1887_s7 = sld [smem:[#allocation5 + $0x19]] }
  0xfb   : > { %v497_v22 = vmul.f32 %v495_v21, %v466_v20  ;;  %v483_v23 = vmul.f32 %v481_v13, %v466_v20  ;;  %v469_v24 = vmul.f32 %v467_v14, %v466_v20  ;;  %v539_v31 = vmul.f32 %v537_v30, %v466_v20 }
  0xfc   : > { %458 = vrot.lane.b32.xlu1 %v453_v9, %s2212_s15  ;;  %444 = vrot.lane.b32.xlu2 %v439_v10, %s2212_s15  ;;  %v525_v32 = vmul.f32 %v523_v25, %v466_v20  ;;  %v511_v33 = vmul.f32 %v509_v26, %v466_v20  ;;  %v553_v44 = vmul.f32 %v551_v36, %v466_v20  ;;  %v595_v46 = vstv %s1878_s8  ;;  %s1888_s8 = sld [smem:[#allocation5 + $0x1a]] }
  0xfd   : > { %430 = vrot.lane.b32.xlu0 %v425_v11, %s2212_s15  ;;  %v610_v47 = vmul.f32 %v609_v45, %v565_v34  ;;  %v596_v48 = vmul.f32 %v595_v46, %v565_v34  ;;  %v696_v6 = vmul.f32 %v695_v4, %v665_v2  ;;  %v668_v8 = vmul.f32 %v667_v61, %v665_v2 }
  0xfe   : > { %v709_v10 = vstv %s1886_s5  ;;  %v791_v30 = vstv %s2480_s23  ;;  %s1898_s5 = sld [smem:[#allocation5 + $0x24]] }
  0xff   : > { %s2538_s23 = sld [smem:[#allocation5 + $0x27]] }
 0x100   : > { %v393_v15 = vpop.permute.xlu1 %392  ;;  %v389_v16 = vpop.permute.xlu0 %388  ;;  %v566_v40 = vld [vmem:[#allocation4 + $0xa] sm:$0xff] }
 0x101   : > { %395 = vst.msk [vmem:[#allocation4 + $0x2a] sm:$0x1] %vm266_vm2, %v393_v15  ;;  %v583_v42 = vmul.f32 %v581_v41, %v566_v40  ;;  %v569_v43 = vmul.f32 %v567_v35, %v566_v40  ;;  %v625_v52 = vmul.f32 %v623_v51, %v566_v40  ;;  %v611_v53 = vmul.f32 %v609_v45, %v566_v40 }
 0x102   : > { %391 = vst.msk [vmem:[#allocation4 + $0x12] sm:$0x1] %vm266_vm2, %v389_v16  ;;  %v597_v54 = vmul.f32 %v595_v46, %v566_v40  ;;  %v653_v62 = vmul.f32 %v651_v55, %v566_v40  ;;  %v639_v0 = vmul.f32 %v637_v56, %v566_v40  ;;  %v723_v15 = vstv %s1887_s7  ;;  %v2517_v46 = vld [vmem:[#allocation4 + $0x5] sm:$0xff]  ;;  %s2520_s7 = sld [smem:[#allocation5 + $0x25]] }
 0x103   : > { %v737_v16 = vstv %s1888_s8  ;;  %s2527_s8 = sld [smem:[#allocation5]] }
 0x104   : > { %486 = vrot.lane.b32.xlu1 %v482_v17, %s2213_s26  ;;  %472 = vrot.lane.b32.xlu2 %v468_v18, %s2204_s19  ;;  %v724_v17 = vmul.f32 %v723_v15, %v665_v2  ;;  %v738_v18 = vmul.f32 %v737_v16, %v665_v2 }
 0x105   : > { %456 = vrot.lane.b32.xlu0 %v452_v19, %s2212_s15  ;;  %v710_v19 = vmul.f32 %v709_v10, %v665_v2 }
 0x109   : > { %v666_v60 = vld [vmem:[#allocation4 + $0xb] sm:$0xff] }
 0x10a   : > { %v669_v63 = vmul.f32 %v667_v61, %v666_v60  ;;  %v697_v11 = vmul.f32 %v695_v4, %v666_v60  ;;  %v711_v12 = vmul.f32 %v709_v10, %v666_v60  ;;  %v683_v13 = vmul.f32 %v681_v3, %v666_v60  ;;  %v2536_v56 = vld [vmem:[#allocation4 + $0xd] sm:$0xff] }
 0x10b   : > { %v725_v25 = vmul.f32 %v723_v15, %v666_v60  ;;  %v891_v3 = vstv %s2538_s23  ;;  %s2617_s23 = sld [smem:[#allocation5 + $0x2c]] }
 0x10c   : > { %502 = vrot.lane.b32.xlu1 %v497_v22, %s2213_s26  ;;  %488 = vrot.lane.b32.xlu2 %v483_v23, %s2213_s26  ;;  %v751_v22 = vstv %s1889_s18  ;;  %v739_v23 = vmul.f32 %v737_v16, %v666_v60  ;;  %s2534_s18 = sld [smem:[#allocation5 + $0x26]] }
 0x10d   : > { %474 = vrot.lane.b32.xlu0 %v469_v24, %s2204_s19  ;;  %v753_v24 = vmul.f32 %v751_v22, %v666_v60  ;;  %v752_v34 = vmul.f32 %v751_v22, %v665_v2 }
 0x112   : > { %v877_v2 = vstv %s2534_s18  ;;  %s2600_s18 = sld [smem:[#allocation5 + $0x2b]] }
 0x114   : > { %528 = vrot.lane.b32.xlu1 %v524_v27, %s2213_s26  ;;  %514 = vrot.lane.b32.xlu2 %v510_v28, %s2213_s26 }
 0x115   : > { %500 = vrot.lane.b32.xlu0 %v496_v29, %s2213_s26  ;;  %v2491_v29 = vld [vmem:[#allocation4 + $0x4] sm:$0xff] }
 0x11c   : > { %544 = vrot.lane.b32.xlu1 %v539_v31, %s2214_s4  ;;  %530 = vrot.lane.b32.xlu2 %v525_v32, %s2213_s26  ;;  %v805_v31 = vstv %s1895_s27  ;;  %v792_v32 = vmul.f32 %v791_v30, %v2491_v29  ;;  %s2547_s27 = sld [smem:[#allocation5 + $0x3]] }
 0x11d   : > { %516 = vrot.lane.b32.xlu0 %v511_v33, %s2213_s26  ;;  %v806_v33 = vmul.f32 %v805_v31, %v2491_v29 }
 0x11e   : > { %v2461_v1 = vpop.permute.xlu2 %428 }
 0x124   : > { %572 = vrot.lane.b32.xlu1 %v568_v37, %s2215_s6  ;;  %556 = vrot.lane.b32.xlu2 %v552_v38, %s2214_s4  ;;  %v2505_v38 = vld [vmem:[#allocation4 + $0xc] sm:$0xff] }
 0x125   : > { %542 = vrot.lane.b32.xlu0 %v538_v39, %s2214_s4  ;;  %v819_v39 = vstv %s1896_s24  ;;  %v807_v40 = vmul.f32 %v805_v31, %v2505_v38  ;;  %s2556_s24 = sld [smem:[#allocation5 + $0x1]]  ;;  %v879_v31 = vmul.f32 %v877_v2, %v2536_v56 }
 0x126   : > { %v821_v41 = vmul.f32 %v819_v39, %v2505_v38 }
 0x12c   : > { %588 = vrot.lane.b32.xlu1 %v583_v42, %s2215_s6  ;;  %574 = vrot.lane.b32.xlu2 %v569_v43, %s2215_s6  ;;  %v793_v42 = vmul.f32 %v791_v30, %v2505_v38 }
 0x12d   : > { %558 = vrot.lane.b32.xlu0 %v553_v44, %s2214_s4 }
 0x134   : > { %614 = vrot.lane.b32.xlu1 %v610_v47, %s2216_s21  ;;  %600 = vrot.lane.b32.xlu2 %v596_v48, %s2216_s21  ;;  %v835_v47 = vstv %s2501_s28  ;;  %v849_v48 = vstv %s1898_s5  ;;  %s2558_s28 = sld [smem:[#allocation5 + $0x28]] }
 0x135   : > { %586 = vrot.lane.b32.xlu0 %v582_v50, %s2215_s6  ;;  %v836_v50 = vmul.f32 %v835_v47, %v2517_v46  ;;  %v850_v51 = vmul.f32 %v849_v48, %v2517_v46  ;;  %v837_v60 = vmul.f32 %v835_v47, %v2536_v56  ;;  %s2571_s5 = sld [smem:[#allocation5 + $0x29]]  ;;  %v2597_v47 = vld [vmem:[#allocation4 + $0x6] sm:$0xff] }
 0x136   : > { %v2476_v20 = vpop.permute.xlu1 %442 }
 0x13a   : > { %v905_v22 = vstv %s2558_s28  ;;  %s2654_s28 = sld [smem:[#allocation5 + $0x2f]] }
 0x13c   : > { %630 = vrot.lane.b32.xlu1 %v625_v52, %s2216_s21  ;;  %616 = vrot.lane.b32.xlu2 %v611_v53, %s2216_s21  ;;  %v820_v52 = vmul.f32 %v819_v39, %v2491_v29 }
 0x13d   : > { %602 = vrot.lane.b32.xlu0 %v597_v54, %s2216_s21 }
 0x144   : > { %656 = vrot.lane.b32.xlu1 %v652_v57, %s2217_s17  ;;  %642 = vrot.lane.b32.xlu2 %v638_v58, %s2216_s21  ;;  %v863_v57 = vstv %s2520_s7  ;;  %v851_v58 = vmul.f32 %v849_v48, %v2536_v56  ;;  %s2574_s7 = sld [smem:[#allocation5 + $0x2a]] }
 0x145   : > { %628 = vrot.lane.b32.xlu0 %v624_v59, %s2216_s21  ;;  %v865_v59 = vmul.f32 %v863_v57, %v2536_v56 }
 0x14a   : > { %v935_v48 = vstv %s2574_s7  ;;  %s2675_s7 = sld [smem:[#allocation5 + $0x1d]] }
 0x14c   : > { %658 = vrot.lane.b32.xlu2 %v653_v62, %s2217_s17  ;;  %674 = vrot.lane.b32.xlu1 %v669_v63, %s2218_s30  ;;  %v399_v63 = vstv %s2527_s8  ;;  %s2585_s8 = sld [smem:[#allocation5 + $0x2]] }
 0x14d   : > { %644 = vrot.lane.b32.xlu0 %v639_v0, %s2216_s21  ;;  %v400_v4 = vmul.f32 %v399_v63, %v2388_v49 }
 0x14f   : > { %v434_v10 = vadd.f32 %v2461_v1, %v400_v4  ;;  %v405_v1 = vstv %s2556_s24  ;;  %s2644_s24 = sld [smem:[#allocation5 + $0x2e]] }
 0x154   : > { %686 = vrot.lane.b32.xlu2 %v682_v5, %s2218_s30  ;;  %700 = vrot.lane.b32.xlu1 %v696_v6, %s2218_s30  ;;  %v878_v5 = vmul.f32 %v877_v2, %v2517_v46  ;;  %v892_v6 = vmul.f32 %v891_v3, %v2517_v46 }
 0x155   : > { %672 = vrot.lane.b32.xlu0 %v668_v8, %s2218_s30  ;;  %v864_v8 = vmul.f32 %v863_v57, %v2517_v46 }
 0x156   : > { %v2466_v9 = vpop.permute.xlu2 %444 }
 0x15c   : > { %702 = vrot.lane.b32.xlu2 %v697_v11, %s2218_s30  ;;  %716 = vrot.lane.b32.xlu1 %v711_v12, %s2219_s16  ;;  %v417_v11 = vstv %s2547_s27  ;;  %s2624_s27 = sld [smem:[#allocation5 + $0x2d]] }
 0x15d   : > { %688 = vrot.lane.b32.xlu0 %v683_v13, %s2218_s30  ;;  %v419_v16 = vmul.f32 %v417_v11, %v2417_v7 }
 0x15e   : > { %v2471_v14 = vpop.permute.xlu2 %472 }
 0x164   : > { %728 = vrot.lane.b32.xlu2 %v724_v17, %s2219_s16  ;;  %742 = vrot.lane.b32.xlu1 %v738_v18, %s2219_s16 }
 0x165   : > { %714 = vrot.lane.b32.xlu0 %v710_v19, %s2219_s16 }
 0x166   : > { %v2478_v21 = vpop.permute.xlu2 %488 }
 0x16c   : > { %744 = vrot.lane.b32.xlu2 %v739_v23, %s2219_s16  ;;  %758 = vrot.lane.b32.xlu1 %v753_v24, %s2219_s16  ;;  %v407_v23 = vmul.f32 %v405_v1, %v2417_v7  ;;  %v893_v24 = vmul.f32 %v891_v3, %v2536_v56 }
 0x16d   : > { %730 = vrot.lane.b32.xlu0 %v725_v25, %s2219_s16  ;;  %v907_v25 = vmul.f32 %v905_v22, %v2536_v56 }
 0x16e   : > { %v2485_v26 = vpop.permute.xlu1 %458  ;;  %v2487_v27 = vpop.permute.xlu2 %514 }
 0x16f   : > { %v2489_v28 = vpop.permute.xlu0 %430 }
 0x174   : > { %796 = vrot.lane.b32.xlu2 %v792_v32, %s2212_s15  ;;  %810 = vrot.lane.b32.xlu1 %v806_v33, %s2212_s15  ;;  %v449_v32 = vadd.f32 %v2466_v9, %v407_v23  ;;  %v406_v33 = vmul.f32 %v405_v1, %v2388_v49 }
 0x175   : > { %756 = vrot.lane.b32.xlu0 %v752_v34, %s2219_s16 }
 0x176   : > { %v487_v35 = vpop.permute.xlu1 %486  ;;  %v2499_v36 = vpop.permute.xlu2 %530 }
 0x177   : > { %v2503_v37 = vpop.permute.xlu0 %456  ;;  %v492_v12 = vadd.f32 %v487_v35, %v434_v10 }
 0x17c   : > { %812 = vrot.lane.b32.xlu2 %v807_v40, %s2212_s15  ;;  %826 = vrot.lane.b32.xlu1 %v821_v41, %s2212_s15  ;;  %v448_v41 = vadd.f32 %v2476_v20, %v406_v33  ;;  %v906_v20 = vmul.f32 %v905_v22, %v2517_v46 }
 0x17d   : > { %798 = vrot.lane.b32.xlu0 %v793_v42, %s2212_s15 }
 0x17e   : > { %v2513_v43 = vpop.permute.xlu1 %502  ;;  %v2515_v44 = vpop.permute.xlu2 %556 }
 0x17f   : > { %v475_v45 = vpop.permute.xlu0 %474  ;;  %v507_v35 = vadd.f32 %v2513_v43, %v449_v32 }
 0x180   : > { %v479_v19 = vadd.f32 %v475_v45, %v419_v16  ;;  %v919_v45 = vstv %s2571_s5  ;;  %s2659_s5 = sld [smem:[#allocation5 + $0x30]] }
 0x181   : > { %v920_v43 = vmul.f32 %v919_v45, %v2517_v46 }
 0x182   : > { %v535_v34 = vadd.f32 %v2499_v36, %v479_v19  ;;  %v418_v36 = vmul.f32 %v417_v11, %v2388_v49  ;;  %v921_v11 = vmul.f32 %v919_v45, %v2536_v56  ;;  %v963_v56 = vstv %s2617_s23  ;;  %s2690_s23 = sld [smem:[#allocation5 + $0x1c]] }
 0x183   : > { %v977_v19 = vstv %s2624_s27  ;;  %v964_v23 = vmul.f32 %v963_v56, %v2597_v47  ;;  %s2696_s27 = sld [smem:[#allocation5 + $0x33]] }
 0x184   : > { %840 = vrot.lane.b32.xlu2 %v836_v50, %s2204_s19  ;;  %854 = vrot.lane.b32.xlu1 %v850_v51, %s2213_s26 }
 0x185   : > { %824 = vrot.lane.b32.xlu0 %v820_v52, %s2212_s15  ;;  %v936_v52 = vmul.f32 %v935_v48, %v2597_v47 }
 0x186   : > { %v2530_v53 = vpop.permute.xlu1 %528  ;;  %v2532_v54 = vpop.permute.xlu2 %574 }
 0x187   : > { %v501_v55 = vpop.permute.xlu0 %500 }
 0x188   : > { %v506_v51 = vadd.f32 %v501_v55, %v448_v41 }
 0x18c   : > { %856 = vrot.lane.b32.xlu2 %v851_v58, %s2213_s26  ;;  %870 = vrot.lane.b32.xlu1 %v865_v59, %s2213_s26  ;;  %v478_v58 = vadd.f32 %v2471_v14, %v418_v36  ;;  %v411_v59 = vstv %s2585_s8  ;;  %s2678_s8 = sld [smem:[#allocation5 + $0x31]] }
 0x18d   : > { %842 = vrot.lane.b32.xlu0 %v837_v60, %s2204_s19  ;;  %v413_v55 = vmul.f32 %v411_v59, %v2417_v7  ;;  %v562_v60 = vadd.f32 %v2515_v44, %v506_v51 }
 0x18e   : > { %v2549_v61 = vpop.permute.xlu1 %544  ;;  %v601_v62 = vpop.permute.xlu2 %600  ;;  %v534_v2 = vadd.f32 %v2530_v53, %v478_v58 }
 0x18f   : > { %v2552_v0 = vpop.permute.xlu0 %516  ;;  %v463_v14 = vadd.f32 %v2485_v26, %v413_v55  ;;  %v2694_v55 = vld [vmem:[#allocation4 + $0x20] sm:$0xff] }
 0x194   : > { %882 = vrot.lane.b32.xlu2 %v878_v5, %s2213_s26  ;;  %896 = vrot.lane.b32.xlu1 %v892_v6, %s2213_s26  ;;  %v2622_v6 = vld [vmem:[#allocation4 + $0xe] sm:$0xff] }
 0x195   : > { %868 = vrot.lane.b32.xlu0 %v864_v8, %s2213_s26  ;;  %v937_v53 = vmul.f32 %v935_v48, %v2622_v6  ;;  %v1005_v48 = vstv %s2654_s28  ;;  %s2721_s28 = sld [smem:[#allocation5 + $0x34]] }
 0x196   : > { %v2569_v13 = vpop.permute.xlu1 %572  ;;  %v617_v15 = vpop.permute.xlu2 %616  ;;  %v1006_v36 = vmul.f32 %v1005_v48, %v2597_v47 }
 0x197   : > { %v543_v17 = vpop.permute.xlu0 %542 }
 0x198   : > { %v548_v18 = vadd.f32 %v543_v17, %v492_v12 }
 0x19a   : > { %v2581_v30 = vadd.f32 %v601_v62, %v548_v18  ;;  %v401_v62 = vmul.f32 %v399_v63, %v2417_v7  ;;  %v521_v7 = vadd.f32 %v2552_v0, %v463_v14  ;;  %v949_v63 = vstv %s2600_s18  ;;  %s2688_s18 = sld [smem:[#allocation5 + $0x32]] }
 0x19b   : > { %v951_v10 = vmul.f32 %v949_v63, %v2622_v6  ;;  %v412_v0 = vmul.f32 %v411_v59, %v2388_v49 }
 0x19c   : > { %898 = vrot.lane.b32.xlu2 %v893_v24, %s2213_s26  ;;  %912 = vrot.lane.b32.xlu1 %v907_v25, %s2214_s4  ;;  %v435_v8 = vadd.f32 %v2489_v28, %v401_v62  ;;  %v579_v28 = vadd.f32 %v2532_v54, %v521_v7  ;;  %v978_v54 = vmul.f32 %v977_v19, %v2597_v47  ;;  %v1035_v62 = vstv %s2678_s8  ;;  %s2735_s8 = sld [smem:[#allocation5 + $0x1f]] }
 0x19d   : > { %884 = vrot.lane.b32.xlu0 %v879_v31, %s2213_s26  ;;  %v767_v7 = vstv %s2690_s23  ;;  %s2761_s23 = sld [smem:[#allocation5 + $0x37]] }
 0x19e   : > { %v589_v39 = vpop.permute.xlu1 %588  ;;  %v643_v40 = vpop.permute.xlu2 %642  ;;  %v493_v12 = vadd.f32 %v2478_v21, %v435_v8  ;;  %v462_v21 = vadd.f32 %v2503_v37, %v412_v0 }
 0x19f   : > { %v2594_v9 = vadd.f32 %v589_v39, %v535_v34  ;;  %v559_v42 = vpop.permute.xlu0 %558  ;;  %v991_v34 = vstv %s2644_s24  ;;  %s2701_s24 = sld [smem:[#allocation5 + $0x1e]] }
 0x1a0   : > { %v563_v50 = vadd.f32 %v559_v42, %v507_v35  ;;  %v520_v24 = vadd.f32 %v2487_v27, %v462_v21  ;;  %v979_v35 = vmul.f32 %v977_v19, %v2622_v6  ;;  %v993_v39 = vmul.f32 %v991_v34, %v2622_v6 }
 0x1a2   : > { %v2605_v57 = vadd.f32 %v617_v15, %v563_v50  ;;  %v549_v15 = vadd.f32 %v2549_v61, %v493_v12  ;;  %v950_v61 = vmul.f32 %v949_v63, %v2597_v47  ;;  %v578_v37 = vadd.f32 %v2569_v13, %v520_v24 }
 0x1a3   : > { %v965_v13 = vmul.f32 %v963_v56, %v2622_v6  ;;  %v1019_v50 = vstv %s2659_s5  ;;  %s2733_s5 = sld [smem:[#allocation5 + $0x35]]  ;;  %v1077_v24 = vstv %s2721_s28 }
 0x1a4   : > { %924 = vrot.lane.b32.xlu2 %v920_v43, %s2214_s4  ;;  %940 = vrot.lane.b32.xlu1 %v936_v52, %s2215_s6  ;;  %v1020_v43 = vmul.f32 %v1019_v50, %v2597_v47  ;;  %s2802_s28 = sld [smem:[#allocation5 + $0x3f]] }
 0x1a5   : > { %910 = vrot.lane.b32.xlu0 %v906_v20, %s2214_s4 }
 0x1a6   : > { %v615_v3 = vpop.permute.xlu1 %614  ;;  %v659_v46 = vpop.permute.xlu2 %658 }
 0x1a7   : > { %v2620_v4 = vadd.f32 %v615_v3, %v562_v60  ;;  %v587_v5 = vpop.permute.xlu0 %586  ;;  %v1021_v3 = vmul.f32 %v1019_v50, %v2622_v6 }
 0x1a8   : > { %v592_v44 = vadd.f32 %v587_v5, %v534_v2  ;;  %v1007_v5 = vmul.f32 %v1005_v48, %v2622_v6  ;;  %v769_v6 = vmul.f32 %v767_v7, %v2505_v38 }
 0x1aa   : > { %v648_v26 = vadd.f32 %v643_v40, %v592_v44 }
 0x1ac   : > { %942 = vrot.lane.b32.xlu2 %v937_v53, %s2215_s6  ;;  %956 = vrot.lane.b32.xlu1 %v951_v10, %s2215_s6  ;;  %v2715_v10 = vld [vmem:[#allocation4 + $0x18] sm:$0xff] }
 0x1ad   : > { %926 = vrot.lane.b32.xlu0 %v921_v11, %s2214_s4  ;;  %v1063_v11 = vstv %s2696_s27  ;;  %v1036_v56 = vmul.f32 %v1035_v62, %v2715_v10  ;;  %s2776_s27 = sld [smem:[#allocation5 + $0x3d]] }
 0x1ae   : > { %v631_v16 = vpop.permute.xlu1 %630  ;;  %v687_v17 = vpop.permute.xlu2 %686 }
 0x1af   : > { %v2639_v18 = vadd.f32 %v631_v16, %v579_v28  ;;  %v603_v1 = vpop.permute.xlu0 %602  ;;  %v779_v28 = vstv %s2701_s24  ;;  %s2794_s24 = sld [smem:[#allocation5 + $0x3e]] }
 0x1b0   : > { %v607_v22 = vadd.f32 %v603_v1, %v549_v15  ;;  %v781_v1 = vmul.f32 %v779_v28, %v2505_v38 }
 0x1b2   : > { %v663_v49 = vadd.f32 %v659_v46, %v607_v22  ;;  %v1037_v46 = vmul.f32 %v1035_v62, %v2694_v55  ;;  %v1119_v62 = vstv %s2761_s23  ;;  %s2839_s23 = sld [smem:[#allocation5 + $0x43]] }
 0x1b4   : > { %968 = vrot.lane.b32.xlu2 %v964_v23, %s2216_s21  ;;  %982 = vrot.lane.b32.xlu1 %v978_v54, %s2216_s21  ;;  %v780_v54 = vmul.f32 %v779_v28, %v2491_v29 }
 0x1b5   : > { %954 = vrot.lane.b32.xlu0 %v950_v61, %s2215_s6 }
 0x1b6   : > { %v657_v25 = vpop.permute.xlu1 %656  ;;  %v703_v31 = vpop.permute.xlu2 %702 }
 0x1b7   : > { %v2657_v32 = vadd.f32 %v657_v25, %v2581_v30  ;;  %v629_v33 = vpop.permute.xlu0 %628 }
 0x1b8   : > { %v634_v27 = vadd.f32 %v629_v33, %v578_v37  ;;  %v1079_v33 = vmul.f32 %v1077_v24, %v2694_v55 }
 0x1ba   : > { %v2664_v40 = vadd.f32 %v687_v17, %v634_v27  ;;  %v1064_v17 = vmul.f32 %v1063_v11, %v2715_v10 }
 0x1bc   : > { %984 = vrot.lane.b32.xlu2 %v979_v35, %s2216_s21  ;;  %998 = vrot.lane.b32.xlu1 %v993_v39, %s2216_s21  ;;  %v785_v39 = vstv %s2735_s8  ;;  %s2825_s8 = sld [smem:[#allocation5 + $0x41]] }
 0x1bd   : > { %970 = vrot.lane.b32.xlu0 %v965_v13, %s2216_s21 }
 0x1be   : > { %v729_v30 = vpop.permute.xlu2 %728  ;;  %v675_v41 = vpop.permute.xlu1 %674 }
 0x1bf   : > { %v2671_v42 = vadd.f32 %v675_v41, %v2605_v57  ;;  %v645_v45 = vpop.permute.xlu0 %644  ;;  %v992_v57 = vmul.f32 %v991_v34, %v2597_v47  ;;  %v773_v47 = vstv %s2675_s7  ;;  %s2771_s7 = sld [smem:[#allocation5 + $0x3c]] }
 0x1c0   : > { %v649_v51 = vadd.f32 %v645_v45, %v2594_v9  ;;  %v774_v14 = vmul.f32 %v773_v47, %v2491_v29  ;;  %v787_v45 = vmul.f32 %v785_v39, %v2505_v38  ;;  %v775_v48 = vmul.f32 %v773_v47, %v2505_v38 }
 0x1c1   : > { %v786_v47 = vmul.f32 %v785_v39, %v2491_v29 }
 0x1c2   : > { %v2682_v52 = vadd.f32 %v703_v31, %v649_v51  ;;  %v1065_v31 = vmul.f32 %v1063_v11, %v2694_v55 }
 0x1c4   : > { %1010 = vrot.lane.b32.xlu2 %v1006_v36, %s2216_s21  ;;  %1024 = vrot.lane.b32.xlu1 %v1020_v43, %s2217_s17 }
 0x1c5   : > { %996 = vrot.lane.b32.xlu0 %v992_v57, %s2216_s21  ;;  %v1078_v57 = vmul.f32 %v1077_v24, %v2715_v10 }
 0x1c6   : > { %v745_v9 = vpop.permute.xlu2 %744  ;;  %v701_v20 = vpop.permute.xlu1 %700 }
 0x1c7   : > { %v2692_v58 = vadd.f32 %v701_v20, %v648_v26  ;;  %v673_v59 = vpop.permute.xlu0 %672  ;;  %v1049_v26 = vstv %s2688_s18  ;;  %s2738_s18 = sld [smem:[#allocation5 + $0x36]] }
 0x1c8   : > { %v678_v60 = vadd.f32 %v673_v59, %v2620_v4  ;;  %v1050_v16 = vmul.f32 %v1049_v26, %v2715_v10  ;;  %v1051_v27 = vmul.f32 %v1049_v26, %v2694_v55 }
 0x1ca   : > { %v734_v2 = vadd.f32 %v729_v30, %v678_v60  ;;  %v1091_v30 = vstv %s2733_s5  ;;  %s2808_s5 = sld [smem:[#allocation5 + $0x40]] }
 0x1cb   : > { %v1092_v43 = vmul.f32 %v1091_v30, %v2715_v10 }
 0x1cc   : > { %1026 = vrot.lane.b32.xlu2 %v1021_v3, %s2217_s17  ;;  %1042 = vrot.lane.b32.xlu1 %v1037_v46, %s2218_s30  ;;  %v2711_v4 = vadd.f32 %v774_v14, %v734_v2  ;;  %v1121_v46 = vmul.f32 %v1119_v62, %v2694_v55  ;;  %v1093_v14 = vmul.f32 %v1091_v30, %v2694_v55  ;;  %v1231_v30 = vstv %s2825_s8  ;;  %s2897_s8 = sld [smem:[#allocation5 + $0x53]] }
 0x1cd   : > { %1012 = vrot.lane.b32.xlu0 %v1007_v5, %s2216_s21  ;;  %v1105_v41 = vstv %s2738_s18  ;;  %s2833_s18 = sld [smem:[#allocation5 + $0x42]] }
 0x1ce   : > { %v797_v8 = vpop.permute.xlu2 %796  ;;  %v717_v44 = vpop.permute.xlu1 %716  ;;  %v1107_v3 = vmul.f32 %v1105_v41, %v2694_v55 }
 0x1cf   : > { %v721_v63 = vadd.f32 %v717_v44, %v663_v49  ;;  %v689_v53 = vpop.permute.xlu0 %688  ;;  %v768_v49 = vmul.f32 %v767_v7, %v2491_v29  ;;  %v2789_v44 = vld [vmem:[#allocation4 + $0x19] sm:$0xff]  ;;  %v1159_v7 = vstv %s2771_s7  ;;  %s2854_s7 = sld [smem:[#allocation5 + $0x44]] }
 0x1d0   : > { %v693_v12 = vadd.f32 %v689_v53, %v2639_v18  ;;  %v1160_v55 = vmul.f32 %v1159_v7, %v2789_v44  ;;  %v1217_v24 = vstv %s2808_s5  ;;  %s2891_s5 = sld [smem:[#allocation5 + $0x4f]] }
 0x1d1   : > { %v2724_v0 = vadd.f32 %v769_v6, %v721_v63  ;;  %v1173_v63 = vstv %s2776_s27  ;;  %v1120_v6 = vmul.f32 %v1119_v62, %v2715_v10  ;;  %s2862_s27 = sld [smem:[#allocation5 + $0x45]] }
 0x1d2   : > { %v749_v15 = vadd.f32 %v745_v9, %v693_v12  ;;  %v1174_v26 = vmul.f32 %v1173_v63, %v2789_v44 }
 0x1d4   : > { %1054 = vrot.lane.b32.xlu2 %v1050_v16, %s2218_s30  ;;  %1068 = vrot.lane.b32.xlu1 %v1064_v17, %s2218_s30  ;;  %v783_v18 = vadd.f32 %v781_v1, %v749_v15  ;;  %v2806_v16 = vld [vmem:[#allocation4 + $0x21] sm:$0xff]  ;;  %v1187_v17 = vstv %s2794_s24  ;;  %s2866_s24 = sld [smem:[#allocation5 + $0x47]] }
 0x1d5   : > { %1040 = vrot.lane.b32.xlu0 %v1036_v56, %s2218_s30  ;;  %v1175_v1 = vmul.f32 %v1173_v63, %v2806_v16  ;;  %v1189_v56 = vmul.f32 %v1187_v17, %v2806_v16 }
 0x1d6   : > { %v813_v19 = vpop.permute.xlu2 %812  ;;  %v743_v21 = vpop.permute.xlu1 %742 }
 0x1d7   : > { %v748_v22 = vadd.f32 %v743_v21, %v2664_v40  ;;  %v715_v23 = vpop.permute.xlu0 %714 }
 0x1d8   : > { %v720_v61 = vadd.f32 %v715_v23, %v2657_v32 }
 0x1d9   : > { %v2744_v37 = vadd.f32 %v780_v54, %v748_v22 }
 0x1da   : > { %v770_v25 = vadd.f32 %v768_v49, %v720_v61  ;;  %v2820_v49 = vld [vmem:[#allocation4 + $0x1a] sm:$0xff]  ;;  %v1203_v61 = vstv %s2802_s28  ;;  %s2883_s28 = sld [smem:[#allocation5 + $0x4b]] }
 0x1dc   : > { %1070 = vrot.lane.b32.xlu2 %v1065_v31, %s2218_s30  ;;  %1084 = vrot.lane.b32.xlu1 %v1079_v33, %s2219_s16  ;;  %v802_v34 = vadd.f32 %v797_v8, %v770_v25  ;;  %v1204_v25 = vmul.f32 %v1203_v61, %v2820_v49  ;;  %v1218_v31 = vmul.f32 %v1217_v24, %v2820_v49 }
 0x1dd   : > { %1056 = vrot.lane.b32.xlu0 %v1051_v27, %s2218_s30  ;;  %v1188_v27 = vmul.f32 %v1187_v17, %v2789_v44 }
 0x1de   : > { %v841_v32 = vpop.permute.xlu2 %840  ;;  %v759_v35 = vpop.permute.xlu1 %758 }
 0x1df   : > { %v763_v40 = vadd.f32 %v759_v35, %v2682_v52  ;;  %v731_v13 = vpop.permute.xlu0 %730  ;;  %v1106_v52 = vmul.f32 %v1105_v41, %v2715_v10 }
 0x1e0   : > { %v735_v50 = vadd.f32 %v731_v13, %v2671_v42 }
 0x1e1   : > { %v2763_v51 = vadd.f32 %v787_v45, %v763_v40  ;;  %v2837_v40 = vld [vmem:[#allocation4 + $0x22] sm:$0xff] }
 0x1e2   : > { %v777_v36 = vadd.f32 %v775_v48, %v735_v50  ;;  %v1219_v41 = vmul.f32 %v1217_v24, %v2837_v40  ;;  %v1233_v45 = vmul.f32 %v1231_v30, %v2837_v40  ;;  %v1205_v50 = vmul.f32 %v1203_v61, %v2837_v40 }
 0x1e4   : > { %1096 = vrot.lane.b32.xlu2 %v1092_v43, %s2219_s16  ;;  %1110 = vrot.lane.b32.xlu1 %v1106_v52, %s2219_s16  ;;  %v817_v9 = vadd.f32 %v813_v19, %v777_v36  ;;  %v1161_v19 = vmul.f32 %v1159_v7, %v2806_v16 }
 0x1e5   : > { %1082 = vrot.lane.b32.xlu0 %v1078_v57, %s2219_s16  ;;  %v1245_v57 = vstv %s2833_s18  ;;  %s2914_s18 = sld [smem:[#allocation5 + $0x5b]] }
 0x1e6   : > { %v857_v38 = vpop.permute.xlu2 %856  ;;  %v811_v42 = vpop.permute.xlu1 %810 }
 0x1e7   : > { %v2774_v20 = vadd.f32 %v811_v42, %v2711_v4  ;;  %v757_v59 = vpop.permute.xlu0 %756  ;;  %v1246_v42 = vmul.f32 %v1245_v57, %v2820_v49 }
 0x1e8   : > { %v762_v60 = vadd.f32 %v757_v59, %v2692_v58 }
 0x1ea   : > { %v788_v2 = vadd.f32 %v786_v47, %v762_v60  ;;  %v1232_v47 = vmul.f32 %v1231_v30, %v2820_v49 }
 0x1ec   : > { %1112 = vrot.lane.b32.xlu2 %v1107_v3, %s2219_s16  ;;  %1126 = vrot.lane.b32.xlu1 %v1121_v46, %s2219_s16  ;;  %v846_v5 = vadd.f32 %v841_v32, %v788_v2 }
 0x1ed   : > { %1098 = vrot.lane.b32.xlu0 %v1093_v14, %s2219_s16  ;;  %v1273_v14 = vstv %s2854_s7  ;;  %s2930_s7 = sld [smem:[#allocation5 + $0x46]] }
 0x1ee   : > { %v883_v29 = vpop.permute.xlu2 %882  ;;  %v827_v4 = vpop.permute.xlu1 %826 }
 0x1ef   : > { %v2787_v8 = vadd.f32 %v827_v4, %v783_v18  ;;  %v799_v58 = vpop.permute.xlu0 %798 }
 0x1f0   : > { %v803_v53 = vadd.f32 %v799_v58, %v2724_v0 }
 0x1f2   : > { %v861_v11 = vadd.f32 %v857_v38, %v803_v53 }
 0x1f4   : > { %1164 = vrot.lane.b32.xlu2 %v1160_v55, %s2212_s15  ;;  %1178 = vrot.lane.b32.xlu1 %v1174_v26, %s2212_s15  ;;  %v1287_v55 = vstv %s2862_s27  ;;  %v2879_v26 = vld [vmem:[#allocation4 + $0x1b] sm:$0xff]  ;;  %s2948_s27 = sld [smem:[#allocation5 + $0x39]] }
 0x1f5   : > { %1124 = vrot.lane.b32.xlu0 %v1120_v6, %s2219_s16 }
 0x1f6   : > { %v899_v12 = vpop.permute.xlu2 %898  ;;  %v855_v28 = vpop.permute.xlu1 %854 }
 0x1f7   : > { %v2804_v0 = vadd.f32 %v855_v28, %v802_v34  ;;  %v825_v15 = vpop.permute.xlu0 %824 }
 0x1f8   : > { %v830_v10 = vadd.f32 %v825_v15, %v2744_v37  ;;  %v1274_v15 = vmul.f32 %v1273_v14, %v2820_v49 }
 0x1fa   : > { %v888_v18 = vadd.f32 %v883_v29, %v830_v10  ;;  %v1275_v29 = vmul.f32 %v1273_v14, %v2837_v40 }
 0x1fc   : > { %1180 = vrot.lane.b32.xlu2 %v1175_v1, %s2212_s15  ;;  %1194 = vrot.lane.b32.xlu1 %v1189_v56, %s2212_s15 }
 0x1fd   : > { %1166 = vrot.lane.b32.xlu0 %v1161_v19, %s2212_s15 }
 0x1fe   : > { %v925_v21 = vpop.permute.xlu2 %924  ;;  %v871_v22 = vpop.permute.xlu1 %870 }
 0x1ff   : > { %v2818_v23 = vadd.f32 %v871_v22, %v817_v9  ;;  %v843_v54 = vpop.permute.xlu0 %842  ;;  %v1259_v9 = vstv %s2839_s23  ;;  %s2922_s23 = sld [smem:[#allocation5 + $0x5f]] }
 0x200   : > { %v847_v37 = vadd.f32 %v843_v54, %v2763_v51 }
 0x202   : > { %v903_v33 = vadd.f32 %v899_v12, %v847_v37  ;;  %v1288_v12 = vmul.f32 %v1287_v55, %v2820_v49 }
 0x204   : > { %1208 = vrot.lane.b32.xlu2 %v1204_v25, %s2204_s19  ;;  %1222 = vrot.lane.b32.xlu1 %v1218_v31, %s2213_s26  ;;  %v2909_v31 = vld [vmem:[#allocation4 + $0x1c] sm:$0xff] }
 0x205   : > { %1192 = vrot.lane.b32.xlu0 %v1188_v27, %s2212_s15  ;;  %v1487_v27 = vstv %s2897_s8  ;;  %s2967_s8 = sld [smem:[#allocation5 + $0x4d]] }
 0x206   : > { %v943_v34 = vpop.permute.xlu2 %942  ;;  %v897_v32 = vpop.permute.xlu1 %896 }
 0x207   : > { %v2835_v35 = vadd.f32 %v897_v32, %v846_v5  ;;  %v869_v39 = vpop.permute.xlu0 %868  ;;  %v1261_v5 = vmul.f32 %v1259_v9, %v2837_v40 }
 0x208   : > { %v874_v13 = vadd.f32 %v869_v39, %v2774_v20  ;;  %v1260_v20 = vmul.f32 %v1259_v9, %v2820_v49  ;;  %v1289_v49 = vmul.f32 %v1287_v55, %v2837_v40 }
 0x20a   : > { %v930_v48 = vadd.f32 %v925_v21, %v874_v13  ;;  %v1373_v21 = vstv %s2883_s28  ;;  %s2961_s28 = sld [smem:[#allocation5 + $0x4a]] }
 0x20c   : > { %1224 = vrot.lane.b32.xlu2 %v1219_v41, %s2213_s26  ;;  %1238 = vrot.lane.b32.xlu1 %v1233_v45, %s2213_s26 }
 0x20d   : > { %1210 = vrot.lane.b32.xlu0 %v1205_v50, %s2204_s19  ;;  %v2928_v50 = vld [vmem:[#allocation4 + $0x26] sm:$0xff] }
 0x20e   : > { %v969_v51 = vpop.permute.xlu2 %968  ;;  %v913_v36 = vpop.permute.xlu1 %912 }
 0x20f   : > { %v2849_v43 = vadd.f32 %v913_v36, %v861_v11  ;;  %v885_v52 = vpop.permute.xlu0 %884  ;;  %v1317_v11 = vstv %s2866_s24  ;;  %v1571_v36 = vstv %s2914_s18  ;;  %s2951_s24 = sld [smem:[#allocation5 + $0x49]] }
 0x210   : > { %v889_v38 = vadd.f32 %v885_v52, %v2787_v8  ;;  %v1247_v8 = vmul.f32 %v1245_v57, %v2837_v40  ;;  %v1318_v28 = vmul.f32 %v1317_v11, %v2879_v26  ;;  %v1374_v40 = vmul.f32 %v1373_v21, %v2879_v26  ;;  %s2972_s18 = sld [smem:[#allocation5 + $0x3a]] }
 0x211   : > { %v1573_v52 = vmul.f32 %v1571_v36, %v2928_v50 }
 0x212   : > { %v947_v59 = vadd.f32 %v943_v34, %v889_v38 }
 0x214   : > { %1250 = vrot.lane.b32.xlu2 %v1246_v42, %s2213_s26  ;;  %1264 = vrot.lane.b32.xlu1 %v1260_v20, %s2213_s26 }
 0x215   : > { %1236 = vrot.lane.b32.xlu0 %v1232_v47, %s2213_s26  ;;  %v2944_v47 = vld [vmem:[#allocation4 + $0x1e] sm:$0xff] }
 0x216   : > { %v985_v60 = vpop.permute.xlu2 %984  ;;  %v941_v62 = vpop.permute.xlu1 %940 }
 0x217   : > { %v2864_v2 = vadd.f32 %v941_v62, %v888_v18  ;;  %v911_v3 = vpop.permute.xlu0 %910  ;;  %v2895_v18 = vld [vmem:[#allocation4 + $0x23] sm:$0xff]  ;;  %v1303_v62 = vstv %s2930_s7  ;;  %s3005_s7 = sld [smem:[#allocation5 + $0x52]] }
 0x218   : > { %v916_v46 = vadd.f32 %v911_v3, %v2804_v0  ;;  %v1319_v22 = vmul.f32 %v1317_v11, %v2895_v18  ;;  %v1305_v11 = vmul.f32 %v1303_v62, %v2895_v18 }
 0x21a   : > { %v974_v4 = vadd.f32 %v969_v51, %v916_v46  ;;  %v1304_v46 = vmul.f32 %v1303_v62, %v2879_v26 }
 0x21c   : > { %1266 = vrot.lane.b32.xlu2 %v1261_v5, %s2213_s26  ;;  %1280 = vrot.lane.b32.xlu1 %v1275_v29, %s2214_s4  ;;  %v1572_v5 = vmul.f32 %v1571_v36, %v2944_v47 }
 0x21d   : > { %1252 = vrot.lane.b32.xlu0 %v1247_v8, %s2213_s26 }
 0x21e   : > { %v1011_v58 = vpop.permute.xlu2 %1010  ;;  %v957_v7 = vpop.permute.xlu1 %956 }
 0x21f   : > { %v2876_v63 = vadd.f32 %v957_v7, %v903_v33  ;;  %v927_v53 = vpop.permute.xlu0 %926  ;;  %v1431_v33 = vstv %s2891_s5  ;;  %s2963_s5 = sld [smem:[#allocation5 + $0x38]]  ;;  %v1141_v7 = vstv %s2948_s27 }
 0x220   : > { %v931_v6 = vadd.f32 %v927_v53, %v2818_v23  ;;  %v1375_v23 = vmul.f32 %v1373_v21, %v2895_v18  ;;  %v1432_v32 = vmul.f32 %v1431_v33, %v2909_v31  ;;  %v1345_v53 = vstv %s2951_s24  ;;  %s3028_s27 = sld [smem:[#allocation5 + $0x59]] }
 0x221   : > { %v1403_v21 = vstv %s2967_s8  ;;  %s3038_s24 = sld [smem:[#allocation5 + $0x5a]] }
 0x222   : > { %v989_v0 = vadd.f32 %v985_v60, %v931_v6  ;;  %v1627_v60 = vstv %s2922_s23  ;;  %v1347_v6 = vmul.f32 %v1345_v53, %v2895_v18  ;;  %s3002_s23 = sld [smem:[#allocation5 + $0x3b]] }
 0x223   : > { %v1628_v3 = vmul.f32 %v1627_v60, %v2944_v47  ;;  %s3082_s8 = sld [smem:[#allocation5 + $0x48]] }
 0x224   : > { %1292 = vrot.lane.b32.xlu2 %v1288_v12, %s2214_s4  ;;  %1322 = vrot.lane.b32.xlu1 %v1318_v28, %s2215_s6  ;;  %v1142_v12 = vmul.f32 %v1141_v7, %v2789_v44  ;;  %v1629_v28 = vmul.f32 %v1627_v60, %v2928_v50 }
 0x225   : > { %1278 = vrot.lane.b32.xlu0 %v1274_v15, %s2214_s4 }
 0x226   : > { %v1027_v10 = vpop.permute.xlu2 %1026  ;;  %v983_v17 = vpop.permute.xlu1 %982 }
 0x227   : > { %v2893_v1 = vadd.f32 %v983_v17, %v930_v48  ;;  %v955_v56 = vpop.permute.xlu0 %954  ;;  %v2926_v48 = vld [vmem:[#allocation4 + $0x24] sm:$0xff]  ;;  %v1135_v17 = vstv %s2963_s5  ;;  %s1959_s5 = sld [smem:[#allocation5 + $0x61]] }
 0x228   : > { %v960_v19 = vadd.f32 %v955_v56, %v2835_v35  ;;  %v1488_v35 = vmul.f32 %v1487_v27, %v2909_v31  ;;  %v1433_v9 = vmul.f32 %v1431_v33, %v2926_v48 }
 0x22a   : > { %v1016_v54 = vadd.f32 %v1011_v58, %v960_v19  ;;  %v1359_v19 = vstv %s2961_s28  ;;  %s3043_s28 = sld [smem:[#allocation5 + $0x5d]] }
 0x22c   : > { %1324 = vrot.lane.b32.xlu2 %v1319_v22, %s2215_s6  ;;  %1380 = vrot.lane.b32.xlu1 %v1375_v23, %s2216_s21  ;;  %v1137_v22 = vmul.f32 %v1135_v17, %v2806_v16 }
 0x22d   : > { %1294 = vrot.lane.b32.xlu0 %v1289_v49, %s2214_s4 }
 0x22e   : > { %v1055_v61 = vpop.permute.xlu2 %1054  ;;  %v999_v24 = vpop.permute.xlu1 %998 }
 0x22f   : > { %v2907_v37 = vadd.f32 %v999_v24, %v947_v59  ;;  %v971_v25 = vpop.permute.xlu0 %970  ;;  %v1360_v24 = vmul.f32 %v1359_v19, %v2879_v26 }
 0x230   : > { %v975_v34 = vadd.f32 %v971_v25, %v2849_v43  ;;  %v1489_v43 = vmul.f32 %v1487_v27, %v2926_v48  ;;  %v1404_v25 = vmul.f32 %v1403_v21, %v2909_v31  ;;  %v1346_v27 = vmul.f32 %v1345_v53, %v2879_v26 }
 0x232   : > { %v1031_v39 = vadd.f32 %v1027_v10, %v975_v34 }
 0x234   : > { %1436 = vrot.lane.b32.xlu2 %v1432_v32, %s2218_s30  ;;  %1492 = vrot.lane.b32.xlu1 %v1488_v35, %s2219_s16 }
 0x235   : > { %1378 = vrot.lane.b32.xlu0 %v1374_v40, %s2216_s21 }
 0x236   : > { %v1071_v13 = vpop.permute.xlu2 %1070  ;;  %v1025_v30 = vpop.permute.xlu1 %1024 }
 0x237   : > { %v2924_v41 = vadd.f32 %v1025_v30, %v974_v4  ;;  %v997_v45 = vpop.permute.xlu0 %996 }
 0x238   : > { %v1002_v51 = vadd.f32 %v997_v45, %v2864_v2 }
 0x23a   : > { %v2936_v57 = vadd.f32 %v1055_v61, %v1002_v51 }
 0x23c   : > { %1494 = vrot.lane.b32.xlu2 %v1489_v43, %s2219_s16  ;;  %1578 = vrot.lane.b32.xlu1 %v1573_v52, %s2204_s19  ;;  %v1405_v43 = vmul.f32 %v1403_v21, %v2926_v48  ;;  %v1555_v21 = vstv %s3038_s24  ;;  %s1948_s24 = sld [smem:[#allocation5 + $0x56]] }
 0x23d   : > { %1438 = vrot.lane.b32.xlu0 %v1433_v9, %s2218_s30 }
 0x23e   : > { %v1097_v38 = vpop.permute.xlu2 %1096  ;;  %v1043_v42 = vpop.permute.xlu1 %1042 }
 0x23f   : > { %v2942_v20 = vadd.f32 %v1043_v42, %v989_v0  ;;  %v1013_v59 = vpop.permute.xlu0 %1012  ;;  %v1153_v42 = vstv %s3002_s23  ;;  %s3109_s23 = sld [smem:[#allocation5 + $0x5c]] }
 0x240   : > { %v1017_v2 = vadd.f32 %v1013_v59, %v2876_v63 }
 0x242   : > { %v2955_v14 = vadd.f32 %v1071_v13, %v1017_v2  ;;  %v1136_v13 = vmul.f32 %v1135_v17, %v2789_v44  ;;  %v1473_v2 = vstv %s3005_s7  ;;  %s1942_s7 = sld [smem:[#allocation5 + $0x50]] }
 0x244   : > { %1632 = vrot.lane.b32.xlu2 %v1628_v3, %s2213_s26  ;;  %1308 = vrot.lane.b32.xlu1 %v1304_v46, %s2215_s6  ;;  %v1155_v3 = vmul.f32 %v1153_v42, %v2806_v16  ;;  %v1143_v46 = vmul.f32 %v1141_v7, %v2806_v16 }
 0x245   : > { %1576 = vrot.lane.b32.xlu0 %v1572_v5, %s2204_s19  ;;  %s2988_s19 = sld [smem:[#allocation5 + $0x4e]] }
 0x246   : > { %v1113_v29 = vpop.permute.xlu2 %1112  ;;  %v1069_v4 = vpop.permute.xlu1 %1068 }
 0x247   : > { %v2965_v8 = vadd.f32 %v1069_v4, %v1016_v54  ;;  %v1041_v58 = vpop.permute.xlu0 %1040  ;;  %v1147_v54 = vstv %s2972_s18  ;;  %s3091_s18 = sld [smem:[#allocation5 + $0x4c]] }
 0x248   : > { %v1046_v63 = vadd.f32 %v1041_v58, %v2893_v1  ;;  %v1149_v33 = vmul.f32 %v1147_v54, %v2806_v16  ;;  %v1148_v40 = vmul.f32 %v1147_v54, %v2789_v44 }
 0x24a   : > { %v1102_v55 = vadd.f32 %v1097_v38, %v1046_v63  ;;  %v1474_v63 = vmul.f32 %v1473_v2, %v2909_v31 }
 0x24b   : > { %v1417_v45 = vstv %s2988_s19  ;;  %s3099_s19 = sld [smem:[#allocation5 + $0x58]] }
 0x24c   : > { %1310 = vrot.lane.b32.xlu2 %v1305_v11, %s2215_s6  ;;  %1352 = vrot.lane.b32.xlu1 %v1347_v6, %s2216_s21  ;;  %v2980_v0 = vadd.f32 %v1142_v12, %v1102_v55  ;;  %s3000_s6 = sld [smem:[#allocation5 + $0x51]]  ;;  %v1419_v52 = vmul.f32 %v1417_v45, %v2926_v48  ;;  %v3041_v11 = vld [vmem:[#allocation4 + $0x25] sm:$0xff]  ;;  %v1154_v6 = vmul.f32 %v1153_v42, %v2789_v44 }
 0x24d   : > { %1634 = vrot.lane.b32.xlu0 %v1629_v28, %s2213_s26  ;;  %v1541_v28 = vstv %s3028_s27  ;;  %s3126_s27 = sld [smem:[#allocation5 + $0x55]] }
 0x24e   : > { %v1165_v15 = vpop.permute.xlu2 %1164  ;;  %v1085_v10 = vpop.permute.xlu1 %1084  ;;  %v1543_v17 = vmul.f32 %v1541_v28, %v3041_v11 }
 0x24f   : > { %v1089_v1 = vadd.f32 %v1085_v10, %v1031_v39  ;;  %v1057_v56 = vpop.permute.xlu0 %1056  ;;  %v1475_v10 = vmul.f32 %v1473_v2, %v2926_v48 }
 0x250   : > { %v1061_v23 = vadd.f32 %v1057_v56, %v2907_v37 }
 0x251   : > { %v2991_v49 = vadd.f32 %v1137_v22, %v1089_v1  ;;  %v1599_v22 = vstv %s3043_s28  ;;  %s1958_s28 = sld [smem:[#allocation5 + $0x60]] }
 0x252   : > { %v1117_v61 = vadd.f32 %v1113_v29, %v1061_v23  ;;  %v1459_v62 = vstv %s3000_s6  ;;  %s1949_s6 = sld [smem:[#allocation5 + $0x57]] }
 0x253   : > { %v1460_v58 = vmul.f32 %v1459_v62, %v2909_v31 }
 0x254   : > { %1364 = vrot.lane.b32.xlu2 %v1360_v24, %s2216_s21  ;;  %1408 = vrot.lane.b32.xlu1 %v1404_v25, %s2218_s30  ;;  %v1151_v37 = vadd.f32 %v1149_v33, %v1117_v61  ;;  %v1600_v61 = vmul.f32 %v1599_v22, %v2944_v47 }
 0x255   : > { %1350 = vrot.lane.b32.xlu0 %v1346_v27, %s2216_s21 }
 0x256   : > { %v1181_v34 = vpop.permute.xlu2 %1180  ;;  %v1111_v32 = vpop.permute.xlu1 %1110 }
 0x257   : > { %v1116_v35 = vadd.f32 %v1111_v32, %v2936_v57  ;;  %v1083_v39 = vpop.permute.xlu0 %1082  ;;  %v1361_v57 = vmul.f32 %v1359_v19, %v2895_v18 }
 0x258   : > { %v1088_v30 = vadd.f32 %v1083_v39, %v2924_v41 }
 0x259   : > { %v3011_v51 = vadd.f32 %v1148_v40, %v1116_v35  ;;  %v1601_v35 = vmul.f32 %v1599_v22, %v2928_v50 }
 0x25a   : > { %v1138_v36 = vadd.f32 %v1136_v13, %v1088_v30  ;;  %v1557_v13 = vmul.f32 %v1555_v21, %v3041_v11 }
 0x25c   : > { %1410 = vrot.lane.b32.xlu2 %v1405_v43, %s2218_s30  ;;  %1424 = vrot.lane.b32.xlu1 %v1419_v52, %s2218_s30  ;;  %v1170_v9 = vadd.f32 %v1165_v15, %v1138_v36 }
 0x25d   : > { %1366 = vrot.lane.b32.xlu0 %v1361_v57, %s2216_s21 }
 0x25e   : > { %v3019_v41 = vpop.permute.xlu2 %1208  ;;  %v1127_v38 = vpop.permute.xlu1 %1126 }
 0x25f   : > { %v1131_v59 = vadd.f32 %v1127_v38, %v2955_v14  ;;  %v1099_v60 = vpop.permute.xlu0 %1098  ;;  %v1418_v14 = vmul.f32 %v1417_v45, %v2909_v31 }
 0x260   : > { %v1103_v5 = vadd.f32 %v1099_v60, %v2942_v20 }
 0x261   : > { %v3030_v29 = vadd.f32 %v1155_v3, %v1131_v59 }
 0x262   : > { %v1145_v4 = vadd.f32 %v1143_v46, %v1103_v5 }
 0x264   : > { %1464 = vrot.lane.b32.xlu2 %v1460_v58, %s2219_s16  ;;  %1478 = vrot.lane.b32.xlu1 %v1474_v63, %s2219_s16  ;;  %v1185_v53 = vadd.f32 %v1181_v34, %v1145_v4  ;;  %v1331_v58 = vstv %s3082_s8  ;;  %s1740_s8 = scalar_lea.sflag [#allocation7], %s2336_s22 }
 0x265   : > { %1422 = vrot.lane.b32.xlu0 %v1418_v14, %s2218_s30  ;;  %s1956_s30 = sld [smem:[#allocation5 + $0x5e]]  ;;  %v1332_v63 = vmul.f32 %v1331_v58, %v2879_v26 }
 0x266   : > { %v1225_v16 = vpop.permute.xlu2 %1224  ;;  %v1179_v20 = vpop.permute.xlu1 %1178 }
 0x267   : > { %v1184_v7 = vadd.f32 %v1179_v20, %v2980_v0  ;;  %v1125_v55 = vpop.permute.xlu0 %1124  ;;  %v1461_v0 = vmul.f32 %v1459_v62, %v2926_v48 }
 0x268   : > { %v1130_v12 = vadd.f32 %v1125_v55, %v2965_v8  ;;  %v3056_v8 = vld [vmem:[#allocation4 + $0x1d] sm:$0xff] }
 0x269   : > { %v1556_v54 = vmul.f32 %v1555_v21, %v3056_v8  ;;  %v1542_v25 = vmul.f32 %v1541_v28, %v3056_v8 }
 0x26a   : > { %v3048_v15 = vadd.f32 %v1154_v6, %v1130_v12 }
 0x26b   : > { %v1613_v32 = vstv %s1956_s30 }
 0x26c   : > { %1480 = vrot.lane.b32.xlu2 %v1475_v10, %s2219_s16  ;;  %1548 = vrot.lane.b32.xlu1 %v1543_v17, %s2212_s15  ;;  %v1615_v39 = vmul.f32 %v1613_v32, %v2928_v50  ;;  %v1614_v57 = vmul.f32 %v1613_v32, %v2944_v47  ;;  %v1527_v17 = vstv %s3099_s19 }
 0x26d   : > { %1466 = vrot.lane.b32.xlu0 %v1461_v0, %s2219_s16  ;;  %v1214_v0 = vadd.f32 %v3019_v41, %v3048_v15 }
 0x26e   : > { %v1251_v1 = vpop.permute.xlu2 %1250  ;;  %v1195_v44 = vpop.permute.xlu1 %1194 }
 0x26f   : > { %v1199_v56 = vadd.f32 %v1195_v44, %v1151_v37  ;;  %v1167_v19 = vpop.permute.xlu0 %1166 }
 0x270   : > { %v1171_v23 = vadd.f32 %v1167_v19, %v2991_v49 }
 0x272   : > { %v1229_v24 = vadd.f32 %v1225_v16, %v1171_v23 }
 0x274   : > { %1560 = vrot.lane.b32.xlu2 %v1556_v54, %s2212_s15  ;;  %1604 = vrot.lane.b32.xlu1 %v1600_v61, %s2213_s26 }
 0x275   : > { %1546 = vrot.lane.b32.xlu0 %v1542_v25, %s2212_s15  ;;  %v1585_v25 = vstv %s3109_s23 }
 0x276   : > { %v3067_v33 = vpop.permute.xlu2 %1266  ;;  %v1223_v27 = vpop.permute.xlu1 %1222 }
 0x277   : > { %v1228_v37 = vadd.f32 %v1223_v27, %v1170_v9  ;;  %v1193_v34 = vpop.permute.xlu0 %1192  ;;  %v1587_v27 = vmul.f32 %v1585_v25, %v2928_v50 }
 0x278   : > { %v1198_v49 = vadd.f32 %v1193_v34, %v3011_v51  ;;  %v1655_v51 = vstv %s1959_s5 }
 0x279   : > { %v1656_v52 = vmul.f32 %v1655_v51, %v2944_v47  ;;  %v1657_v62 = vmul.f32 %v1655_v51, %v2928_v50 }
 0x27a   : > { %v3072_v40 = vadd.f32 %v1251_v1, %v1198_v49  ;;  %v1528_v1 = vmul.f32 %v1527_v17, %v3056_v8 }
 0x27c   : > { %1606 = vrot.lane.b32.xlu2 %v1601_v35, %s2213_s26  ;;  %1620 = vrot.lane.b32.xlu1 %v1615_v39, %s2213_s26 }
 0x27d   : > { %1562 = vrot.lane.b32.xlu0 %v1557_v13, %s2212_s15 }
 0x27e   : > { %v1293_v30 = vpop.permute.xlu2 %1292  ;;  %v1239_v45 = vpop.permute.xlu1 %1238 }
 0x27f   : > { %v1243_v36 = vadd.f32 %v1239_v45, %v1185_v53  ;;  %v1211_v43 = vpop.permute.xlu0 %1210 }
 0x284   : > { %1660 = vrot.lane.b32.xlu2 %v1656_v52, %s2214_s4 }
 0x285   : > { %1618 = vrot.lane.b32.xlu0 %v1614_v57, %s2213_s26 }
 0x286   : > { %v1325_v9 = vpop.permute.xlu2 %1324  ;;  %v1265_v38 = vpop.permute.xlu1 %1264 }
 0x287   : > { %v1237_v42 = vpop.permute.xlu0 %1236  ;;  %v1270_v44 = vadd.f32 %v1265_v38, %v1214_v0 }
 0x288   : > { %v1242_v59 = vadd.f32 %v1237_v42, %v1184_v7  ;;  %v1387_v7 = vstv %s3091_s18 }
 0x289   : > { %v1389_v55 = vmul.f32 %v1387_v7, %v2895_v18 }
 0x28a   : > { %v3084_v60 = vadd.f32 %v1293_v30, %v1242_v59 }
 0x28d   : > { %1662 = vrot.lane.b32.xlu0 %v1657_v62, %s2214_s4 }
 0x28e   : > { %v1437_v2 = vpop.permute.xlu2 %1436  ;;  %v1281_v3 = vpop.permute.xlu1 %1280 }
 0x28f   : > { %v3088_v46 = vadd.f32 %v1281_v3, %v1229_v24  ;;  %v1253_v5 = vpop.permute.xlu0 %1252  ;;  %v1521_v24 = vstv %s1949_s6 }
 0x290   : > { %v1257_v4 = vadd.f32 %v1253_v5, %v1199_v56  ;;  %v1215_v56 = vadd.f32 %v1211_v43, %v3030_v29  ;;  %v1522_v49 = vmul.f32 %v1521_v24, %v3056_v8 }
 0x292   : > { %v1271_v41 = vadd.f32 %v3067_v33, %v1215_v56  ;;  %v1523_v33 = vmul.f32 %v1521_v24, %v3041_v11  ;;  %v1515_v56 = vstv %s1948_s24 }
 0x295   : > { %1336 = vrot.lane.b32.xlu0 %v1332_v63, %s2216_s21 }
 0x296   : > { %v1495_v14 = vpop.permute.xlu2 %1494  ;;  %v1323_v53 = vpop.permute.xlu1 %1322 }
 0x297   : > { %v1279_v16 = vpop.permute.xlu0 %1278  ;;  %v1328_v19 = vadd.f32 %v1323_v53, %v1270_v44 }
 0x298   : > { %v3097_v20 = vadd.f32 %v1279_v16, %v1228_v37  ;;  %v1329_v37 = vadd.f32 %v1325_v9, %v1271_v41  ;;  %v1388_v16 = vmul.f32 %v1387_v7, %v2879_v26  ;;  %v1641_v41 = vstv %s1958_s28 }
 0x29d   : > { %1394 = vrot.lane.b32.xlu0 %v1389_v55, %s2217_s17  ;;  %v1509_v55 = vstv %s3126_s27 }
 0x29e   : > { %v1633_v6 = vpop.permute.xlu2 %1632  ;;  %v1381_v12 = vpop.permute.xlu1 %1380 }
 0x29f   : > { %v1295_v28 = vpop.permute.xlu0 %1294  ;;  %v1385_v29 = vadd.f32 %v1381_v12, %v1329_v37  ;;  %v1516_v37 = vmul.f32 %v1515_v56, %v3056_v8 }
 0x2a0   : > { %v3104_v10 = vadd.f32 %v1295_v28, %v1243_v36 }
 0x2a5   : > { %1532 = vrot.lane.b32.xlu0 %v1528_v1, %s2212_s15 }
 0x2a6   : > { %v1311_v21 = vpop.permute.xlu2 %1310  ;;  %v1493_v22 = vpop.permute.xlu1 %1492 }
 0x2a7   : > { %v1315_v23 = vadd.f32 %v1311_v21, %v1257_v4  ;;  %v1379_v54 = vpop.permute.xlu0 %1378  ;;  %v1517_v21 = vmul.f32 %v1515_v56, %v3041_v11 }
 0x2a8   : > { %v1384_v61 = vadd.f32 %v1379_v54, %v1328_v19 }
 0x2aa   : > { %v1442_v15 = vadd.f32 %v1437_v2, %v1384_v61 }
 0x2ac   : > { %v1498_v34 = vadd.f32 %v1493_v22, %v1442_v15 }
 0x2ad   : > { %1592 = vrot.lane.b32.xlu0 %v1587_v27, %s2213_s26 }
 0x2ae   : > { %v1579_v32 = vpop.permute.xlu1 %1578  ;;  %v1524_v35 = vadd.f32 %v1522_v49, %v1498_v34  ;;  %v1365_v39 = vpop.permute.xlu2 %1364 }
 0x2af   : > { %v1439_v13 = vpop.permute.xlu0 %1438 }
 0x2b0   : > { %v1443_v30 = vadd.f32 %v1439_v13, %v1385_v29 }
 0x2b2   : > { %v1499_v45 = vadd.f32 %v1495_v14, %v1443_v30  ;;  %v1445_v14 = vstv %s1942_s7  ;;  %s2134_s7 = scalar_lea.hbm %s3209_s2, 32 }
 0x2b3   : > { %v1446_v12 = vmul.f32 %v1445_v14, %v2909_v31  ;;  %v1529_v31 = vmul.f32 %v1527_v17, %v3041_v11  ;;  %v1642_v17 = vmul.f32 %v1641_v41, %v2944_v47 }
 0x2b4   : > { %v1525_v36 = vadd.f32 %v1523_v33, %v1499_v45 }
 0x2b6   : > { %v1309_v43 = vpop.permute.xlu1 %1308  ;;  %v1411_v9 = vpop.permute.xlu2 %1410  ;;  %v1583_v62 = vadd.f32 %v1579_v32, %v1525_v36 }
 0x2b7   : > { %v1314_v51 = vadd.f32 %v1309_v43, %v3072_v40  ;;  %v1577_v52 = vpop.permute.xlu0 %1576  ;;  %v1333_v40 = vmul.f32 %v1331_v58, %v2895_v18  ;;  %v1510_v58 = vmul.f32 %v1509_v55, %v3056_v8 }
 0x2b8   : > { %v1582_v57 = vadd.f32 %v1577_v52, %v1524_v35 }
 0x2b9   : > { %v1370_v38 = vadd.f32 %v1365_v39, %v1314_v51  ;;  %v1511_v39 = vmul.f32 %v1509_v55, %v3041_v11 }
 0x2ba   : > { %v1638_v42 = vadd.f32 %v1633_v6, %v1582_v57 }
 0x2bc   : > { %1680 = vrot.lane.b32.xlu1 %v1638_v42, %s2213_s26 }
 0x2be   : > { %v1353_v59 = vpop.permute.xlu1 %1352  ;;  %v1465_v5 = vpop.permute.xlu2 %1464 }
 0x2bf   : > { %v1635_v2 = vpop.permute.xlu0 %1634  ;;  %v1357_v15 = vadd.f32 %v1353_v59, %v3104_v10 }
 0x2c0   : > { %v1639_v3 = vadd.f32 %v1635_v2, %v1583_v62 }
 0x2c1   : > { %v1415_v49 = vadd.f32 %v1411_v9, %v1357_v15 }
 0x2c2   : > { %1682 = vrot.lane.b32.xlu2 %v1639_v3, %s2213_s26 }
 0x2c4   : > { %1338 = vrot.lane.b32.xlu1 %v1333_v40, %s2216_s21 }
 0x2c6   : > { %v1409_v4 = vpop.permute.xlu1 %1408  ;;  %v1481_v28 = vpop.permute.xlu2 %1480 }
 0x2c7   : > { %v1351_v63 = vpop.permute.xlu0 %1350 }
 0x2c8   : > { %v1356_v53 = vadd.f32 %v1351_v63, %v3084_v60  ;;  %v1447_v60 = vmul.f32 %v1445_v14, %v2926_v48  ;;  %v1586_v48 = vmul.f32 %v1585_v25, %v2944_v47  ;;  %v1643_v25 = vmul.f32 %v1641_v41, %v2928_v50 }
 0x2ca   : > { %v1414_v6 = vadd.f32 %v1409_v4, %v1356_v53  ;;  %1392 = vrot.lane.b32.xlu2 %v1388_v16, %s2217_s17 }
 0x2cc   : > { %1450 = vrot.lane.b32.xlu1 %v1446_v12, %s2219_s16  ;;  %v1470_v18 = vadd.f32 %v1465_v5, %v1414_v6 }
 0x2ce   : > { %v1425_v0 = vpop.permute.xlu1 %1424  ;;  %v1512_v1 = vadd.f32 %v1510_v58, %v1470_v18  ;;  %v1561_v61 = vpop.permute.xlu2 %1560 }
 0x2cf   : > { %v1367_v44 = vpop.permute.xlu0 %1366 }
 0x2d0   : > { %v1371_v26 = vadd.f32 %v1367_v44, %v1315_v23 }
 0x2d2   : > { %v1429_v7 = vadd.f32 %v1425_v0, %v1371_v26  ;;  %1452 = vrot.lane.b32.xlu2 %v1447_v60, %s2219_s16 }
 0x2d4   : > { %1534 = vrot.lane.b32.xlu1 %v1529_v31, %s2212_s15  ;;  %v1485_v19 = vadd.f32 %v1481_v28, %v1429_v7  ;;  %s1946_s15 = sld [smem:[#allocation5 + $0x54]] }
 0x2d6   : > { %v1479_v22 = vpop.permute.xlu1 %1478  ;;  %v1519_v54 = vadd.f32 %v1517_v21, %v1485_v19  ;;  %v1607_v10 = vpop.permute.xlu2 %1606 }
 0x2d7   : > { %v1423_v24 = vpop.permute.xlu0 %1422 }
 0x2d8   : > { %v1428_v23 = vadd.f32 %v1423_v24, %v1370_v38 }
 0x2da   : > { %v1484_v27 = vadd.f32 %v1479_v22, %v1428_v23  ;;  %1590 = vrot.lane.b32.xlu2 %v1586_v48, %s2213_s26  ;;  %v1503_v58 = vstv %s1946_s15 }
 0x2db   : > { %v1505_v0 = vmul.f32 %v1503_v58, %v3041_v11  ;;  %v1504_v7 = vmul.f32 %v1503_v58, %v3056_v8 }
 0x2dc   : > { %1646 = vrot.lane.b32.xlu1 %v1642_v17, %s2214_s4  ;;  %v1518_v34 = vadd.f32 %v1516_v37, %v1484_v27 }
 0x2de   : > { %v1566_v29 = vadd.f32 %v1561_v61, %v1518_v34  ;;  %v1549_v32 = vpop.permute.xlu1 %1548  ;;  %v1661_v43 = vpop.permute.xlu2 %1660 }
 0x2df   : > { %v1467_v35 = vpop.permute.xlu0 %1466 }
 0x2e0   : > { %v1471_v13 = vadd.f32 %v1467_v35, %v1415_v49 }
 0x2e2   : > { %v1513_v30 = vadd.f32 %v1511_v39, %v1471_v13  ;;  %1648 = vrot.lane.b32.xlu2 %v1643_v25, %s2214_s4  ;;  %s1968_s4 = sshll.u32 %s2192_s12, 4 }
 0x2e3   : > { %s1751_s16 = scalar_lea.hbm %s3209_s2, %s1968_s4 }
 0x2e4   : > { %v1553_v9 = vadd.f32 %v1549_v32, %v1513_v30  ;;  %s1754_s5 = sshll.u32 %s1751_s16, 4  ;;  %s1755_s5 = int_to_ptr.hbm [resolvable:$true] %s1754_s5 }
 0x2e5   : > { %s2128_s18 = sshra.s32 %s1755_s5, 4  ;;  %s2129_s18 = int_to_ptr.hbm [resolvable:$true] %s2128_s18 }
 0x2e6   : > { %v1605_v33 = vpop.permute.xlu1 %1604  ;;  %v1611_v38 = vadd.f32 %v1607_v10, %v1553_v9  ;;  %s2130_s19 = scalar_lea.hbm %s2129_s18, 16  ;;  %p2135_p8 = scmp.lt.s32.totalorder %s2129_s18, %s3209_s2 }
 0x2e7   : > { %v1547_v45 = vpop.permute.xlu0 %1546  ;;  %p2131_p1 = scmp.ne.s32.totalorder %s2129_s18, %s2130_s19  ;;  %p2136_p11 = scmp.lt.s32.totalorder %s2134_s7, %s2130_s19 }
 0x2e8   : > { %v1552_v47 = vadd.f32 %v1547_v45, %v1512_v1 }
 0x2e9   : > { %p2132_p2 = pnand %p2131_p1, %p2315_p9  ;;  %p2137_p12 = por %p2136_p11, %p2135_p8 }
 0x2ea   : > { %v1610_v36 = vadd.f32 %v1605_v33, %v1552_v47 }
 0x2eb   : > { %p2133_p4 = pneg %p2132_p2 }
 0x2ec   : > { %v1666_v51 = vadd.f32 %v1661_v43, %v1610_v36 }
 0x2ed   : > { %p2138_p13 = pnand %p2137_p12, %p2133_p4 }
 0x2ee   : > { %1670 = vrot.lane.b32.xlu0 %v1666_v51, %s2213_s26  ;;  %v1621_v62 = vpop.permute.xlu1 %1620 }
 0x2ef   : > { %v1563_v52 = vpop.permute.xlu0 %1562 }
 0x2f0   : > { %v1567_v50 = vadd.f32 %v1563_v52, %v1519_v54 }
 0x2f2   : > { %v1625_v2 = vadd.f32 %v1621_v62, %v1567_v50 }
 0x2f7   : > { %v1619_v57 = vpop.permute.xlu0 %1618 }
 0x2f8   : > { %v1624_v5 = vadd.f32 %v1619_v57, %v1566_v29 }
 0x2ff   : > { %v1663_v42 = vpop.permute.xlu0 %1662 }
 0x300   : > { %v1667_v59 = vadd.f32 %v1663_v42, %v1611_v38 }
 0x302   : > { %1672 = vrot.lane.b32.xlu1 %v1667_v59, %s2213_s26  ;;  %s1862_s26 = sshll.u32 %s2336_s22, 4 }
 0x303   : > { %s191_s12 = scalar_lea.vmem [#allocation10], %s1862_s26 }
 0x304   : > { %s1752_s30 = sshll.u32 %s191_s12, 4  ;;  %s1753_s30 = int_to_ptr.vmem [resolvable:$true] %s1752_s30 }
 0x307   : > { %v1337_v4 = vpop.permute.xlu0 %1336 }
 0x308   : > { %v1342_v28 = vadd.f32 %v1337_v4, %v3097_v20 }
 0x30f   : > { %v1395_v6 = vpop.permute.xlu0 %1394 }
 0x317   : > { %v1533_v19 = vpop.permute.xlu0 %1532 }
 0x31c   : > { %v1683_v3 = vpop.permute.xlu2 %1682 }
 0x31d   : > { %v1687_v40 = vadd.f32 %v1683_v3, %v1625_v2 }
 0x31f   : > { %1692 = vrot.lane.b32.xlu0 %v1687_v40, %s2216_s21 }
 0x324   : > { %v1393_v53 = vpop.permute.xlu2 %1392 }
 0x325   : > { %v1398_v44 = vadd.f32 %v1393_v53, %v1342_v28 }
 0x32c   : > { %v1453_v18 = vpop.permute.xlu2 %1452 }
 0x32e   : > { %v1681_v63 = vpop.permute.xlu1 %1680 }
 0x32f   : > { %v1686_v14 = vadd.f32 %v1681_v63, %v1624_v5 }
 0x331   : > { %1690 = vrot.lane.b32.xlu2 %v1686_v14, %s2216_s21 }
 0x334   : > { %v1591_v21 = vpop.permute.xlu2 %1590 }
 0x336   : > { %v1339_v16 = vpop.permute.xlu1 %1338 }
 0x337   : > { %v1343_v55 = vadd.f32 %v1339_v16, %v3088_v46  ;;  %v1593_v46 = vpop.permute.xlu0 %1592 }
 0x339   : > { %v1399_v12 = vadd.f32 %v1395_v6, %v1343_v55 }
 0x33b   : > { %v1457_v1 = vadd.f32 %v1453_v18, %v1399_v12 }
 0x33c   : > { %v1649_v61 = vpop.permute.xlu2 %1648 }
 0x33d   : > { %v1507_v26 = vadd.f32 %v1505_v0, %v1457_v1 }
 0x33e   : > { %v1451_v60 = vpop.permute.xlu1 %1450 }
 0x33f   : > { %v1456_v31 = vadd.f32 %v1451_v60, %v1398_v44 }
 0x341   : > { %v1506_v56 = vadd.f32 %v1504_v7, %v1456_v31 }
 0x343   : > { %v1538_v54 = vadd.f32 %v1533_v19, %v1506_v56 }
 0x345   : > { %v1596_v23 = vadd.f32 %v1591_v21, %v1538_v54 }
 0x346   : > { %v1535_v22 = vpop.permute.xlu1 %1534 }
 0x347   : > { %v1539_v41 = vadd.f32 %v1535_v22, %v1507_v26 }
 0x349   : > { %v1597_v11 = vadd.f32 %v1593_v46, %v1539_v41 }
 0x34b   : > { %v1653_v34 = vadd.f32 %v1649_v61, %v1597_v11 }
 0x34e   : > { %v1647_v24 = vpop.permute.xlu1 %1646 }
 0x34f   : > { %v1652_v48 = vadd.f32 %v1647_v24, %v1596_v23 }
 0x360   : > { %v1671_v20 = vpop.permute.xlu0 %1670 }
 0x361   : > { %v1676_v15 = vadd.f32 %v1671_v20, %v1652_v48 }
 0x374   : > { %v1673_v37 = vpop.permute.xlu1 %1672 }
 0x375   : > { %v1677_v49 = vadd.f32 %v1673_v37, %v1653_v34 }
 0x38b   : > { %v1691_v27 = vpop.permute.xlu2 %1690 }
 0x38c   : > { %v1696_v17 = vadd.f32 %v1691_v27, %v1676_v15 }
 0x38e   : > { %v1960_v8 = vmul.f32 -1.442695, %v1696_v17 }
 0x390   : > { %2061 = vpow2.f32 %v1960_v8 }
 0x391   : > { %v1693_v29 = vpop.permute.xlu0 %1692 }
 0x392   : > { %v1697_v32 = vadd.f32 %v1693_v29, %v1677_v49 }
 0x394   : > { %v1961_v35 = vmul.f32 -1.442695, %v1697_v32 }
 0x396   : > { %v2062_v39 = vpop.eup %2061  ;;  %2063 = vpow2.f32 %v1961_v35 }
 0x397   : > { %v1704_v13 = vadd.f32 1.0, %v2062_v39 }
 0x399   : > { %2065 = vrcp.f32 %v1704_v13  ;;  %v1717_v33 = vand.u32 2147483648, %v1704_v13  ;;  %v1715_v43 = vand.u32 2147483647, %v1704_v13  ;;  %vm1711_vm5 = vweird.f32 %v1704_v13 }
 0x39b   : > { %v1718_v9 = vor.u32 1.1754944e-38, %v1717_v33  ;;  %vm1716_vm8 = vcmp.eq.f32.partialorder %v1715_v43, 8.507059e+37 }
 0x39c   : > { %v2064_v25 = vpop.eup %2063 }
 0x39d   : > { %v1705_v10 = vadd.f32 1.0, %v2064_v25 }
 0x39f   : > { %v2066_v30 = vpop.eup %2065  ;;  %2067 = vrcp.f32 %v1705_v10  ;;  %v1732_v59 = vand.u32 2147483648, %v1705_v10  ;;  %v1730_v2 = vand.u32 2147483647, %v1705_v10  ;;  %vm1726_vm10 = vweird.f32 %v1705_v10 }
 0x3a0   : > { %v1707_v45 = vmul.f32 %v2066_v30, %v1704_v13  ;;  %vm1712_vm4 = vweird.f32 %v2066_v30 }
 0x3a1   : > { %vm1713_vm6 = vmor %vm1711_vm5, %vm1712_vm4  ;;  %v1733_v40 = vor.u32 1.1754944e-38, %v1732_v59  ;;  %vm1731_vm12 = vcmp.eq.f32.partialorder %v1730_v2, 8.507059e+37 }
 0x3a2   : > { %v1708_v47 = vsub.f32 1.0, %v1707_v45 }
 0x3a4   : > { %v1709_v36 = vmul.f32 %v2066_v30, %v1708_v47 }
 0x3a5   : > { %v2068_v51 = vpop.eup %2067 }
 0x3a6   : > { %v1710_v52 = vadd.f32 %v2066_v30, %v1709_v36  ;;  %v1722_v57 = vmul.f32 %v2068_v51, %v1705_v10  ;;  %vm1727_vm9 = vweird.f32 %v2068_v51 }
 0x3a7   : > { %vm1728_vm11 = vmor %vm1726_vm10, %vm1727_vm9 }
 0x3a8   : > { %v1723_v38 = vsub.f32 1.0, %v1722_v57  ;;  %v1714_v42 = vsel %vm1713_vm6, %v2066_v30, %v1710_v52 }
 0x3a9   : > { %v1719_v50 = vsel %vm1716_vm8, %v1718_v9, %v1714_v42 }
 0x3aa   : > { %v1724_v62 = vmul.f32 %v2068_v51, %v1723_v38  ;;  %1737 = vst.msk [vmem:[%s191_s12] sm:$0xff] %vm1736_vm7, %v1719_v50 }
 0x3ac   : > { %v1725_v3 = vadd.f32 %v2068_v51, %v1724_v62 }
 0x3ae   : > { %v1729_v5 = vsel %vm1728_vm11, %v2068_v51, %v1725_v3 }
 0x3af   : > { %v1734_v4 = vsel %vm1731_vm12, %v1733_v40, %v1729_v5 }
 0x3b0   : > { %1738 = vst.msk [vmem:[%s191_s12 + $0x8] sm:$0xff] %vm1736_vm7, %v1734_v4 }
 0x3b1   : > { %2141 = shalt.err (!%p2138_p13)
}
 0x3b2   : > { %s2220_s22 = smov 128   ;;  %s2221_s28 = smov 8  }
 0x3b3   : > { %1975 = dma.vmem_to_hbm [thread:$0]  (%p2315_p9), %s1753_s30, 256, %s1755_s5, %s1740_s8, %s2220_s22, %s2220_s22, %s2221_s28  }
 0x3b4 PF: > { %s1769_s15 = sand.u32 1, %s2180_s9   ;;  %p3216_p0 = scmp.ge.s32.totalorder %s2200_s14, 2 }
 0x3b5   : > { %s1770_s26 = scalar_lea.sflag [#allocation7], %s1769_s15 }
 0x3b6   : > { %p1986_p3 = pnand %p3216_p0, %p2286_p6 }
 0x3b8   : > { %p1987_p5 = pneg %p1986_p3 }
 0x3ba   : > { %2175 = dma.done.wait (%p1987_p5), %s1770_s26, 256  }
 0x3bb   : > { %2177 = vsyncadd (%p1987_p5), %s1770_s26, 4294967040  ;;  %s19_s14 = sadd.s32 1, %s2200_s14   ;;  %s3217_s9 = smov %s2184_s10 }
 0x3bc   : > { %p16_p7 = scmp.ge.s32.totalorder %s19_s14, 4   ;;  %s3218_s10 = smov %s2188_s11 }
 0x3bd   : > { %s3219_s11 = smov %s2321_s3  ;;  %s3220_s12 = smov %s2196_s13 }
 0x3be   : > { %s3221_s13 = smov %s3223_s25  ;;  %18 = sbr.rel (!%p16_p7) target bundleno = 7 (0x7), region = 88 }
 0x3c3   :  { %1776 = vsyncpa [#allocation6], 1 }
 0x3c4   :  { %1778 = vsyncpa [#allocation6 + $0x1], 1 }
 0x3c5   :  { %1779 = vsyncpa [#allocation7], 1 }
 0x3c6   :  { %1781 = vsyncpa [#allocation7 + $0x1], 1 }
 0x3c7   :  { %1782 = vsyncpa [#allocation8], 1 }
 0x3c8   :  { %1784 = vsyncpa [#allocation8 + $0x1], 1 }

</bundles_post_ra>
